<compile_context>
chip_gen: v7x
topology: tpu7x:2x2x1
jax: 0.10.0
libtpu: 0.0.40
codegen_flags: <defaults>
</compile_context>

<pallas_src>
import math

import numpy as np

import jax
import jax.numpy as jnp
from jax.experimental import pallas as pl
from jax.experimental.pallas import tpu as pltpu


_ACT = jnp.bfloat16   # storage dtype for activations / MXU inputs


# ---------------------------------------------------------------------------
# Constant pooling / upsampling matrices (built once on host)
# ---------------------------------------------------------------------------
def _pool_matrix(h, w):
    """(HW, HW/4) matrix: out = x @ P performs 2x2 average pooling."""
    ho, wo = h // 2, w // 2
    r = np.arange(h * w)
    j = ((r // w) // 2) * wo + (r % w) // 2
    m = np.zeros((h * w, ho * wo), np.float32)
    m[r, j] = 0.25
    return jnp.asarray(m, dtype=_ACT)          # 0.25 exact in bf16


def _upsample_matrix(h, w):
    """(HW, 4*HW) matrix: out = x @ U performs 2x nearest-neighbour upsample."""
    hf, wf = 2 * h, 2 * w
    rf = np.arange(hf * wf)
    rc = ((rf // wf) // 2) * w + (rf % wf) // 2
    m = np.zeros((h * w, hf * wf), np.float32)
    m[rc, rf] = 1.0
    return jnp.asarray(m, dtype=_ACT)


# ---------------------------------------------------------------------------
# Fused whole-UNet kernel factory
# ---------------------------------------------------------------------------
def _make_unet_kernel(blocks_channels, block_depth, H, W):
    down_levels = list(blocks_channels[:-1])

    def kernel(*refs):
        o_ref = refs[-1]
        it = iter(refs[:-1])
        x_ref = next(it)                    # (1, img_ch, HW)   bf16
        bin_ref = next(it)                  # (1, C0, 1)        f32 per-batch bias

        # --- per-resolution column masks (built once, shared by all convs) ---
        mask_cache = {}

        def col_masks(h, w):
            if (h, w) not in mask_cache:
                hw = h * w
                col = jax.lax.broadcasted_iota(jnp.int32, (1, hw), 1) % w
                mask_cache[(h, w)] = ((col != 0).astype(_ACT),        # dw = -1
                                      (col != (w - 1)).astype(_ACT))  # dw = +1
            return mask_cache[(h, w)]

        def build_taps(a, h, w):
            """a: (Cin, HW) bf16 -> (9*Cin, HW) bf16 tapped activation.

            out column r of tap (dh, dw) is a[:, r + dh*w + dw] if that pixel is
            inside the image, else 0.  Vertical OOB lands in the zero pad;
            horizontal wrap is killed by the column masks.
            """
            hw = h * w
            cin = a.shape[0]
            mneg, mpos = col_masks(h, w)
            pad = jnp.zeros((cin, w + 1), _ACT)
            ap = jnp.concatenate([pad, a, pad], axis=1)     # (Cin, HW + 2w + 2)
            slabs = []
            for dh in (-1, 0, 1):
                for dw in (-1, 0, 1):
                    start = (w + 1) + dh * w + dw
                    s = ap[:, start:start + hw]
                    if dw == -1:
                        s = s * mneg
                    elif dw == 1:
                        s = s * mpos
                    slabs.append(s)
            return jnp.concatenate(slabs, axis=0)

        def res_block(xin, cout, h, w):
            """Fused residual block: (1x1 shortcut) + conv3x3 + swish + conv3x3 + add."""
            cin = xin.shape[0]
            w1 = next(it); b1 = next(it); w2 = next(it); b2 = next(it)
            if cin != cout:
                wr = next(it); br = next(it)
                res = jnp.dot(wr[...], xin,
                              preferred_element_type=jnp.float32) + br[...]
            else:
                res = xin.astype(jnp.float32)
            a1 = jnp.dot(w1[...], build_taps(xin, h, w),
                         preferred_element_type=jnp.float32) + b1[...]
            hmid = (a1 * jax.nn.sigmoid(a1)).astype(_ACT)            # swish, f32 math
            a2 = jnp.dot(w2[...], build_taps(hmid, h, w),
                         preferred_element_type=jnp.float32) + b2[...]
            return (a2 + res).astype(_ACT)

        # ----------------------------- forward ------------------------------
        in_wx = next(it)
        x = (jnp.dot(in_wx[...], x_ref[0], preferred_element_type=jnp.float32)
             + bin_ref[0]).astype(_ACT)                               # (C0, HW)

        skips = []
        h, w = H, W
        for ch in down_levels:
            for _ in range(block_depth):
                x = res_block(x, ch, h, w)
                skips.append(x)
            pool = next(it)                                           # (hw, hw/4)
            x = jnp.dot(x, pool[...], preferred_element_type=jnp.float32).astype(_ACT)
            h, w = h // 2, w // 2

        for _ in range(block_depth):
            x = res_block(x, blocks_channels[-1], h, w)

        for ch in reversed(down_levels):
            up = next(it)                                             # (hw, 4*hw)
            x = jnp.dot(x, up[...], preferred_element_type=jnp.float32).astype(_ACT)
            h, w = h * 2, w * 2
            for _ in range(block_depth):
                xin = jnp.concatenate([x, skips.pop()], axis=0)       # skip concat
                x = res_block(xin, ch, h, w)

        out_w = next(it)
        out_b = next(it)
        y = jnp.dot(out_w[...], x, preferred_element_type=jnp.float32) + out_b[...]
        o_ref[0] = y.astype(o_ref.dtype)

    return kernel


# ---------------------------------------------------------------------------
# Parameter init (deterministic) + flat argument ordering matching the kernel
# ---------------------------------------------------------------------------
def resunet_init(key, img_channels, emb_dims, out_channels, blocks_channels,
                 block_depth, img_size):
    keys = iter(jax.random.split(key, 256))
    c0 = blocks_channels[0]
    p = {}

    def dense(cin, cout):
        return jax.random.normal(next(keys), (cout, cin), jnp.float32) / math.sqrt(cin)

    # Input 1x1 conv over concat([image, step_emb]) channels.  The image part
    # stays a kernel weight; the embedding part is folded into a per-batch bias.
    w_in = (jax.random.normal(next(keys), (c0, img_channels + emb_dims), jnp.float32)
            / math.sqrt(img_channels + emb_dims))
    p["in_wx"] = w_in[:, :img_channels].astype(_ACT)          # (C0, 3) bf16
    p["in_we"] = jnp.transpose(w_in[:, img_channels:])        # (emb, C0) f32
    p["in_b"] = jnp.zeros((c0,), jnp.float32)

    def resblock(cin, cout):
        d = {
            "w1": (jax.random.normal(next(keys), (cout, 9 * cin), jnp.float32)
                   / math.sqrt(9 * cin)).astype(_ACT),
            "b1": jnp.zeros((cout, 1), jnp.float32),
            "w2": (jax.random.normal(next(keys), (cout, 9 * cout), jnp.float32)
                   / math.sqrt(9 * cout)).astype(_ACT),
            "b2": jnp.zeros((cout, 1), jnp.float32),
        }
        if cin != cout:
            d["wr"] = dense(cin, cout).astype(_ACT)
            d["br"] = jnp.zeros((cout, 1), jnp.float32)
        return d

    down_levels = list(blocks_channels[:-1])
    blocks = []
    c = c0
    for ch in down_levels:
        for _ in range(block_depth):
            blocks.append(resblock(c, ch)); c = ch
    for _ in range(block_depth):
        blocks.append(resblock(c, blocks_channels[-1])); c = blocks_channels[-1]
    for ch in reversed(down_levels):
        for _ in range(block_depth):
            blocks.append(resblock(c + ch, ch)); c = ch
    p["blocks"] = blocks

    pool_mats, up_mats = [], []
    h = w = img_size
    for _ in down_levels:
        pool_mats.append(_pool_matrix(h, w)); h //= 2; w //= 2
    for _ in down_levels:
        up_mats.append(_upsample_matrix(h, w)); h *= 2; w *= 2
    p["pool_mats"] = pool_mats
    p["up_mats"] = up_mats

    p["out_w"] = dense(c, out_channels).astype(_ACT)
    p["out_b"] = jnp.zeros((out_channels, 1), jnp.float32)
    return p


def _flat_args(params, blocks_channels, block_depth):
    """Flatten params in exactly the order the kernel consumes them."""
    def blk(d):
        out = [d["w1"], d["b1"], d["w2"], d["b2"]]
        if "wr" in d:
            out += [d["wr"], d["br"]]
        return out

    down_levels = list(blocks_channels[:-1])
    flat = [params["in_wx"]]
    bi = 0
    for li in range(len(down_levels)):
        for _ in range(block_depth):
            flat += blk(params["blocks"][bi]); bi += 1
        flat.append(params["pool_mats"][li])
    for _ in range(block_depth):
        flat += blk(params["blocks"][bi]); bi += 1
    for li in range(len(down_levels)):
        flat.append(params["up_mats"][li])
        for _ in range(block_depth):
            flat += blk(params["blocks"][bi]); bi += 1
    flat += [params["out_w"], params["out_b"]]
    return flat


# ---------------------------------------------------------------------------
# pallas_call wrapper
# ---------------------------------------------------------------------------
def _unet_pallas(params, x_flat, bias_in, blocks_channels, block_depth, H, W):
    B, c_img, HW = x_flat.shape
    c0 = blocks_channels[0]
    out_ch = params["out_w"].shape[0]
    flat = _flat_args(params, blocks_channels, block_depth)
    kernel = _make_unet_kernel(blocks_channels, block_depth, H, W)

    in_specs = [
        pl.BlockSpec((1, c_img, HW), lambda b: (b, 0, 0)),
        pl.BlockSpec((1, c0, 1), lambda b: (b, 0, 0)),
    ]
    for arr in flat:  # whole-array, grid-invariant weight blocks (stay in VMEM)
        in_specs.append(pl.BlockSpec(arr.shape, lambda b, _z=(0,) * arr.ndim: _z))

    return pl.pallas_call(
        kernel,
        out_shape=jax.ShapeDtypeStruct((B, out_ch, HW), jnp.float32),
        grid=(B,),
        in_specs=in_specs,
        out_specs=pl.BlockSpec((1, out_ch, HW), lambda b: (b, 0, 0)),
        compiler_params=pltpu.CompilerParams(
            dimension_semantics=("parallel",),
            vmem_limit_bytes=32 * 1024 * 1024,
        ),
    )(x_flat, bias_in, *flat)


# ---------------------------------------------------------------------------
# DiffusionModel wrapper
# ---------------------------------------------------------------------------
def _forward(params, angular_speeds, blocks_channels, block_depth, x_nchw, step):
    B, C, H, W = x_nchw.shape
    prod = angular_speeds[None, :] * step[:, None]
    emb = jnp.concatenate([jnp.sin(prod), jnp.cos(prod)], axis=-1)      # (B, emb)
    # Fold the (spatially constant) step embedding into the input 1x1 conv as a
    # per-batch bias: mathematically identical to concat([x, broadcast(emb)]).
    bias_in = (emb @ params["in_we"] + params["in_b"])[:, :, None]      # (B, C0, 1)
    x_flat = x_nchw.reshape(B, C, H * W).astype(_ACT)                   # (B, C, HW)
    y = _unet_pallas(params, x_flat, bias_in.astype(jnp.float32),
                     blocks_channels, block_depth, H, W)                # (B, 3, HW)
    return y.reshape(B, -1, H, W)


class DiffusionModelPallas:
    def __init__(self, max_step, step_embedding_dims, img_size, blocks_channels,
                 block_depth, key):
        self._img_size = img_size
        self._blocks_channels = tuple(blocks_channels)
        self._block_depth = block_depth
        freqs = jnp.exp(jnp.linspace(math.log(1.0), math.log(float(max_step)),
                                     step_embedding_dims // 2))
        self._angular_speeds = (2.0 * jnp.pi * freqs).astype(jnp.float32)
        self._params = resunet_init(key, 3, step_embedding_dims, 3,
                                    self._blocks_channels, block_depth, img_size)
        bc, bd = self._blocks_channels, block_depth
        self._jit_forward = jax.jit(
            lambda p, sp, x, s: _forward(p, sp, bc, bd, x, s))

    def __call__(self, x_nchw, step):
        return self._jit_forward(self._params, self._angular_speeds, x_nchw, step)


if __name__ == "__main__":
    key = jax.random.PRNGKey(0)
    k_x, k_step, k_param = jax.random.split(key, 3)

    max_step = 1000
    step_embedding_dims = 8
    img_size = 16
    blocks_channels = [16, 32]
    block_depth = 2

    model = DiffusionModelPallas(max_step, step_embedding_dims, img_size,
                                 blocks_channels, block_depth, k_param)

    x = jax.random.normal(k_x, (2, 3, img_size, img_size), jnp.float32)
    step = jax.random.uniform(k_step, (2,), jnp.float32)

    y = model(x, step)
    jax.block_until_ready(y)
    assert y.shape == (2, 3, img_size, img_size)
    assert y.dtype == jnp.float32
    assert bool(jnp.all(jnp.isfinite(y)))
    print("KERNEL_OK")
</pallas_src>

<mosaic_0001>
module attributes {stable_mosaic.version = 11 : i64} {
  func.func @kernel(%arg0: i32, %arg1: memref<1x3x256xbf16, #tpu.memory_space<vmem>>, %arg2: memref<1x16x1xf32, #tpu.memory_space<vmem>>, %arg3: memref<16x3xbf16, #tpu.memory_space<vmem>>, %arg4: memref<16x144xbf16, #tpu.memory_space<vmem>>, %arg5: memref<16x1xf32, #tpu.memory_space<vmem>>, %arg6: memref<16x144xbf16, #tpu.memory_space<vmem>>, %arg7: memref<16x1xf32, #tpu.memory_space<vmem>>, %arg8: memref<16x144xbf16, #tpu.memory_space<vmem>>, %arg9: memref<16x1xf32, #tpu.memory_space<vmem>>, %arg10: memref<16x144xbf16, #tpu.memory_space<vmem>>, %arg11: memref<16x1xf32, #tpu.memory_space<vmem>>, %arg12: memref<256x64xbf16, #tpu.memory_space<vmem>>, %arg13: memref<32x144xbf16, #tpu.memory_space<vmem>>, %arg14: memref<32x1xf32, #tpu.memory_space<vmem>>, %arg15: memref<32x288xbf16, #tpu.memory_space<vmem>>, %arg16: memref<32x1xf32, #tpu.memory_space<vmem>>, %arg17: memref<32x16xbf16, #tpu.memory_space<vmem>>, %arg18: memref<32x1xf32, #tpu.memory_space<vmem>>, %arg19: memref<32x288xbf16, #tpu.memory_space<vmem>>, %arg20: memref<32x1xf32, #tpu.memory_space<vmem>>, %arg21: memref<32x288xbf16, #tpu.memory_space<vmem>>, %arg22: memref<32x1xf32, #tpu.memory_space<vmem>>, %arg23: memref<64x256xbf16, #tpu.memory_space<vmem>>, %arg24: memref<16x432xbf16, #tpu.memory_space<vmem>>, %arg25: memref<16x1xf32, #tpu.memory_space<vmem>>, %arg26: memref<16x144xbf16, #tpu.memory_space<vmem>>, %arg27: memref<16x1xf32, #tpu.memory_space<vmem>>, %arg28: memref<16x48xbf16, #tpu.memory_space<vmem>>, %arg29: memref<16x1xf32, #tpu.memory_space<vmem>>, %arg30: memref<16x288xbf16, #tpu.memory_space<vmem>>, %arg31: memref<16x1xf32, #tpu.memory_space<vmem>>, %arg32: memref<16x144xbf16, #tpu.memory_space<vmem>>, %arg33: memref<16x1xf32, #tpu.memory_space<vmem>>, %arg34: memref<16x32xbf16, #tpu.memory_space<vmem>>, %arg35: memref<16x1xf32, #tpu.memory_space<vmem>>, %arg36: memref<3x16xbf16, #tpu.memory_space<vmem>>, %arg37: memref<3x1xf32, #tpu.memory_space<vmem>>, %arg38: memref<1x3x256xf32, #tpu.memory_space<vmem>>) attributes {dimension_semantics = [#tpu.dimension_semantics<parallel>], iteration_bounds = array<i64: 2>, scalar_prefetch = 0 : i64, scratch_operands = 0 : i64, tpu.core_type = #tpu.core_type<tc>, window_params = [{transform_indices = @transform_0, window_bounds = array<i64: 1, 3, 256>}, {transform_indices = @transform_1, window_bounds = array<i64: 1, 16, 1>}, {pipeline_mode = #tpu.pipeline_mode<synchronous>, transform_indices = @transform_2, window_bounds = array<i64: 16, 3>}, {pipeline_mode = #tpu.pipeline_mode<synchronous>, transform_indices = @transform_3, window_bounds = array<i64: 16, 144>}, {pipeline_mode = #tpu.pipeline_mode<synchronous>, transform_indices = @transform_4, window_bounds = array<i64: 16, 1>}, {pipeline_mode = #tpu.pipeline_mode<synchronous>, transform_indices = @transform_5, window_bounds = array<i64: 16, 144>}, {pipeline_mode = #tpu.pipeline_mode<synchronous>, transform_indices = @transform_6, window_bounds = array<i64: 16, 1>}, {pipeline_mode = #tpu.pipeline_mode<synchronous>, transform_indices = @transform_7, window_bounds = array<i64: 16, 144>}, {pipeline_mode = #tpu.pipeline_mode<synchronous>, transform_indices = @transform_8, window_bounds = array<i64: 16, 1>}, {pipeline_mode = #tpu.pipeline_mode<synchronous>, transform_indices = @transform_9, window_bounds = array<i64: 16, 144>}, {pipeline_mode = #tpu.pipeline_mode<synchronous>, transform_indices = @transform_10, window_bounds = array<i64: 16, 1>}, {pipeline_mode = #tpu.pipeline_mode<synchronous>, transform_indices = @transform_11, window_bounds = array<i64: 256, 64>}, {pipeline_mode = #tpu.pipeline_mode<synchronous>, transform_indices = @transform_12, window_bounds = array<i64: 32, 144>}, {pipeline_mode = #tpu.pipeline_mode<synchronous>, transform_indices = @transform_13, window_bounds = array<i64: 32, 1>}, {pipeline_mode = #tpu.pipeline_mode<synchronous>, transform_indices = @transform_14, window_bounds = array<i64: 32, 288>}, {pipeline_mode = #tpu.pipeline_mode<synchronous>, transform_indices = @transform_15, window_bounds = array<i64: 32, 1>}, {pipeline_mode = #tpu.pipeline_mode<synchronous>, transform_indices = @transform_16, window_bounds = array<i64: 32, 16>}, {pipeline_mode = #tpu.pipeline_mode<synchronous>, transform_indices = @transform_17, window_bounds = array<i64: 32, 1>}, {pipeline_mode = #tpu.pipeline_mode<synchronous>, transform_indices = @transform_18, window_bounds = array<i64: 32, 288>}, {pipeline_mode = #tpu.pipeline_mode<synchronous>, transform_indices = @transform_19, window_bounds = array<i64: 32, 1>}, {pipeline_mode = #tpu.pipeline_mode<synchronous>, transform_indices = @transform_20, window_bounds = array<i64: 32, 288>}, {pipeline_mode = #tpu.pipeline_mode<synchronous>, transform_indices = @transform_21, window_bounds = array<i64: 32, 1>}, {pipeline_mode = #tpu.pipeline_mode<synchronous>, transform_indices = @transform_22, window_bounds = array<i64: 64, 256>}, {pipeline_mode = #tpu.pipeline_mode<synchronous>, transform_indices = @transform_23, window_bounds = array<i64: 16, 432>}, {pipeline_mode = #tpu.pipeline_mode<synchronous>, transform_indices = @transform_24, window_bounds = array<i64: 16, 1>}, {pipeline_mode = #tpu.pipeline_mode<synchronous>, transform_indices = @transform_25, window_bounds = array<i64: 16, 144>}, {pipeline_mode = #tpu.pipeline_mode<synchronous>, transform_indices = @transform_26, window_bounds = array<i64: 16, 1>}, {pipeline_mode = #tpu.pipeline_mode<synchronous>, transform_indices = @transform_27, window_bounds = array<i64: 16, 48>}, {pipeline_mode = #tpu.pipeline_mode<synchronous>, transform_indices = @transform_28, window_bounds = array<i64: 16, 1>}, {pipeline_mode = #tpu.pipeline_mode<synchronous>, transform_indices = @transform_29, window_bounds = array<i64: 16, 288>}, {pipeline_mode = #tpu.pipeline_mode<synchronous>, transform_indices = @transform_30, window_bounds = array<i64: 16, 1>}, {pipeline_mode = #tpu.pipeline_mode<synchronous>, transform_indices = @transform_31, window_bounds = array<i64: 16, 144>}, {pipeline_mode = #tpu.pipeline_mode<synchronous>, transform_indices = @transform_32, window_bounds = array<i64: 16, 1>}, {pipeline_mode = #tpu.pipeline_mode<synchronous>, transform_indices = @transform_33, window_bounds = array<i64: 16, 32>}, {pipeline_mode = #tpu.pipeline_mode<synchronous>, transform_indices = @transform_34, window_bounds = array<i64: 16, 1>}, {pipeline_mode = #tpu.pipeline_mode<synchronous>, transform_indices = @transform_35, window_bounds = array<i64: 3, 16>}, {pipeline_mode = #tpu.pipeline_mode<synchronous>, transform_indices = @transform_36, window_bounds = array<i64: 3, 1>}, {transform_indices = @transform_37, window_bounds = array<i64: 1, 3, 256>}]} {
    %c0 = arith.constant 0 : index
    %c0_0 = arith.constant 0 : index
    %0 = vector.load %arg3[%c0, %c0_0] : memref<16x3xbf16, #tpu.memory_space<vmem>>, vector<16x3xbf16>
    %c0_1 = arith.constant 0 : index
    %c0_2 = arith.constant 0 : index
    %c0_3 = arith.constant 0 : index
    %1 = vector.load %arg1[%c0_1, %c0_2, %c0_3] : memref<1x3x256xbf16, #tpu.memory_space<vmem>>, vector<1x3x256xbf16>
    %2 = vector.shape_cast %1 : vector<1x3x256xbf16> to vector<3x256xbf16>
    %cst = arith.constant dense<0.000000e+00> : vector<16x256xf32>
    %3 = tpu.matmul %0, %2, %cst {dimension_numbers = #tpu.dot_dimension_numbers<[1], [0], [0], [1], [0, 0, 1, 1], [], []>} : vector<16x3xbf16>, vector<3x256xbf16>, vector<16x256xf32> -> vector<16x256xf32>
    %c0_4 = arith.constant 0 : index
    %c0_5 = arith.constant 0 : index
    %c0_6 = arith.constant 0 : index
    %4 = vector.load %arg2[%c0_4, %c0_5, %c0_6] : memref<1x16x1xf32, #tpu.memory_space<vmem>>, vector<1x16x1xf32>
    %5 = vector.shape_cast %4 : vector<1x16x1xf32> to vector<16x1xf32>
    %6 = vector.broadcast %5 : vector<16x1xf32> to vector<16x256xf32>
    %7 = arith.addf %3, %6 : vector<16x256xf32>
    %8 = arith.truncf %7 : vector<16x256xf32> to vector<16x256xbf16>
    %9 = arith.extf %8 : vector<16x256xbf16> to vector<16x256xf32>
    %c0_7 = arith.constant 0 : index
    %c0_8 = arith.constant 0 : index
    %10 = vector.load %arg4[%c0_7, %c0_8] : memref<16x144xbf16, #tpu.memory_space<vmem>>, vector<16x144xbf16>
    %11 = tpu.iota {dimensions = array<i32: 1>} : vector<1x256xi32>
    %c16_i32 = arith.constant 16 : i32
    %c0_i32 = arith.constant 0 : i32
    %12 = arith.cmpi eq, %c16_i32, %c0_i32 : i32
    %c1_i32 = arith.constant 1 : i32
    %13 = arith.select %12, %c1_i32, %c16_i32 : i32
    %14 = vector.broadcast %13 : i32 to vector<1x256xi32>
    %15 = arith.remsi %11, %14 : vector<1x256xi32>
    %c0_i32_9 = arith.constant 0 : i32
    %16 = vector.broadcast %c0_i32_9 : i32 to vector<1x256xi32>
    %17 = arith.cmpi ne, %15, %16 : vector<1x256xi32>
    %c0_i32_10 = arith.constant 0 : i32
    %18 = vector.broadcast %c0_i32_10 : i32 to vector<1x256xi32>
    %19 = arith.cmpi slt, %15, %18 : vector<1x256xi32>
    %c0_i32_11 = arith.constant 0 : i32
    %20 = arith.cmpi slt, %13, %c0_i32_11 : i32
    %21 = vector.broadcast %20 : i1 to vector<1x256xi1>
    %22 = vector.broadcast %21 : vector<1x256xi1> to vector<1x256xi1>
    %23 = arith.xori %19, %22 : vector<1x256xi1>
    %24 = arith.andi %23, %17 : vector<1x256xi1>
    %25 = vector.broadcast %13 : i32 to vector<1x256xi32>
    %26 = arith.addi %15, %25 : vector<1x256xi32>
    %27 = arith.select %24, %26, %15 : vector<1x256xi1>, vector<1x256xi32>
    %c0_i32_12 = arith.constant 0 : i32
    %28 = vector.broadcast %c0_i32_12 : i32 to vector<1x256xi32>
    %29 = arith.cmpi ne, %27, %28 : vector<1x256xi32>
    %30 = arith.extui %29 : vector<1x256xi1> to vector<1x256xi32>
    %31 = arith.sitofp %30 : vector<1x256xi32> to vector<1x256xf32>
    %32 = arith.truncf %31 : vector<1x256xf32> to vector<1x256xbf16>
    %c15_i32 = arith.constant 15 : i32
    %33 = vector.broadcast %c15_i32 : i32 to vector<1x256xi32>
    %34 = arith.cmpi ne, %27, %33 : vector<1x256xi32>
    %35 = arith.extui %34 : vector<1x256xi1> to vector<1x256xi32>
    %36 = arith.sitofp %35 : vector<1x256xi32> to vector<1x256xf32>
    %37 = arith.truncf %36 : vector<1x256xf32> to vector<1x256xbf16>
    %cst_13 = arith.constant 0.000000e+00 : bf16
    %38 = vector.broadcast %cst_13 : bf16 to vector<16x17xbf16>
    %39 = tpu.concatenate %38, %8, %38 in 1 : vector<16x17xbf16>, vector<16x256xbf16>, vector<16x17xbf16> -> vector<16x290xbf16>
    %40 = vector.extract_strided_slice %39 {offsets = [0, 0], sizes = [16, 256], strides = [1, 1]} : vector<16x290xbf16> to vector<16x256xbf16>
    %41 = vector.broadcast %32 : vector<1x256xbf16> to vector<16x256xbf16>
    %42 = arith.mulf %40, %41 : vector<16x256xbf16>
    %43 = vector.extract_strided_slice %39 {offsets = [0, 1], sizes = [16, 256], strides = [1, 1]} : vector<16x290xbf16> to vector<16x256xbf16>
    %44 = vector.extract_strided_slice %39 {offsets = [0, 2], sizes = [16, 256], strides = [1, 1]} : vector<16x290xbf16> to vector<16x256xbf16>
    %45 = vector.broadcast %37 : vector<1x256xbf16> to vector<16x256xbf16>
    %46 = arith.mulf %44, %45 : vector<16x256xbf16>
    %47 = vector.extract_strided_slice %39 {offsets = [0, 16], sizes = [16, 256], strides = [1, 1]} : vector<16x290xbf16> to vector<16x256xbf16>
    %48 = vector.broadcast %32 : vector<1x256xbf16> to vector<16x256xbf16>
    %49 = arith.mulf %47, %48 : vector<16x256xbf16>
    %50 = vector.extract_strided_slice %39 {offsets = [0, 17], sizes = [16, 256], strides = [1, 1]} : vector<16x290xbf16> to vector<16x256xbf16>
    %51 = vector.extract_strided_slice %39 {offsets = [0, 18], sizes = [16, 256], strides = [1, 1]} : vector<16x290xbf16> to vector<16x256xbf16>
    %52 = vector.broadcast %37 : vector<1x256xbf16> to vector<16x256xbf16>
    %53 = arith.mulf %51, %52 : vector<16x256xbf16>
    %54 = vector.extract_strided_slice %39 {offsets = [0, 32], sizes = [16, 256], strides = [1, 1]} : vector<16x290xbf16> to vector<16x256xbf16>
    %55 = vector.broadcast %32 : vector<1x256xbf16> to vector<16x256xbf16>
    %56 = arith.mulf %54, %55 : vector<16x256xbf16>
    %57 = vector.extract_strided_slice %39 {offsets = [0, 33], sizes = [16, 256], strides = [1, 1]} : vector<16x290xbf16> to vector<16x256xbf16>
    %58 = vector.extract_strided_slice %39 {offsets = [0, 34], sizes = [16, 256], strides = [1, 1]} : vector<16x290xbf16> to vector<16x256xbf16>
    %59 = vector.broadcast %37 : vector<1x256xbf16> to vector<16x256xbf16>
    %60 = arith.mulf %58, %59 : vector<16x256xbf16>
    %61 = tpu.concatenate %42, %43, %46, %49, %50, %53, %56, %57, %60 in 0 : vector<16x256xbf16>, vector<16x256xbf16>, vector<16x256xbf16>, vector<16x256xbf16>, vector<16x256xbf16>, vector<16x256xbf16>, vector<16x256xbf16>, vector<16x256xbf16>, vector<16x256xbf16> -> vector<144x256xbf16>
    %cst_14 = arith.constant dense<0.000000e+00> : vector<16x256xf32>
    %62 = tpu.matmul %10, %61, %cst_14 {dimension_numbers = #tpu.dot_dimension_numbers<[1], [0], [0], [1], [0, 0, 1, 1], [], []>} : vector<16x144xbf16>, vector<144x256xbf16>, vector<16x256xf32> -> vector<16x256xf32>
    %c0_15 = arith.constant 0 : index
    %c0_16 = arith.constant 0 : index
    %63 = vector.load %arg5[%c0_15, %c0_16] : memref<16x1xf32, #tpu.memory_space<vmem>>, vector<16x1xf32>
    %64 = vector.broadcast %63 : vector<16x1xf32> to vector<16x256xf32>
    %65 = arith.addf %62, %64 : vector<16x256xf32>
    %66 = arith.negf %65 : vector<16x256xf32>
    %67 = math.exp %66 : vector<16x256xf32>
    %cst_17 = arith.constant 1.000000e+00 : f32
    %68 = vector.broadcast %cst_17 : f32 to vector<16x256xf32>
    %69 = arith.addf %68, %67 : vector<16x256xf32>
    %70 = arith.divf %68, %69 : vector<16x256xf32>
    %71 = arith.mulf %65, %70 : vector<16x256xf32>
    %72 = arith.truncf %71 : vector<16x256xf32> to vector<16x256xbf16>
    %c0_18 = arith.constant 0 : index
    %c0_19 = arith.constant 0 : index
    %73 = vector.load %arg6[%c0_18, %c0_19] : memref<16x144xbf16, #tpu.memory_space<vmem>>, vector<16x144xbf16>
    %cst_20 = arith.constant 0.000000e+00 : bf16
    %74 = vector.broadcast %cst_20 : bf16 to vector<16x17xbf16>
    %75 = tpu.concatenate %74, %72, %74 in 1 : vector<16x17xbf16>, vector<16x256xbf16>, vector<16x17xbf16> -> vector<16x290xbf16>
    %76 = vector.extract_strided_slice %75 {offsets = [0, 0], sizes = [16, 256], strides = [1, 1]} : vector<16x290xbf16> to vector<16x256xbf16>
    %77 = vector.broadcast %32 : vector<1x256xbf16> to vector<16x256xbf16>
    %78 = arith.mulf %76, %77 : vector<16x256xbf16>
    %79 = vector.extract_strided_slice %75 {offsets = [0, 1], sizes = [16, 256], strides = [1, 1]} : vector<16x290xbf16> to vector<16x256xbf16>
    %80 = vector.extract_strided_slice %75 {offsets = [0, 2], sizes = [16, 256], strides = [1, 1]} : vector<16x290xbf16> to vector<16x256xbf16>
    %81 = vector.broadcast %37 : vector<1x256xbf16> to vector<16x256xbf16>
    %82 = arith.mulf %80, %81 : vector<16x256xbf16>
    %83 = vector.extract_strided_slice %75 {offsets = [0, 16], sizes = [16, 256], strides = [1, 1]} : vector<16x290xbf16> to vector<16x256xbf16>
    %84 = vector.broadcast %32 : vector<1x256xbf16> to vector<16x256xbf16>
    %85 = arith.mulf %83, %84 : vector<16x256xbf16>
    %86 = vector.extract_strided_slice %75 {offsets = [0, 17], sizes = [16, 256], strides = [1, 1]} : vector<16x290xbf16> to vector<16x256xbf16>
    %87 = vector.extract_strided_slice %75 {offsets = [0, 18], sizes = [16, 256], strides = [1, 1]} : vector<16x290xbf16> to vector<16x256xbf16>
    %88 = vector.broadcast %37 : vector<1x256xbf16> to vector<16x256xbf16>
    %89 = arith.mulf %87, %88 : vector<16x256xbf16>
    %90 = vector.extract_strided_slice %75 {offsets = [0, 32], sizes = [16, 256], strides = [1, 1]} : vector<16x290xbf16> to vector<16x256xbf16>
    %91 = vector.broadcast %32 : vector<1x256xbf16> to vector<16x256xbf16>
    %92 = arith.mulf %90, %91 : vector<16x256xbf16>
    %93 = vector.extract_strided_slice %75 {offsets = [0, 33], sizes = [16, 256], strides = [1, 1]} : vector<16x290xbf16> to vector<16x256xbf16>
    %94 = vector.extract_strided_slice %75 {offsets = [0, 34], sizes = [16, 256], strides = [1, 1]} : vector<16x290xbf16> to vector<16x256xbf16>
    %95 = vector.broadcast %37 : vector<1x256xbf16> to vector<16x256xbf16>
    %96 = arith.mulf %94, %95 : vector<16x256xbf16>
    %97 = tpu.concatenate %78, %79, %82, %85, %86, %89, %92, %93, %96 in 0 : vector<16x256xbf16>, vector<16x256xbf16>, vector<16x256xbf16>, vector<16x256xbf16>, vector<16x256xbf16>, vector<16x256xbf16>, vector<16x256xbf16>, vector<16x256xbf16>, vector<16x256xbf16> -> vector<144x256xbf16>
    %cst_21 = arith.constant dense<0.000000e+00> : vector<16x256xf32>
    %98 = tpu.matmul %73, %97, %cst_21 {dimension_numbers = #tpu.dot_dimension_numbers<[1], [0], [0], [1], [0, 0, 1, 1], [], []>} : vector<16x144xbf16>, vector<144x256xbf16>, vector<16x256xf32> -> vector<16x256xf32>
    %c0_22 = arith.constant 0 : index
    %c0_23 = arith.constant 0 : index
    %99 = vector.load %arg7[%c0_22, %c0_23] : memref<16x1xf32, #tpu.memory_space<vmem>>, vector<16x1xf32>
    %100 = vector.broadcast %99 : vector<16x1xf32> to vector<16x256xf32>
    %101 = arith.addf %98, %100 : vector<16x256xf32>
    %102 = arith.addf %101, %9 : vector<16x256xf32>
    %103 = arith.truncf %102 : vector<16x256xf32> to vector<16x256xbf16>
    %104 = arith.extf %103 : vector<16x256xbf16> to vector<16x256xf32>
    %c0_24 = arith.constant 0 : index
    %c0_25 = arith.constant 0 : index
    %105 = vector.load %arg8[%c0_24, %c0_25] : memref<16x144xbf16, #tpu.memory_space<vmem>>, vector<16x144xbf16>
    %cst_26 = arith.constant 0.000000e+00 : bf16
    %106 = vector.broadcast %cst_26 : bf16 to vector<16x17xbf16>
    %107 = tpu.concatenate %106, %103, %106 in 1 : vector<16x17xbf16>, vector<16x256xbf16>, vector<16x17xbf16> -> vector<16x290xbf16>
    %108 = vector.extract_strided_slice %107 {offsets = [0, 0], sizes = [16, 256], strides = [1, 1]} : vector<16x290xbf16> to vector<16x256xbf16>
    %109 = vector.broadcast %32 : vector<1x256xbf16> to vector<16x256xbf16>
    %110 = arith.mulf %108, %109 : vector<16x256xbf16>
    %111 = vector.extract_strided_slice %107 {offsets = [0, 1], sizes = [16, 256], strides = [1, 1]} : vector<16x290xbf16> to vector<16x256xbf16>
    %112 = vector.extract_strided_slice %107 {offsets = [0, 2], sizes = [16, 256], strides = [1, 1]} : vector<16x290xbf16> to vector<16x256xbf16>
    %113 = vector.broadcast %37 : vector<1x256xbf16> to vector<16x256xbf16>
    %114 = arith.mulf %112, %113 : vector<16x256xbf16>
    %115 = vector.extract_strided_slice %107 {offsets = [0, 16], sizes = [16, 256], strides = [1, 1]} : vector<16x290xbf16> to vector<16x256xbf16>
    %116 = vector.broadcast %32 : vector<1x256xbf16> to vector<16x256xbf16>
    %117 = arith.mulf %115, %116 : vector<16x256xbf16>
    %118 = vector.extract_strided_slice %107 {offsets = [0, 17], sizes = [16, 256], strides = [1, 1]} : vector<16x290xbf16> to vector<16x256xbf16>
    %119 = vector.extract_strided_slice %107 {offsets = [0, 18], sizes = [16, 256], strides = [1, 1]} : vector<16x290xbf16> to vector<16x256xbf16>
    %120 = vector.broadcast %37 : vector<1x256xbf16> to vector<16x256xbf16>
    %121 = arith.mulf %119, %120 : vector<16x256xbf16>
    %122 = vector.extract_strided_slice %107 {offsets = [0, 32], sizes = [16, 256], strides = [1, 1]} : vector<16x290xbf16> to vector<16x256xbf16>
    %123 = vector.broadcast %32 : vector<1x256xbf16> to vector<16x256xbf16>
    %124 = arith.mulf %122, %123 : vector<16x256xbf16>
    %125 = vector.extract_strided_slice %107 {offsets = [0, 33], sizes = [16, 256], strides = [1, 1]} : vector<16x290xbf16> to vector<16x256xbf16>
    %126 = vector.extract_strided_slice %107 {offsets = [0, 34], sizes = [16, 256], strides = [1, 1]} : vector<16x290xbf16> to vector<16x256xbf16>
    %127 = vector.broadcast %37 : vector<1x256xbf16> to vector<16x256xbf16>
    %128 = arith.mulf %126, %127 : vector<16x256xbf16>
    %129 = tpu.concatenate %110, %111, %114, %117, %118, %121, %124, %125, %128 in 0 : vector<16x256xbf16>, vector<16x256xbf16>, vector<16x256xbf16>, vector<16x256xbf16>, vector<16x256xbf16>, vector<16x256xbf16>, vector<16x256xbf16>, vector<16x256xbf16>, vector<16x256xbf16> -> vector<144x256xbf16>
    %cst_27 = arith.constant dense<0.000000e+00> : vector<16x256xf32>
    %130 = tpu.matmul %105, %129, %cst_27 {dimension_numbers = #tpu.dot_dimension_numbers<[1], [0], [0], [1], [0, 0, 1, 1], [], []>} : vector<16x144xbf16>, vector<144x256xbf16>, vector<16x256xf32> -> vector<16x256xf32>
    %c0_28 = arith.constant 0 : index
    %c0_29 = arith.constant 0 : index
    %131 = vector.load %arg9[%c0_28, %c0_29] : memref<16x1xf32, #tpu.memory_space<vmem>>, vector<16x1xf32>
    %132 = vector.broadcast %131 : vector<16x1xf32> to vector<16x256xf32>
    %133 = arith.addf %130, %132 : vector<16x256xf32>
    %134 = arith.negf %133 : vector<16x256xf32>
    %135 = math.exp %134 : vector<16x256xf32>
    %cst_30 = arith.constant 1.000000e+00 : f32
    %136 = vector.broadcast %cst_30 : f32 to vector<16x256xf32>
    %137 = arith.addf %136, %135 : vector<16x256xf32>
    %138 = arith.divf %136, %137 : vector<16x256xf32>
    %139 = arith.mulf %133, %138 : vector<16x256xf32>
    %140 = arith.truncf %139 : vector<16x256xf32> to vector<16x256xbf16>
    %c0_31 = arith.constant 0 : index
    %c0_32 = arith.constant 0 : index
    %141 = vector.load %arg10[%c0_31, %c0_32] : memref<16x144xbf16, #tpu.memory_space<vmem>>, vector<16x144xbf16>
    %cst_33 = arith.constant 0.000000e+00 : bf16
    %142 = vector.broadcast %cst_33 : bf16 to vector<16x17xbf16>
    %143 = tpu.concatenate %142, %140, %142 in 1 : vector<16x17xbf16>, vector<16x256xbf16>, vector<16x17xbf16> -> vector<16x290xbf16>
    %144 = vector.extract_strided_slice %143 {offsets = [0, 0], sizes = [16, 256], strides = [1, 1]} : vector<16x290xbf16> to vector<16x256xbf16>
    %145 = vector.broadcast %32 : vector<1x256xbf16> to vector<16x256xbf16>
    %146 = arith.mulf %144, %145 : vector<16x256xbf16>
    %147 = vector.extract_strided_slice %143 {offsets = [0, 1], sizes = [16, 256], strides = [1, 1]} : vector<16x290xbf16> to vector<16x256xbf16>
    %148 = vector.extract_strided_slice %143 {offsets = [0, 2], sizes = [16, 256], strides = [1, 1]} : vector<16x290xbf16> to vector<16x256xbf16>
    %149 = vector.broadcast %37 : vector<1x256xbf16> to vector<16x256xbf16>
    %150 = arith.mulf %148, %149 : vector<16x256xbf16>
    %151 = vector.extract_strided_slice %143 {offsets = [0, 16], sizes = [16, 256], strides = [1, 1]} : vector<16x290xbf16> to vector<16x256xbf16>
    %152 = vector.broadcast %32 : vector<1x256xbf16> to vector<16x256xbf16>
    %153 = arith.mulf %151, %152 : vector<16x256xbf16>
    %154 = vector.extract_strided_slice %143 {offsets = [0, 17], sizes = [16, 256], strides = [1, 1]} : vector<16x290xbf16> to vector<16x256xbf16>
    %155 = vector.extract_strided_slice %143 {offsets = [0, 18], sizes = [16, 256], strides = [1, 1]} : vector<16x290xbf16> to vector<16x256xbf16>
    %156 = vector.broadcast %37 : vector<1x256xbf16> to vector<16x256xbf16>
    %157 = arith.mulf %155, %156 : vector<16x256xbf16>
    %158 = vector.extract_strided_slice %143 {offsets = [0, 32], sizes = [16, 256], strides = [1, 1]} : vector<16x290xbf16> to vector<16x256xbf16>
    %159 = vector.broadcast %32 : vector<1x256xbf16> to vector<16x256xbf16>
    %160 = arith.mulf %158, %159 : vector<16x256xbf16>
    %161 = vector.extract_strided_slice %143 {offsets = [0, 33], sizes = [16, 256], strides = [1, 1]} : vector<16x290xbf16> to vector<16x256xbf16>
    %162 = vector.extract_strided_slice %143 {offsets = [0, 34], sizes = [16, 256], strides = [1, 1]} : vector<16x290xbf16> to vector<16x256xbf16>
    %163 = vector.broadcast %37 : vector<1x256xbf16> to vector<16x256xbf16>
    %164 = arith.mulf %162, %163 : vector<16x256xbf16>
    %165 = tpu.concatenate %146, %147, %150, %153, %154, %157, %160, %161, %164 in 0 : vector<16x256xbf16>, vector<16x256xbf16>, vector<16x256xbf16>, vector<16x256xbf16>, vector<16x256xbf16>, vector<16x256xbf16>, vector<16x256xbf16>, vector<16x256xbf16>, vector<16x256xbf16> -> vector<144x256xbf16>
    %cst_34 = arith.constant dense<0.000000e+00> : vector<16x256xf32>
    %166 = tpu.matmul %141, %165, %cst_34 {dimension_numbers = #tpu.dot_dimension_numbers<[1], [0], [0], [1], [0, 0, 1, 1], [], []>} : vector<16x144xbf16>, vector<144x256xbf16>, vector<16x256xf32> -> vector<16x256xf32>
    %c0_35 = arith.constant 0 : index
    %c0_36 = arith.constant 0 : index
    %167 = vector.load %arg11[%c0_35, %c0_36] : memref<16x1xf32, #tpu.memory_space<vmem>>, vector<16x1xf32>
    %168 = vector.broadcast %167 : vector<16x1xf32> to vector<16x256xf32>
    %169 = arith.addf %166, %168 : vector<16x256xf32>
    %170 = arith.addf %169, %104 : vector<16x256xf32>
    %171 = arith.truncf %170 : vector<16x256xf32> to vector<16x256xbf16>
    %c0_37 = arith.constant 0 : index
    %c0_38 = arith.constant 0 : index
    %172 = vector.load %arg12[%c0_37, %c0_38] : memref<256x64xbf16, #tpu.memory_space<vmem>>, vector<256x64xbf16>
    %cst_39 = arith.constant dense<0.000000e+00> : vector<16x64xf32>
    %173 = tpu.matmul %171, %172, %cst_39 {dimension_numbers = #tpu.dot_dimension_numbers<[1], [0], [0], [1], [0, 0, 1, 1], [], []>} : vector<16x256xbf16>, vector<256x64xbf16>, vector<16x64xf32> -> vector<16x64xf32>
    %174 = arith.truncf %173 : vector<16x64xf32> to vector<16x64xbf16>
    %c0_40 = arith.constant 0 : index
    %c0_41 = arith.constant 0 : index
    %175 = vector.load %arg17[%c0_40, %c0_41] : memref<32x16xbf16, #tpu.memory_space<vmem>>, vector<32x16xbf16>
    %cst_42 = arith.constant dense<0.000000e+00> : vector<32x64xf32>
    %176 = tpu.matmul %175, %174, %cst_42 {dimension_numbers = #tpu.dot_dimension_numbers<[1], [0], [0], [1], [0, 0, 1, 1], [], []>} : vector<32x16xbf16>, vector<16x64xbf16>, vector<32x64xf32> -> vector<32x64xf32>
    %c0_43 = arith.constant 0 : index
    %c0_44 = arith.constant 0 : index
    %177 = vector.load %arg18[%c0_43, %c0_44] : memref<32x1xf32, #tpu.memory_space<vmem>>, vector<32x1xf32>
    %178 = vector.broadcast %177 : vector<32x1xf32> to vector<32x64xf32>
    %179 = arith.addf %176, %178 : vector<32x64xf32>
    %c0_45 = arith.constant 0 : index
    %c0_46 = arith.constant 0 : index
    %180 = vector.load %arg13[%c0_45, %c0_46] : memref<32x144xbf16, #tpu.memory_space<vmem>>, vector<32x144xbf16>
    %181 = tpu.iota {dimensions = array<i32: 1>} : vector<1x64xi32>
    %c8_i32 = arith.constant 8 : i32
    %c0_i32_47 = arith.constant 0 : i32
    %182 = arith.cmpi eq, %c8_i32, %c0_i32_47 : i32
    %c1_i32_48 = arith.constant 1 : i32
    %183 = arith.select %182, %c1_i32_48, %c8_i32 : i32
    %184 = vector.broadcast %183 : i32 to vector<1x64xi32>
    %185 = arith.remsi %181, %184 : vector<1x64xi32>
    %c0_i32_49 = arith.constant 0 : i32
    %186 = vector.broadcast %c0_i32_49 : i32 to vector<1x64xi32>
    %187 = arith.cmpi ne, %185, %186 : vector<1x64xi32>
    %c0_i32_50 = arith.constant 0 : i32
    %188 = vector.broadcast %c0_i32_50 : i32 to vector<1x64xi32>
    %189 = arith.cmpi slt, %185, %188 : vector<1x64xi32>
    %c0_i32_51 = arith.constant 0 : i32
    %190 = arith.cmpi slt, %183, %c0_i32_51 : i32
    %191 = vector.broadcast %190 : i1 to vector<1x64xi1>
    %192 = vector.broadcast %191 : vector<1x64xi1> to vector<1x64xi1>
    %193 = arith.xori %189, %192 : vector<1x64xi1>
    %194 = arith.andi %193, %187 : vector<1x64xi1>
    %195 = vector.broadcast %183 : i32 to vector<1x64xi32>
    %196 = arith.addi %185, %195 : vector<1x64xi32>
    %197 = arith.select %194, %196, %185 : vector<1x64xi1>, vector<1x64xi32>
    %c0_i32_52 = arith.constant 0 : i32
    %198 = vector.broadcast %c0_i32_52 : i32 to vector<1x64xi32>
    %199 = arith.cmpi ne, %197, %198 : vector<1x64xi32>
    %200 = arith.extui %199 : vector<1x64xi1> to vector<1x64xi32>
    %201 = arith.sitofp %200 : vector<1x64xi32> to vector<1x64xf32>
    %202 = arith.truncf %201 : vector<1x64xf32> to vector<1x64xbf16>
    %c7_i32 = arith.constant 7 : i32
    %203 = vector.broadcast %c7_i32 : i32 to vector<1x64xi32>
    %204 = arith.cmpi ne, %197, %203 : vector<1x64xi32>
    %205 = arith.extui %204 : vector<1x64xi1> to vector<1x64xi32>
    %206 = arith.sitofp %205 : vector<1x64xi32> to vector<1x64xf32>
    %207 = arith.truncf %206 : vector<1x64xf32> to vector<1x64xbf16>
    %cst_53 = arith.constant 0.000000e+00 : bf16
    %208 = vector.broadcast %cst_53 : bf16 to vector<16x9xbf16>
    %209 = tpu.concatenate %208, %174, %208 in 1 : vector<16x9xbf16>, vector<16x64xbf16>, vector<16x9xbf16> -> vector<16x82xbf16>
    %210 = vector.extract_strided_slice %209 {offsets = [0, 0], sizes = [16, 64], strides = [1, 1]} : vector<16x82xbf16> to vector<16x64xbf16>
    %211 = vector.broadcast %202 : vector<1x64xbf16> to vector<16x64xbf16>
    %212 = arith.mulf %210, %211 : vector<16x64xbf16>
    %213 = vector.extract_strided_slice %209 {offsets = [0, 1], sizes = [16, 64], strides = [1, 1]} : vector<16x82xbf16> to vector<16x64xbf16>
    %214 = vector.extract_strided_slice %209 {offsets = [0, 2], sizes = [16, 64], strides = [1, 1]} : vector<16x82xbf16> to vector<16x64xbf16>
    %215 = vector.broadcast %207 : vector<1x64xbf16> to vector<16x64xbf16>
    %216 = arith.mulf %214, %215 : vector<16x64xbf16>
    %217 = vector.extract_strided_slice %209 {offsets = [0, 8], sizes = [16, 64], strides = [1, 1]} : vector<16x82xbf16> to vector<16x64xbf16>
    %218 = vector.broadcast %202 : vector<1x64xbf16> to vector<16x64xbf16>
    %219 = arith.mulf %217, %218 : vector<16x64xbf16>
    %220 = vector.extract_strided_slice %209 {offsets = [0, 9], sizes = [16, 64], strides = [1, 1]} : vector<16x82xbf16> to vector<16x64xbf16>
    %221 = vector.extract_strided_slice %209 {offsets = [0, 10], sizes = [16, 64], strides = [1, 1]} : vector<16x82xbf16> to vector<16x64xbf16>
    %222 = vector.broadcast %207 : vector<1x64xbf16> to vector<16x64xbf16>
    %223 = arith.mulf %221, %222 : vector<16x64xbf16>
    %224 = vector.extract_strided_slice %209 {offsets = [0, 16], sizes = [16, 64], strides = [1, 1]} : vector<16x82xbf16> to vector<16x64xbf16>
    %225 = vector.broadcast %202 : vector<1x64xbf16> to vector<16x64xbf16>
    %226 = arith.mulf %224, %225 : vector<16x64xbf16>
    %227 = vector.extract_strided_slice %209 {offsets = [0, 17], sizes = [16, 64], strides = [1, 1]} : vector<16x82xbf16> to vector<16x64xbf16>
    %228 = vector.extract_strided_slice %209 {offsets = [0, 18], sizes = [16, 64], strides = [1, 1]} : vector<16x82xbf16> to vector<16x64xbf16>
    %229 = vector.broadcast %207 : vector<1x64xbf16> to vector<16x64xbf16>
    %230 = arith.mulf %228, %229 : vector<16x64xbf16>
    %231 = tpu.concatenate %212, %213, %216, %219, %220, %223, %226, %227, %230 in 0 : vector<16x64xbf16>, vector<16x64xbf16>, vector<16x64xbf16>, vector<16x64xbf16>, vector<16x64xbf16>, vector<16x64xbf16>, vector<16x64xbf16>, vector<16x64xbf16>, vector<16x64xbf16> -> vector<144x64xbf16>
    %cst_54 = arith.constant dense<0.000000e+00> : vector<32x64xf32>
    %232 = tpu.matmul %180, %231, %cst_54 {dimension_numbers = #tpu.dot_dimension_numbers<[1], [0], [0], [1], [0, 0, 1, 1], [], []>} : vector<32x144xbf16>, vector<144x64xbf16>, vector<32x64xf32> -> vector<32x64xf32>
    %c0_55 = arith.constant 0 : index
    %c0_56 = arith.constant 0 : index
    %233 = vector.load %arg14[%c0_55, %c0_56] : memref<32x1xf32, #tpu.memory_space<vmem>>, vector<32x1xf32>
    %234 = vector.broadcast %233 : vector<32x1xf32> to vector<32x64xf32>
    %235 = arith.addf %232, %234 : vector<32x64xf32>
    %236 = arith.negf %235 : vector<32x64xf32>
    %237 = math.exp %236 : vector<32x64xf32>
    %cst_57 = arith.constant 1.000000e+00 : f32
    %238 = vector.broadcast %cst_57 : f32 to vector<32x64xf32>
    %239 = arith.addf %238, %237 : vector<32x64xf32>
    %240 = arith.divf %238, %239 : vector<32x64xf32>
    %241 = arith.mulf %235, %240 : vector<32x64xf32>
    %242 = arith.truncf %241 : vector<32x64xf32> to vector<32x64xbf16>
    %c0_58 = arith.constant 0 : index
    %c0_59 = arith.constant 0 : index
    %243 = vector.load %arg15[%c0_58, %c0_59] : memref<32x288xbf16, #tpu.memory_space<vmem>>, vector<32x288xbf16>
    %cst_60 = arith.constant 0.000000e+00 : bf16
    %244 = vector.broadcast %cst_60 : bf16 to vector<32x9xbf16>
    %245 = tpu.concatenate %244, %242, %244 in 1 : vector<32x9xbf16>, vector<32x64xbf16>, vector<32x9xbf16> -> vector<32x82xbf16>
    %246 = vector.extract_strided_slice %245 {offsets = [0, 0], sizes = [32, 64], strides = [1, 1]} : vector<32x82xbf16> to vector<32x64xbf16>
    %247 = vector.broadcast %202 : vector<1x64xbf16> to vector<32x64xbf16>
    %248 = arith.mulf %246, %247 : vector<32x64xbf16>
    %249 = vector.extract_strided_slice %245 {offsets = [0, 1], sizes = [32, 64], strides = [1, 1]} : vector<32x82xbf16> to vector<32x64xbf16>
    %250 = vector.extract_strided_slice %245 {offsets = [0, 2], sizes = [32, 64], strides = [1, 1]} : vector<32x82xbf16> to vector<32x64xbf16>
    %251 = vector.broadcast %207 : vector<1x64xbf16> to vector<32x64xbf16>
    %252 = arith.mulf %250, %251 : vector<32x64xbf16>
    %253 = vector.extract_strided_slice %245 {offsets = [0, 8], sizes = [32, 64], strides = [1, 1]} : vector<32x82xbf16> to vector<32x64xbf16>
    %254 = vector.broadcast %202 : vector<1x64xbf16> to vector<32x64xbf16>
    %255 = arith.mulf %253, %254 : vector<32x64xbf16>
    %256 = vector.extract_strided_slice %245 {offsets = [0, 9], sizes = [32, 64], strides = [1, 1]} : vector<32x82xbf16> to vector<32x64xbf16>
    %257 = vector.extract_strided_slice %245 {offsets = [0, 10], sizes = [32, 64], strides = [1, 1]} : vector<32x82xbf16> to vector<32x64xbf16>
    %258 = vector.broadcast %207 : vector<1x64xbf16> to vector<32x64xbf16>
    %259 = arith.mulf %257, %258 : vector<32x64xbf16>
    %260 = vector.extract_strided_slice %245 {offsets = [0, 16], sizes = [32, 64], strides = [1, 1]} : vector<32x82xbf16> to vector<32x64xbf16>
    %261 = vector.broadcast %202 : vector<1x64xbf16> to vector<32x64xbf16>
    %262 = arith.mulf %260, %261 : vector<32x64xbf16>
    %263 = vector.extract_strided_slice %245 {offsets = [0, 17], sizes = [32, 64], strides = [1, 1]} : vector<32x82xbf16> to vector<32x64xbf16>
    %264 = vector.extract_strided_slice %245 {offsets = [0, 18], sizes = [32, 64], strides = [1, 1]} : vector<32x82xbf16> to vector<32x64xbf16>
    %265 = vector.broadcast %207 : vector<1x64xbf16> to vector<32x64xbf16>
    %266 = arith.mulf %264, %265 : vector<32x64xbf16>
    %267 = tpu.concatenate %248, %249, %252, %255, %256, %259, %262, %263, %266 in 0 : vector<32x64xbf16>, vector<32x64xbf16>, vector<32x64xbf16>, vector<32x64xbf16>, vector<32x64xbf16>, vector<32x64xbf16>, vector<32x64xbf16>, vector<32x64xbf16>, vector<32x64xbf16> -> vector<288x64xbf16>
    %cst_61 = arith.constant dense<0.000000e+00> : vector<32x64xf32>
    %268 = tpu.matmul %243, %267, %cst_61 {dimension_numbers = #tpu.dot_dimension_numbers<[1], [0], [0], [1], [0, 0, 1, 1], [], []>} : vector<32x288xbf16>, vector<288x64xbf16>, vector<32x64xf32> -> vector<32x64xf32>
    %c0_62 = arith.constant 0 : index
    %c0_63 = arith.constant 0 : index
    %269 = vector.load %arg16[%c0_62, %c0_63] : memref<32x1xf32, #tpu.memory_space<vmem>>, vector<32x1xf32>
    %270 = vector.broadcast %269 : vector<32x1xf32> to vector<32x64xf32>
    %271 = arith.addf %268, %270 : vector<32x64xf32>
    %272 = arith.addf %271, %179 : vector<32x64xf32>
    %273 = arith.truncf %272 : vector<32x64xf32> to vector<32x64xbf16>
    %274 = arith.extf %273 : vector<32x64xbf16> to vector<32x64xf32>
    %c0_64 = arith.constant 0 : index
    %c0_65 = arith.constant 0 : index
    %275 = vector.load %arg19[%c0_64, %c0_65] : memref<32x288xbf16, #tpu.memory_space<vmem>>, vector<32x288xbf16>
    %cst_66 = arith.constant 0.000000e+00 : bf16
    %276 = vector.broadcast %cst_66 : bf16 to vector<32x9xbf16>
    %277 = tpu.concatenate %276, %273, %276 in 1 : vector<32x9xbf16>, vector<32x64xbf16>, vector<32x9xbf16> -> vector<32x82xbf16>
    %278 = vector.extract_strided_slice %277 {offsets = [0, 0], sizes = [32, 64], strides = [1, 1]} : vector<32x82xbf16> to vector<32x64xbf16>
    %279 = vector.broadcast %202 : vector<1x64xbf16> to vector<32x64xbf16>
    %280 = arith.mulf %278, %279 : vector<32x64xbf16>
    %281 = vector.extract_strided_slice %277 {offsets = [0, 1], sizes = [32, 64], strides = [1, 1]} : vector<32x82xbf16> to vector<32x64xbf16>
    %282 = vector.extract_strided_slice %277 {offsets = [0, 2], sizes = [32, 64], strides = [1, 1]} : vector<32x82xbf16> to vector<32x64xbf16>
    %283 = vector.broadcast %207 : vector<1x64xbf16> to vector<32x64xbf16>
    %284 = arith.mulf %282, %283 : vector<32x64xbf16>
    %285 = vector.extract_strided_slice %277 {offsets = [0, 8], sizes = [32, 64], strides = [1, 1]} : vector<32x82xbf16> to vector<32x64xbf16>
    %286 = vector.broadcast %202 : vector<1x64xbf16> to vector<32x64xbf16>
    %287 = arith.mulf %285, %286 : vector<32x64xbf16>
    %288 = vector.extract_strided_slice %277 {offsets = [0, 9], sizes = [32, 64], strides = [1, 1]} : vector<32x82xbf16> to vector<32x64xbf16>
    %289 = vector.extract_strided_slice %277 {offsets = [0, 10], sizes = [32, 64], strides = [1, 1]} : vector<32x82xbf16> to vector<32x64xbf16>
    %290 = vector.broadcast %207 : vector<1x64xbf16> to vector<32x64xbf16>
    %291 = arith.mulf %289, %290 : vector<32x64xbf16>
    %292 = vector.extract_strided_slice %277 {offsets = [0, 16], sizes = [32, 64], strides = [1, 1]} : vector<32x82xbf16> to vector<32x64xbf16>
    %293 = vector.broadcast %202 : vector<1x64xbf16> to vector<32x64xbf16>
    %294 = arith.mulf %292, %293 : vector<32x64xbf16>
    %295 = vector.extract_strided_slice %277 {offsets = [0, 17], sizes = [32, 64], strides = [1, 1]} : vector<32x82xbf16> to vector<32x64xbf16>
    %296 = vector.extract_strided_slice %277 {offsets = [0, 18], sizes = [32, 64], strides = [1, 1]} : vector<32x82xbf16> to vector<32x64xbf16>
    %297 = vector.broadcast %207 : vector<1x64xbf16> to vector<32x64xbf16>
    %298 = arith.mulf %296, %297 : vector<32x64xbf16>
    %299 = tpu.concatenate %280, %281, %284, %287, %288, %291, %294, %295, %298 in 0 : vector<32x64xbf16>, vector<32x64xbf16>, vector<32x64xbf16>, vector<32x64xbf16>, vector<32x64xbf16>, vector<32x64xbf16>, vector<32x64xbf16>, vector<32x64xbf16>, vector<32x64xbf16> -> vector<288x64xbf16>
    %cst_67 = arith.constant dense<0.000000e+00> : vector<32x64xf32>
    %300 = tpu.matmul %275, %299, %cst_67 {dimension_numbers = #tpu.dot_dimension_numbers<[1], [0], [0], [1], [0, 0, 1, 1], [], []>} : vector<32x288xbf16>, vector<288x64xbf16>, vector<32x64xf32> -> vector<32x64xf32>
    %c0_68 = arith.constant 0 : index
    %c0_69 = arith.constant 0 : index
    %301 = vector.load %arg20[%c0_68, %c0_69] : memref<32x1xf32, #tpu.memory_space<vmem>>, vector<32x1xf32>
    %302 = vector.broadcast %301 : vector<32x1xf32> to vector<32x64xf32>
    %303 = arith.addf %300, %302 : vector<32x64xf32>
    %304 = arith.negf %303 : vector<32x64xf32>
    %305 = math.exp %304 : vector<32x64xf32>
    %cst_70 = arith.constant 1.000000e+00 : f32
    %306 = vector.broadcast %cst_70 : f32 to vector<32x64xf32>
    %307 = arith.addf %306, %305 : vector<32x64xf32>
    %308 = arith.divf %306, %307 : vector<32x64xf32>
    %309 = arith.mulf %303, %308 : vector<32x64xf32>
    %310 = arith.truncf %309 : vector<32x64xf32> to vector<32x64xbf16>
    %c0_71 = arith.constant 0 : index
    %c0_72 = arith.constant 0 : index
    %311 = vector.load %arg21[%c0_71, %c0_72] : memref<32x288xbf16, #tpu.memory_space<vmem>>, vector<32x288xbf16>
    %cst_73 = arith.constant 0.000000e+00 : bf16
    %312 = vector.broadcast %cst_73 : bf16 to vector<32x9xbf16>
    %313 = tpu.concatenate %312, %310, %312 in 1 : vector<32x9xbf16>, vector<32x64xbf16>, vector<32x9xbf16> -> vector<32x82xbf16>
    %314 = vector.extract_strided_slice %313 {offsets = [0, 0], sizes = [32, 64], strides = [1, 1]} : vector<32x82xbf16> to vector<32x64xbf16>
    %315 = vector.broadcast %202 : vector<1x64xbf16> to vector<32x64xbf16>
    %316 = arith.mulf %314, %315 : vector<32x64xbf16>
    %317 = vector.extract_strided_slice %313 {offsets = [0, 1], sizes = [32, 64], strides = [1, 1]} : vector<32x82xbf16> to vector<32x64xbf16>
    %318 = vector.extract_strided_slice %313 {offsets = [0, 2], sizes = [32, 64], strides = [1, 1]} : vector<32x82xbf16> to vector<32x64xbf16>
    %319 = vector.broadcast %207 : vector<1x64xbf16> to vector<32x64xbf16>
    %320 = arith.mulf %318, %319 : vector<32x64xbf16>
    %321 = vector.extract_strided_slice %313 {offsets = [0, 8], sizes = [32, 64], strides = [1, 1]} : vector<32x82xbf16> to vector<32x64xbf16>
    %322 = vector.broadcast %202 : vector<1x64xbf16> to vector<32x64xbf16>
    %323 = arith.mulf %321, %322 : vector<32x64xbf16>
    %324 = vector.extract_strided_slice %313 {offsets = [0, 9], sizes = [32, 64], strides = [1, 1]} : vector<32x82xbf16> to vector<32x64xbf16>
    %325 = vector.extract_strided_slice %313 {offsets = [0, 10], sizes = [32, 64], strides = [1, 1]} : vector<32x82xbf16> to vector<32x64xbf16>
    %326 = vector.broadcast %207 : vector<1x64xbf16> to vector<32x64xbf16>
    %327 = arith.mulf %325, %326 : vector<32x64xbf16>
    %328 = vector.extract_strided_slice %313 {offsets = [0, 16], sizes = [32, 64], strides = [1, 1]} : vector<32x82xbf16> to vector<32x64xbf16>
    %329 = vector.broadcast %202 : vector<1x64xbf16> to vector<32x64xbf16>
    %330 = arith.mulf %328, %329 : vector<32x64xbf16>
    %331 = vector.extract_strided_slice %313 {offsets = [0, 17], sizes = [32, 64], strides = [1, 1]} : vector<32x82xbf16> to vector<32x64xbf16>
    %332 = vector.extract_strided_slice %313 {offsets = [0, 18], sizes = [32, 64], strides = [1, 1]} : vector<32x82xbf16> to vector<32x64xbf16>
    %333 = vector.broadcast %207 : vector<1x64xbf16> to vector<32x64xbf16>
    %334 = arith.mulf %332, %333 : vector<32x64xbf16>
    %335 = tpu.concatenate %316, %317, %320, %323, %324, %327, %330, %331, %334 in 0 : vector<32x64xbf16>, vector<32x64xbf16>, vector<32x64xbf16>, vector<32x64xbf16>, vector<32x64xbf16>, vector<32x64xbf16>, vector<32x64xbf16>, vector<32x64xbf16>, vector<32x64xbf16> -> vector<288x64xbf16>
    %cst_74 = arith.constant dense<0.000000e+00> : vector<32x64xf32>
    %336 = tpu.matmul %311, %335, %cst_74 {dimension_numbers = #tpu.dot_dimension_numbers<[1], [0], [0], [1], [0, 0, 1, 1], [], []>} : vector<32x288xbf16>, vector<288x64xbf16>, vector<32x64xf32> -> vector<32x64xf32>
    %c0_75 = arith.constant 0 : index
    %c0_76 = arith.constant 0 : index
    %337 = vector.load %arg22[%c0_75, %c0_76] : memref<32x1xf32, #tpu.memory_space<vmem>>, vector<32x1xf32>
    %338 = vector.broadcast %337 : vector<32x1xf32> to vector<32x64xf32>
    %339 = arith.addf %336, %338 : vector<32x64xf32>
    %340 = arith.addf %339, %274 : vector<32x64xf32>
    %341 = arith.truncf %340 : vector<32x64xf32> to vector<32x64xbf16>
    %c0_77 = arith.constant 0 : index
    %c0_78 = arith.constant 0 : index
    %342 = vector.load %arg23[%c0_77, %c0_78] : memref<64x256xbf16, #tpu.memory_space<vmem>>, vector<64x256xbf16>
    %cst_79 = arith.constant dense<0.000000e+00> : vector<32x256xf32>
    %343 = tpu.matmul %341, %342, %cst_79 {dimension_numbers = #tpu.dot_dimension_numbers<[1], [0], [0], [1], [0, 0, 1, 1], [], []>} : vector<32x64xbf16>, vector<64x256xbf16>, vector<32x256xf32> -> vector<32x256xf32>
    %344 = arith.truncf %343 : vector<32x256xf32> to vector<32x256xbf16>
    %345 = tpu.concatenate %344, %171 in 0 : vector<32x256xbf16>, vector<16x256xbf16> -> vector<48x256xbf16>
    %c0_80 = arith.constant 0 : index
    %c0_81 = arith.constant 0 : index
    %346 = vector.load %arg28[%c0_80, %c0_81] : memref<16x48xbf16, #tpu.memory_space<vmem>>, vector<16x48xbf16>
    %cst_82 = arith.constant dense<0.000000e+00> : vector<16x256xf32>
    %347 = tpu.matmul %346, %345, %cst_82 {dimension_numbers = #tpu.dot_dimension_numbers<[1], [0], [0], [1], [0, 0, 1, 1], [], []>} : vector<16x48xbf16>, vector<48x256xbf16>, vector<16x256xf32> -> vector<16x256xf32>
    %c0_83 = arith.constant 0 : index
    %c0_84 = arith.constant 0 : index
    %348 = vector.load %arg29[%c0_83, %c0_84] : memref<16x1xf32, #tpu.memory_space<vmem>>, vector<16x1xf32>
    %349 = vector.broadcast %348 : vector<16x1xf32> to vector<16x256xf32>
    %350 = arith.addf %347, %349 : vector<16x256xf32>
    %c0_85 = arith.constant 0 : index
    %c0_86 = arith.constant 0 : index
    %351 = vector.load %arg24[%c0_85, %c0_86] : memref<16x432xbf16, #tpu.memory_space<vmem>>, vector<16x432xbf16>
    %cst_87 = arith.constant 0.000000e+00 : bf16
    %352 = vector.broadcast %cst_87 : bf16 to vector<48x17xbf16>
    %353 = tpu.concatenate %352, %345, %352 in 1 : vector<48x17xbf16>, vector<48x256xbf16>, vector<48x17xbf16> -> vector<48x290xbf16>
    %354 = vector.extract_strided_slice %353 {offsets = [0, 0], sizes = [48, 256], strides = [1, 1]} : vector<48x290xbf16> to vector<48x256xbf16>
    %355 = vector.broadcast %32 : vector<1x256xbf16> to vector<48x256xbf16>
    %356 = arith.mulf %354, %355 : vector<48x256xbf16>
    %357 = vector.extract_strided_slice %353 {offsets = [0, 1], sizes = [48, 256], strides = [1, 1]} : vector<48x290xbf16> to vector<48x256xbf16>
    %358 = vector.extract_strided_slice %353 {offsets = [0, 2], sizes = [48, 256], strides = [1, 1]} : vector<48x290xbf16> to vector<48x256xbf16>
    %359 = vector.broadcast %37 : vector<1x256xbf16> to vector<48x256xbf16>
    %360 = arith.mulf %358, %359 : vector<48x256xbf16>
    %361 = vector.extract_strided_slice %353 {offsets = [0, 16], sizes = [48, 256], strides = [1, 1]} : vector<48x290xbf16> to vector<48x256xbf16>
    %362 = vector.broadcast %32 : vector<1x256xbf16> to vector<48x256xbf16>
    %363 = arith.mulf %361, %362 : vector<48x256xbf16>
    %364 = vector.extract_strided_slice %353 {offsets = [0, 17], sizes = [48, 256], strides = [1, 1]} : vector<48x290xbf16> to vector<48x256xbf16>
    %365 = vector.extract_strided_slice %353 {offsets = [0, 18], sizes = [48, 256], strides = [1, 1]} : vector<48x290xbf16> to vector<48x256xbf16>
    %366 = vector.broadcast %37 : vector<1x256xbf16> to vector<48x256xbf16>
    %367 = arith.mulf %365, %366 : vector<48x256xbf16>
    %368 = vector.extract_strided_slice %353 {offsets = [0, 32], sizes = [48, 256], strides = [1, 1]} : vector<48x290xbf16> to vector<48x256xbf16>
    %369 = vector.broadcast %32 : vector<1x256xbf16> to vector<48x256xbf16>
    %370 = arith.mulf %368, %369 : vector<48x256xbf16>
    %371 = vector.extract_strided_slice %353 {offsets = [0, 33], sizes = [48, 256], strides = [1, 1]} : vector<48x290xbf16> to vector<48x256xbf16>
    %372 = vector.extract_strided_slice %353 {offsets = [0, 34], sizes = [48, 256], strides = [1, 1]} : vector<48x290xbf16> to vector<48x256xbf16>
    %373 = vector.broadcast %37 : vector<1x256xbf16> to vector<48x256xbf16>
    %374 = arith.mulf %372, %373 : vector<48x256xbf16>
    %375 = tpu.concatenate %356, %357, %360, %363, %364, %367, %370, %371, %374 in 0 : vector<48x256xbf16>, vector<48x256xbf16>, vector<48x256xbf16>, vector<48x256xbf16>, vector<48x256xbf16>, vector<48x256xbf16>, vector<48x256xbf16>, vector<48x256xbf16>, vector<48x256xbf16> -> vector<432x256xbf16>
    %cst_88 = arith.constant dense<0.000000e+00> : vector<16x256xf32>
    %376 = tpu.matmul %351, %375, %cst_88 {dimension_numbers = #tpu.dot_dimension_numbers<[1], [0], [0], [1], [0, 0, 1, 1], [], []>} : vector<16x432xbf16>, vector<432x256xbf16>, vector<16x256xf32> -> vector<16x256xf32>
    %c0_89 = arith.constant 0 : index
    %c0_90 = arith.constant 0 : index
    %377 = vector.load %arg25[%c0_89, %c0_90] : memref<16x1xf32, #tpu.memory_space<vmem>>, vector<16x1xf32>
    %378 = vector.broadcast %377 : vector<16x1xf32> to vector<16x256xf32>
    %379 = arith.addf %376, %378 : vector<16x256xf32>
    %380 = arith.negf %379 : vector<16x256xf32>
    %381 = math.exp %380 : vector<16x256xf32>
    %cst_91 = arith.constant 1.000000e+00 : f32
    %382 = vector.broadcast %cst_91 : f32 to vector<16x256xf32>
    %383 = arith.addf %382, %381 : vector<16x256xf32>
    %384 = arith.divf %382, %383 : vector<16x256xf32>
    %385 = arith.mulf %379, %384 : vector<16x256xf32>
    %386 = arith.truncf %385 : vector<16x256xf32> to vector<16x256xbf16>
    %c0_92 = arith.constant 0 : index
    %c0_93 = arith.constant 0 : index
    %387 = vector.load %arg26[%c0_92, %c0_93] : memref<16x144xbf16, #tpu.memory_space<vmem>>, vector<16x144xbf16>
    %cst_94 = arith.constant 0.000000e+00 : bf16
    %388 = vector.broadcast %cst_94 : bf16 to vector<16x17xbf16>
    %389 = tpu.concatenate %388, %386, %388 in 1 : vector<16x17xbf16>, vector<16x256xbf16>, vector<16x17xbf16> -> vector<16x290xbf16>
    %390 = vector.extract_strided_slice %389 {offsets = [0, 0], sizes = [16, 256], strides = [1, 1]} : vector<16x290xbf16> to vector<16x256xbf16>
    %391 = vector.broadcast %32 : vector<1x256xbf16> to vector<16x256xbf16>
    %392 = arith.mulf %390, %391 : vector<16x256xbf16>
    %393 = vector.extract_strided_slice %389 {offsets = [0, 1], sizes = [16, 256], strides = [1, 1]} : vector<16x290xbf16> to vector<16x256xbf16>
    %394 = vector.extract_strided_slice %389 {offsets = [0, 2], sizes = [16, 256], strides = [1, 1]} : vector<16x290xbf16> to vector<16x256xbf16>
    %395 = vector.broadcast %37 : vector<1x256xbf16> to vector<16x256xbf16>
    %396 = arith.mulf %394, %395 : vector<16x256xbf16>
    %397 = vector.extract_strided_slice %389 {offsets = [0, 16], sizes = [16, 256], strides = [1, 1]} : vector<16x290xbf16> to vector<16x256xbf16>
    %398 = vector.broadcast %32 : vector<1x256xbf16> to vector<16x256xbf16>
    %399 = arith.mulf %397, %398 : vector<16x256xbf16>
    %400 = vector.extract_strided_slice %389 {offsets = [0, 17], sizes = [16, 256], strides = [1, 1]} : vector<16x290xbf16> to vector<16x256xbf16>
    %401 = vector.extract_strided_slice %389 {offsets = [0, 18], sizes = [16, 256], strides = [1, 1]} : vector<16x290xbf16> to vector<16x256xbf16>
    %402 = vector.broadcast %37 : vector<1x256xbf16> to vector<16x256xbf16>
    %403 = arith.mulf %401, %402 : vector<16x256xbf16>
    %404 = vector.extract_strided_slice %389 {offsets = [0, 32], sizes = [16, 256], strides = [1, 1]} : vector<16x290xbf16> to vector<16x256xbf16>
    %405 = vector.broadcast %32 : vector<1x256xbf16> to vector<16x256xbf16>
    %406 = arith.mulf %404, %405 : vector<16x256xbf16>
    %407 = vector.extract_strided_slice %389 {offsets = [0, 33], sizes = [16, 256], strides = [1, 1]} : vector<16x290xbf16> to vector<16x256xbf16>
    %408 = vector.extract_strided_slice %389 {offsets = [0, 34], sizes = [16, 256], strides = [1, 1]} : vector<16x290xbf16> to vector<16x256xbf16>
    %409 = vector.broadcast %37 : vector<1x256xbf16> to vector<16x256xbf16>
    %410 = arith.mulf %408, %409 : vector<16x256xbf16>
    %411 = tpu.concatenate %392, %393, %396, %399, %400, %403, %406, %407, %410 in 0 : vector<16x256xbf16>, vector<16x256xbf16>, vector<16x256xbf16>, vector<16x256xbf16>, vector<16x256xbf16>, vector<16x256xbf16>, vector<16x256xbf16>, vector<16x256xbf16>, vector<16x256xbf16> -> vector<144x256xbf16>
    %cst_95 = arith.constant dense<0.000000e+00> : vector<16x256xf32>
    %412 = tpu.matmul %387, %411, %cst_95 {dimension_numbers = #tpu.dot_dimension_numbers<[1], [0], [0], [1], [0, 0, 1, 1], [], []>} : vector<16x144xbf16>, vector<144x256xbf16>, vector<16x256xf32> -> vector<16x256xf32>
    %c0_96 = arith.constant 0 : index
    %c0_97 = arith.constant 0 : index
    %413 = vector.load %arg27[%c0_96, %c0_97] : memref<16x1xf32, #tpu.memory_space<vmem>>, vector<16x1xf32>
    %414 = vector.broadcast %413 : vector<16x1xf32> to vector<16x256xf32>
    %415 = arith.addf %412, %414 : vector<16x256xf32>
    %416 = arith.addf %415, %350 : vector<16x256xf32>
    %417 = arith.truncf %416 : vector<16x256xf32> to vector<16x256xbf16>
    %418 = tpu.concatenate %417, %103 in 0 : vector<16x256xbf16>, vector<16x256xbf16> -> vector<32x256xbf16>
    %c0_98 = arith.constant 0 : index
    %c0_99 = arith.constant 0 : index
    %419 = vector.load %arg34[%c0_98, %c0_99] : memref<16x32xbf16, #tpu.memory_space<vmem>>, vector<16x32xbf16>
    %cst_100 = arith.constant dense<0.000000e+00> : vector<16x256xf32>
    %420 = tpu.matmul %419, %418, %cst_100 {dimension_numbers = #tpu.dot_dimension_numbers<[1], [0], [0], [1], [0, 0, 1, 1], [], []>} : vector<16x32xbf16>, vector<32x256xbf16>, vector<16x256xf32> -> vector<16x256xf32>
    %c0_101 = arith.constant 0 : index
    %c0_102 = arith.constant 0 : index
    %421 = vector.load %arg35[%c0_101, %c0_102] : memref<16x1xf32, #tpu.memory_space<vmem>>, vector<16x1xf32>
    %422 = vector.broadcast %421 : vector<16x1xf32> to vector<16x256xf32>
    %423 = arith.addf %420, %422 : vector<16x256xf32>
    %c0_103 = arith.constant 0 : index
    %c0_104 = arith.constant 0 : index
    %424 = vector.load %arg30[%c0_103, %c0_104] : memref<16x288xbf16, #tpu.memory_space<vmem>>, vector<16x288xbf16>
    %cst_105 = arith.constant 0.000000e+00 : bf16
    %425 = vector.broadcast %cst_105 : bf16 to vector<32x17xbf16>
    %426 = tpu.concatenate %425, %418, %425 in 1 : vector<32x17xbf16>, vector<32x256xbf16>, vector<32x17xbf16> -> vector<32x290xbf16>
    %427 = vector.extract_strided_slice %426 {offsets = [0, 0], sizes = [32, 256], strides = [1, 1]} : vector<32x290xbf16> to vector<32x256xbf16>
    %428 = vector.broadcast %32 : vector<1x256xbf16> to vector<32x256xbf16>
    %429 = arith.mulf %427, %428 : vector<32x256xbf16>
    %430 = vector.extract_strided_slice %426 {offsets = [0, 1], sizes = [32, 256], strides = [1, 1]} : vector<32x290xbf16> to vector<32x256xbf16>
    %431 = vector.extract_strided_slice %426 {offsets = [0, 2], sizes = [32, 256], strides = [1, 1]} : vector<32x290xbf16> to vector<32x256xbf16>
    %432 = vector.broadcast %37 : vector<1x256xbf16> to vector<32x256xbf16>
    %433 = arith.mulf %431, %432 : vector<32x256xbf16>
    %434 = vector.extract_strided_slice %426 {offsets = [0, 16], sizes = [32, 256], strides = [1, 1]} : vector<32x290xbf16> to vector<32x256xbf16>
    %435 = vector.broadcast %32 : vector<1x256xbf16> to vector<32x256xbf16>
    %436 = arith.mulf %434, %435 : vector<32x256xbf16>
    %437 = vector.extract_strided_slice %426 {offsets = [0, 17], sizes = [32, 256], strides = [1, 1]} : vector<32x290xbf16> to vector<32x256xbf16>
    %438 = vector.extract_strided_slice %426 {offsets = [0, 18], sizes = [32, 256], strides = [1, 1]} : vector<32x290xbf16> to vector<32x256xbf16>
    %439 = vector.broadcast %37 : vector<1x256xbf16> to vector<32x256xbf16>
    %440 = arith.mulf %438, %439 : vector<32x256xbf16>
    %441 = vector.extract_strided_slice %426 {offsets = [0, 32], sizes = [32, 256], strides = [1, 1]} : vector<32x290xbf16> to vector<32x256xbf16>
    %442 = vector.broadcast %32 : vector<1x256xbf16> to vector<32x256xbf16>
    %443 = arith.mulf %441, %442 : vector<32x256xbf16>
    %444 = vector.extract_strided_slice %426 {offsets = [0, 33], sizes = [32, 256], strides = [1, 1]} : vector<32x290xbf16> to vector<32x256xbf16>
    %445 = vector.extract_strided_slice %426 {offsets = [0, 34], sizes = [32, 256], strides = [1, 1]} : vector<32x290xbf16> to vector<32x256xbf16>
    %446 = vector.broadcast %37 : vector<1x256xbf16> to vector<32x256xbf16>
    %447 = arith.mulf %445, %446 : vector<32x256xbf16>
    %448 = tpu.concatenate %429, %430, %433, %436, %437, %440, %443, %444, %447 in 0 : vector<32x256xbf16>, vector<32x256xbf16>, vector<32x256xbf16>, vector<32x256xbf16>, vector<32x256xbf16>, vector<32x256xbf16>, vector<32x256xbf16>, vector<32x256xbf16>, vector<32x256xbf16> -> vector<288x256xbf16>
    %cst_106 = arith.constant dense<0.000000e+00> : vector<16x256xf32>
    %449 = tpu.matmul %424, %448, %cst_106 {dimension_numbers = #tpu.dot_dimension_numbers<[1], [0], [0], [1], [0, 0, 1, 1], [], []>} : vector<16x288xbf16>, vector<288x256xbf16>, vector<16x256xf32> -> vector<16x256xf32>
    %c0_107 = arith.constant 0 : index
    %c0_108 = arith.constant 0 : index
    %450 = vector.load %arg31[%c0_107, %c0_108] : memref<16x1xf32, #tpu.memory_space<vmem>>, vector<16x1xf32>
    %451 = vector.broadcast %450 : vector<16x1xf32> to vector<16x256xf32>
    %452 = arith.addf %449, %451 : vector<16x256xf32>
    %453 = arith.negf %452 : vector<16x256xf32>
    %454 = math.exp %453 : vector<16x256xf32>
    %cst_109 = arith.constant 1.000000e+00 : f32
    %455 = vector.broadcast %cst_109 : f32 to vector<16x256xf32>
    %456 = arith.addf %455, %454 : vector<16x256xf32>
    %457 = arith.divf %455, %456 : vector<16x256xf32>
    %458 = arith.mulf %452, %457 : vector<16x256xf32>
    %459 = arith.truncf %458 : vector<16x256xf32> to vector<16x256xbf16>
    %c0_110 = arith.constant 0 : index
    %c0_111 = arith.constant 0 : index
    %460 = vector.load %arg32[%c0_110, %c0_111] : memref<16x144xbf16, #tpu.memory_space<vmem>>, vector<16x144xbf16>
    %cst_112 = arith.constant 0.000000e+00 : bf16
    %461 = vector.broadcast %cst_112 : bf16 to vector<16x17xbf16>
    %462 = tpu.concatenate %461, %459, %461 in 1 : vector<16x17xbf16>, vector<16x256xbf16>, vector<16x17xbf16> -> vector<16x290xbf16>
    %463 = vector.extract_strided_slice %462 {offsets = [0, 0], sizes = [16, 256], strides = [1, 1]} : vector<16x290xbf16> to vector<16x256xbf16>
    %464 = vector.broadcast %32 : vector<1x256xbf16> to vector<16x256xbf16>
    %465 = arith.mulf %463, %464 : vector<16x256xbf16>
    %466 = vector.extract_strided_slice %462 {offsets = [0, 1], sizes = [16, 256], strides = [1, 1]} : vector<16x290xbf16> to vector<16x256xbf16>
    %467 = vector.extract_strided_slice %462 {offsets = [0, 2], sizes = [16, 256], strides = [1, 1]} : vector<16x290xbf16> to vector<16x256xbf16>
    %468 = vector.broadcast %37 : vector<1x256xbf16> to vector<16x256xbf16>
    %469 = arith.mulf %467, %468 : vector<16x256xbf16>
    %470 = vector.extract_strided_slice %462 {offsets = [0, 16], sizes = [16, 256], strides = [1, 1]} : vector<16x290xbf16> to vector<16x256xbf16>
    %471 = vector.broadcast %32 : vector<1x256xbf16> to vector<16x256xbf16>
    %472 = arith.mulf %470, %471 : vector<16x256xbf16>
    %473 = vector.extract_strided_slice %462 {offsets = [0, 17], sizes = [16, 256], strides = [1, 1]} : vector<16x290xbf16> to vector<16x256xbf16>
    %474 = vector.extract_strided_slice %462 {offsets = [0, 18], sizes = [16, 256], strides = [1, 1]} : vector<16x290xbf16> to vector<16x256xbf16>
    %475 = vector.broadcast %37 : vector<1x256xbf16> to vector<16x256xbf16>
    %476 = arith.mulf %474, %475 : vector<16x256xbf16>
    %477 = vector.extract_strided_slice %462 {offsets = [0, 32], sizes = [16, 256], strides = [1, 1]} : vector<16x290xbf16> to vector<16x256xbf16>
    %478 = vector.broadcast %32 : vector<1x256xbf16> to vector<16x256xbf16>
    %479 = arith.mulf %477, %478 : vector<16x256xbf16>
    %480 = vector.extract_strided_slice %462 {offsets = [0, 33], sizes = [16, 256], strides = [1, 1]} : vector<16x290xbf16> to vector<16x256xbf16>
    %481 = vector.extract_strided_slice %462 {offsets = [0, 34], sizes = [16, 256], strides = [1, 1]} : vector<16x290xbf16> to vector<16x256xbf16>
    %482 = vector.broadcast %37 : vector<1x256xbf16> to vector<16x256xbf16>
    %483 = arith.mulf %481, %482 : vector<16x256xbf16>
    %484 = tpu.concatenate %465, %466, %469, %472, %473, %476, %479, %480, %483 in 0 : vector<16x256xbf16>, vector<16x256xbf16>, vector<16x256xbf16>, vector<16x256xbf16>, vector<16x256xbf16>, vector<16x256xbf16>, vector<16x256xbf16>, vector<16x256xbf16>, vector<16x256xbf16> -> vector<144x256xbf16>
    %cst_113 = arith.constant dense<0.000000e+00> : vector<16x256xf32>
    %485 = tpu.matmul %460, %484, %cst_113 {dimension_numbers = #tpu.dot_dimension_numbers<[1], [0], [0], [1], [0, 0, 1, 1], [], []>} : vector<16x144xbf16>, vector<144x256xbf16>, vector<16x256xf32> -> vector<16x256xf32>
    %c0_114 = arith.constant 0 : index
    %c0_115 = arith.constant 0 : index
    %486 = vector.load %arg33[%c0_114, %c0_115] : memref<16x1xf32, #tpu.memory_space<vmem>>, vector<16x1xf32>
    %487 = vector.broadcast %486 : vector<16x1xf32> to vector<16x256xf32>
    %488 = arith.addf %485, %487 : vector<16x256xf32>
    %489 = arith.addf %488, %423 : vector<16x256xf32>
    %490 = arith.truncf %489 : vector<16x256xf32> to vector<16x256xbf16>
    %c0_116 = arith.constant 0 : index
    %c0_117 = arith.constant 0 : index
    %491 = vector.load %arg36[%c0_116, %c0_117] : memref<3x16xbf16, #tpu.memory_space<vmem>>, vector<3x16xbf16>
    %cst_118 = arith.constant dense<0.000000e+00> : vector<3x256xf32>
    %492 = tpu.matmul %491, %490, %cst_118 {dimension_numbers = #tpu.dot_dimension_numbers<[1], [0], [0], [1], [0, 0, 1, 1], [], []>} : vector<3x16xbf16>, vector<16x256xbf16>, vector<3x256xf32> -> vector<3x256xf32>
    %c0_119 = arith.constant 0 : index
    %c0_120 = arith.constant 0 : index
    %493 = vector.load %arg37[%c0_119, %c0_120] : memref<3x1xf32, #tpu.memory_space<vmem>>, vector<3x1xf32>
    %494 = vector.broadcast %493 : vector<3x1xf32> to vector<3x256xf32>
    %495 = arith.addf %492, %494 : vector<3x256xf32>
    %c0_121 = arith.constant 0 : index
    %c0_122 = arith.constant 0 : index
    %c0_123 = arith.constant 0 : index
    %496 = vector.load %arg38[%c0_121, %c0_122, %c0_123] : memref<1x3x256xf32, #tpu.memory_space<vmem>>, vector<1x3x256xf32>
    %497 = vector.shape_cast %496 : vector<1x3x256xf32> to vector<3x256xf32>
    %498 = vector.shape_cast %495 : vector<3x256xf32> to vector<1x3x256xf32>
    tpu.vector_store %arg38[%c0_121, %c0_122, %c0_123], %498 {strides = array<i32>} : memref<1x3x256xf32, #tpu.memory_space<vmem>>, vector<1x3x256xf32>,
    return
  }
  func.func @transform_0(%arg0: i32) -> (i32, i32, i32) {
    %c0_i32 = arith.constant 0 : i32
    %c0_i32_0 = arith.constant 0 : i32
    %c0_i32_1 = arith.constant 0 : i32
    return %arg0, %c0_i32, %c0_i32_0 : i32, i32, i32
  }
  func.func @transform_1(%arg0: i32) -> (i32, i32, i32) {
    %c0_i32 = arith.constant 0 : i32
    %c0_i32_0 = arith.constant 0 : i32
    %c0_i32_1 = arith.constant 0 : i32
    return %arg0, %c0_i32, %c0_i32_0 : i32, i32, i32
  }
  func.func @transform_2(%arg0: i32) -> (i32, i32) {
    %c0_i32 = arith.constant 0 : i32
    %c0_i32_0 = arith.constant 0 : i32
    %c0_i32_1 = arith.constant 0 : i32
    return %c0_i32, %c0_i32_0 : i32, i32
  }
  func.func @transform_3(%arg0: i32) -> (i32, i32) {
    %c0_i32 = arith.constant 0 : i32
    %c0_i32_0 = arith.constant 0 : i32
    %c0_i32_1 = arith.constant 0 : i32
    return %c0_i32, %c0_i32_0 : i32, i32
  }
  func.func @transform_4(%arg0: i32) -> (i32, i32) {
    %c0_i32 = arith.constant 0 : i32
    %c0_i32_0 = arith.constant 0 : i32
    %c0_i32_1 = arith.constant 0 : i32
    return %c0_i32, %c0_i32_0 : i32, i32
  }
  func.func @transform_5(%arg0: i32) -> (i32, i32) {
    %c0_i32 = arith.constant 0 : i32
    %c0_i32_0 = arith.constant 0 : i32
    %c0_i32_1 = arith.constant 0 : i32
    return %c0_i32, %c0_i32_0 : i32, i32
  }
  func.func @transform_6(%arg0: i32) -> (i32, i32) {
    %c0_i32 = arith.constant 0 : i32
    %c0_i32_0 = arith.constant 0 : i32
    %c0_i32_1 = arith.constant 0 : i32
    return %c0_i32, %c0_i32_0 : i32, i32
  }
  func.func @transform_7(%arg0: i32) -> (i32, i32) {
    %c0_i32 = arith.constant 0 : i32
    %c0_i32_0 = arith.constant 0 : i32
    %c0_i32_1 = arith.constant 0 : i32
    return %c0_i32, %c0_i32_0 : i32, i32
  }
  func.func @transform_8(%arg0: i32) -> (i32, i32) {
    %c0_i32 = arith.constant 0 : i32
    %c0_i32_0 = arith.constant 0 : i32
    %c0_i32_1 = arith.constant 0 : i32
    return %c0_i32, %c0_i32_0 : i32, i32
  }
  func.func @transform_9(%arg0: i32) -> (i32, i32) {
    %c0_i32 = arith.constant 0 : i32
    %c0_i32_0 = arith.constant 0 : i32
    %c0_i32_1 = arith.constant 0 : i32
    return %c0_i32, %c0_i32_0 : i32, i32
  }
  func.func @transform_10(%arg0: i32) -> (i32, i32) {
    %c0_i32 = arith.constant 0 : i32
    %c0_i32_0 = arith.constant 0 : i32
    %c0_i32_1 = arith.constant 0 : i32
    return %c0_i32, %c0_i32_0 : i32, i32
  }
  func.func @transform_11(%arg0: i32) -> (i32, i32) {
    %c0_i32 = arith.constant 0 : i32
    %c0_i32_0 = arith.constant 0 : i32
    %c0_i32_1 = arith.constant 0 : i32
    return %c0_i32, %c0_i32_0 : i32, i32
  }
  func.func @transform_12(%arg0: i32) -> (i32, i32) {
    %c0_i32 = arith.constant 0 : i32
    %c0_i32_0 = arith.constant 0 : i32
    %c0_i32_1 = arith.constant 0 : i32
    return %c0_i32, %c0_i32_0 : i32, i32
  }
  func.func @transform_13(%arg0: i32) -> (i32, i32) {
    %c0_i32 = arith.constant 0 : i32
    %c0_i32_0 = arith.constant 0 : i32
    %c0_i32_1 = arith.constant 0 : i32
    return %c0_i32, %c0_i32_0 : i32, i32
  }
  func.func @transform_14(%arg0: i32) -> (i32, i32) {
    %c0_i32 = arith.constant 0 : i32
    %c0_i32_0 = arith.constant 0 : i32
    %c0_i32_1 = arith.constant 0 : i32
    return %c0_i32, %c0_i32_0 : i32, i32
  }
  func.func @transform_15(%arg0: i32) -> (i32, i32) {
    %c0_i32 = arith.constant 0 : i32
    %c0_i32_0 = arith.constant 0 : i32
    %c0_i32_1 = arith.constant 0 : i32
    return %c0_i32, %c0_i32_0 : i32, i32
  }
  func.func @transform_16(%arg0: i32) -> (i32, i32) {
    %c0_i32 = arith.constant 0 : i32
    %c0_i32_0 = arith.constant 0 : i32
    %c0_i32_1 = arith.constant 0 : i32
    return %c0_i32, %c0_i32_0 : i32, i32
  }
  func.func @transform_17(%arg0: i32) -> (i32, i32) {
    %c0_i32 = arith.constant 0 : i32
    %c0_i32_0 = arith.constant 0 : i32
    %c0_i32_1 = arith.constant 0 : i32
    return %c0_i32, %c0_i32_0 : i32, i32
  }
  func.func @transform_18(%arg0: i32) -> (i32, i32) {
    %c0_i32 = arith.constant 0 : i32
    %c0_i32_0 = arith.constant 0 : i32
    %c0_i32_1 = arith.constant 0 : i32
    return %c0_i32, %c0_i32_0 : i32, i32
  }
  func.func @transform_19(%arg0: i32) -> (i32, i32) {
    %c0_i32 = arith.constant 0 : i32
    %c0_i32_0 = arith.constant 0 : i32
    %c0_i32_1 = arith.constant 0 : i32
    return %c0_i32, %c0_i32_0 : i32, i32
  }
  func.func @transform_20(%arg0: i32) -> (i32, i32) {
    %c0_i32 = arith.constant 0 : i32
    %c0_i32_0 = arith.constant 0 : i32
    %c0_i32_1 = arith.constant 0 : i32
    return %c0_i32, %c0_i32_0 : i32, i32
  }
  func.func @transform_21(%arg0: i32) -> (i32, i32) {
    %c0_i32 = arith.constant 0 : i32
    %c0_i32_0 = arith.constant 0 : i32
    %c0_i32_1 = arith.constant 0 : i32
    return %c0_i32, %c0_i32_0 : i32, i32
  }
  func.func @transform_22(%arg0: i32) -> (i32, i32) {
    %c0_i32 = arith.constant 0 : i32
    %c0_i32_0 = arith.constant 0 : i32
    %c0_i32_1 = arith.constant 0 : i32
    return %c0_i32, %c0_i32_0 : i32, i32
  }
  func.func @transform_23(%arg0: i32) -> (i32, i32) {
    %c0_i32 = arith.constant 0 : i32
    %c0_i32_0 = arith.constant 0 : i32
    %c0_i32_1 = arith.constant 0 : i32
    return %c0_i32, %c0_i32_0 : i32, i32
  }
  func.func @transform_24(%arg0: i32) -> (i32, i32) {
    %c0_i32 = arith.constant 0 : i32
    %c0_i32_0 = arith.constant 0 : i32
    %c0_i32_1 = arith.constant 0 : i32
    return %c0_i32, %c0_i32_0 : i32, i32
  }
  func.func @transform_25(%arg0: i32) -> (i32, i32) {
    %c0_i32 = arith.constant 0 : i32
    %c0_i32_0 = arith.constant 0 : i32
    %c0_i32_1 = arith.constant 0 : i32
    return %c0_i32, %c0_i32_0 : i32, i32
  }
  func.func @transform_26(%arg0: i32) -> (i32, i32) {
    %c0_i32 = arith.constant 0 : i32
    %c0_i32_0 = arith.constant 0 : i32
    %c0_i32_1 = arith.constant 0 : i32
    return %c0_i32, %c0_i32_0 : i32, i32
  }
  func.func @transform_27(%arg0: i32) -> (i32, i32) {
    %c0_i32 = arith.constant 0 : i32
    %c0_i32_0 = arith.constant 0 : i32
    %c0_i32_1 = arith.constant 0 : i32
    return %c0_i32, %c0_i32_0 : i32, i32
  }
  func.func @transform_28(%arg0: i32) -> (i32, i32) {
    %c0_i32 = arith.constant 0 : i32
    %c0_i32_0 = arith.constant 0 : i32
    %c0_i32_1 = arith.constant 0 : i32
    return %c0_i32, %c0_i32_0 : i32, i32
  }
  func.func @transform_29(%arg0: i32) -> (i32, i32) {
    %c0_i32 = arith.constant 0 : i32
    %c0_i32_0 = arith.constant 0 : i32
    %c0_i32_1 = arith.constant 0 : i32
    return %c0_i32, %c0_i32_0 : i32, i32
  }
  func.func @transform_30(%arg0: i32) -> (i32, i32) {
    %c0_i32 = arith.constant 0 : i32
    %c0_i32_0 = arith.constant 0 : i32
    %c0_i32_1 = arith.constant 0 : i32
    return %c0_i32, %c0_i32_0 : i32, i32
  }
  func.func @transform_31(%arg0: i32) -> (i32, i32) {
    %c0_i32 = arith.constant 0 : i32
    %c0_i32_0 = arith.constant 0 : i32
    %c0_i32_1 = arith.constant 0 : i32
    return %c0_i32, %c0_i32_0 : i32, i32
  }
  func.func @transform_32(%arg0: i32) -> (i32, i32) {
    %c0_i32 = arith.constant 0 : i32
    %c0_i32_0 = arith.constant 0 : i32
    %c0_i32_1 = arith.constant 0 : i32
    return %c0_i32, %c0_i32_0 : i32, i32
  }
  func.func @transform_33(%arg0: i32) -> (i32, i32) {
    %c0_i32 = arith.constant 0 : i32
    %c0_i32_0 = arith.constant 0 : i32
    %c0_i32_1 = arith.constant 0 : i32
    return %c0_i32, %c0_i32_0 : i32, i32
  }
  func.func @transform_34(%arg0: i32) -> (i32, i32) {
    %c0_i32 = arith.constant 0 : i32
    %c0_i32_0 = arith.constant 0 : i32
    %c0_i32_1 = arith.constant 0 : i32
    return %c0_i32, %c0_i32_0 : i32, i32
  }
  func.func @transform_35(%arg0: i32) -> (i32, i32) {
    %c0_i32 = arith.constant 0 : i32
    %c0_i32_0 = arith.constant 0 : i32
    %c0_i32_1 = arith.constant 0 : i32
    return %c0_i32, %c0_i32_0 : i32, i32
  }
  func.func @transform_36(%arg0: i32) -> (i32, i32) {
    %c0_i32 = arith.constant 0 : i32
    %c0_i32_0 = arith.constant 0 : i32
    %c0_i32_1 = arith.constant 0 : i32
    return %c0_i32, %c0_i32_0 : i32, i32
  }
  func.func @transform_37(%arg0: i32) -> (i32, i32, i32) {
    %c0_i32 = arith.constant 0 : i32
    %c0_i32_0 = arith.constant 0 : i32
    %c0_i32_1 = arith.constant 0 : i32
    return %arg0, %c0_i32, %c0_i32_0 : i32, i32, i32
  }
}

</mosaic_0001>

<bundles_post_ra>
// kernel: _lambda_.1
= control target key start
LH: loop header
LB: loop body
LE: loop exit
PB: predicated region body
PF: predicated region fallthrough
CT: control target
= control target key end

     0   :  { %s5721_s6 = smov 1   ;;  %s5722_s10 = smov 2   ;;  %s7270_s0 = inlined_call_operand.smem [shape: u32[38], index: -1, kind: input, shape index: {}] }
   0x1   :  { %s5789_s5 = sld [smem:[%s7270_s0]]   ;;  %s5723_s14 = smov 3  }
   0x2   :  { %s5794_s9 = sld [smem:[%s7270_s0 + %s5721_s6]]   ;;  %s5724_s18 = smov 4  }
   0x3   :  { %s5799_s13 = sld [smem:[%s7270_s0 + %s5722_s10]]   ;;  %s5725_s22 = smov 5  }
   0x4   :  { %s5804_s17 = sld [smem:[%s7270_s0 + %s5723_s14]]   ;;  %s5726_s26 = smov 6  }
   0x5   :  { %s5809_s21 = sld [smem:[%s7270_s0 + %s5724_s18]]   ;;  %s5727_s30 = smov 7  }
   0x6   :  { %s5814_s25 = sld [smem:[%s7270_s0 + %s5725_s22]]   ;;  %s5728_s4 = smov 8  }
   0x7   :  { %7339 = sst [smem:[#allocation2_spill]] %s5789_s5  ;;  %s5729_s10 = smov 9  }
   0x8   :  { %7340 = sst [smem:[#allocation3_spill]] %s5794_s9  ;;  %s5730_s15 = smov 10  }
   0x9   :  { %7341 = sst [smem:[#allocation4_spill]] %s5799_s13  ;;  %s5731_s20 = smov 11  }
   0xa   :  { %s5819_s29 = sld [smem:[%s7270_s0 + %s5726_s26]]   ;;  %s5732_s26 = smov 12  }
   0xb   :  { %s5824_s3 = sld [smem:[%s7270_s0 + %s5727_s30]]   ;;  %s5733_s1 = smov 13  }
   0xc   :  { %s5829_s8 = sld [smem:[%s7270_s0 + %s5728_s4]]   ;;  %s5734_s7 = smov 14  }
   0xd   :  { %s5834_s14 = sld [smem:[%s7270_s0 + %s5729_s10]]   ;;  %s5736_s22 = smov 16  }
   0xe   :  { %s5839_s19 = sld [smem:[%s7270_s0 + %s5730_s15]]   ;;  %s5735_s15 = smov 15  }
   0xf   :  { %s5844_s24 = sld [smem:[%s7270_s0 + %s5731_s20]]   ;;  %s5737_s28 = smov 17  }
  0x10   :  { %s5849_s30 = sld [smem:[%s7270_s0 + %s5732_s26]]  }
  0x11   :  { %7342 = sst [smem:[#allocation5_spill]] %s5824_s3 }
  0x12   :  { %7343 = sst [smem:[#allocation6_spill]] %s5829_s8 }
  0x13   :  { %s5854_s6 = sld [smem:[%s7270_s0 + %s5733_s1]]  }
  0x14   :  { %s5859_s12 = sld [smem:[%s7270_s0 + %s5734_s7]]   ;;  %s5738_s7 = smov 18  }
  0x15   :  { %s5864_s20 = sld [smem:[%s7270_s0 + %s5735_s15]]   ;;  %s5739_s15 = smov 19  }
  0x16   :  { %7344 = sst [smem:[#allocation7_spill]] %s5849_s30 }
  0x17   :  { %s5869_s27 = sld [smem:[%s7270_s0 + %s5736_s22]]   ;;  %s5740_s22 = smov 20  }
  0x18   :  { %s5874_s4 = sld [smem:[%s7270_s0 + %s5737_s28]]   ;;  %s5741_s28 = smov 21  }
  0x19   :  { %7345 = sst [smem:[#allocation8_spill]] %s5854_s6 }
  0x1a   :  { %7346 = sst [smem:[#allocation9_spill]] %s5859_s12 }
  0x1b   :  { %7347 = sst [smem:[#allocation10_spill]] %s5864_s20 }
  0x1c   :  { %s5879_s12 = sld [smem:[%s7270_s0 + %s5738_s7]]   ;;  %s5742_s7 = smov 22  }
  0x1d   :  { %s5884_s20 = sld [smem:[%s7270_s0 + %s5739_s15]]   ;;  %s5743_s15 = smov 23  }
  0x1e   :  { %7348 = sst [smem:[#allocation11_spill]] %s5874_s4 }
  0x1f   :  { %s5889_s30 = sld [smem:[%s7270_s0 + %s5740_s22]]   ;;  %s5744_s22 = smov 24  }
  0x20   :  { %s5894_s4 = sld [smem:[%s7270_s0 + %s5741_s28]]   ;;  %s5745_s28 = smov 25  }
  0x22   :  { %7349 = sst [smem:[#allocation12_spill]] %s5879_s12 }
  0x23   :  { %7350 = sst [smem:[#allocation13_spill]] %s5884_s20 }
  0x24   :  { %s5899_s12 = sld [smem:[%s7270_s0 + %s5742_s7]]   ;;  %s5746_s7 = smov 26  }
  0x25   :  { %7351 = sst [smem:[#allocation14_spill]] %s5889_s30 }
  0x26   :  { %7352 = sst [smem:[#allocation15_spill]] %s5894_s4 }
  0x27   :  { %s5904_s20 = sld [smem:[%s7270_s0 + %s5743_s15]]   ;;  %s5747_s15 = smov 27  }
  0x28   :  { %s5909_s30 = sld [smem:[%s7270_s0 + %s5744_s22]]   ;;  %s5748_s22 = smov 28  }
  0x29   :  { %s5914_s4 = sld [smem:[%s7270_s0 + %s5745_s28]]   ;;  %s5749_s28 = smov 29  }
  0x2a   :  { %7353 = sst [smem:[#allocation16_spill]] %s5899_s12 }
  0x2b   :  { %s5919_s12 = sld [smem:[%s7270_s0 + %s5746_s7]]   ;;  %s5750_s7 = smov 30  }
  0x2d   :  { %7354 = sst [smem:[#allocation17_spill]] %s5904_s20 }
  0x2e   :  { %7355 = sst [smem:[#allocation18_spill]] %s5909_s30 }
  0x2f   :  { %7356 = sst [smem:[#allocation19_spill]] %s5914_s4 }
  0x30   :  { %s5924_s20 = sld [smem:[%s7270_s0 + %s5747_s15]]   ;;  %s5751_s15 = smov 31  }
  0x31   :  { %7357 = sst [smem:[#allocation20_spill]] %s5919_s12 }
  0x32   :  { %s5929_s30 = sld [smem:[%s7270_s0 + %s5748_s22]]   ;;  %s5752_s22 = smov 32  }
  0x33   :  { %s5934_s4 = sld [smem:[%s7270_s0 + %s5749_s28]]   ;;  %s5753_s28 = smov 33  }
  0x34   :  { %s5939_s12 = sld [smem:[%s7270_s0 + %s5750_s7]]   ;;  %s5754_s7 = smov 34  }
  0x36   :  { %7358 = sst [smem:[#allocation21_spill]] %s5924_s20 }
  0x37   :  { %s5944_s20 = sld [smem:[%s7270_s0 + %s5751_s15]]   ;;  %s5755_s15 = smov 35  }
  0x38   :  { %7359 = sst [smem:[#allocation22_spill]] %s5929_s30 }
  0x39   :  { %7360 = sst [smem:[#allocation23_spill]] %s5934_s4 }
  0x3a   :  { %7361 = sst [smem:[#allocation24_spill]] %s5939_s12 }
  0x3b   :  { %s5949_s30 = sld [smem:[%s7270_s0 + %s5752_s22]]   ;;  %s5756_s22 = smov 36  }
  0x3c   :  { %s5954_s4 = sld [smem:[%s7270_s0 + %s5753_s28]]   ;;  %s5757_s28 = smov 37  }
  0x3d   :  { %7362 = sst [smem:[#allocation25_spill]] %s5944_s20 }
  0x3e   :  { %s5959_s12 = sld [smem:[%s7270_s0 + %s5754_s7]]   ;;  %s5976_s7 = smov 0  }
  0x3f   :  { %s5964_s20 = sld [smem:[%s7270_s0 + %s5755_s15]]  }
  0x41   :  { %7363 = sst [smem:[#allocation26_spill]] %s5949_s30 }
  0x42   :  { %7364 = sst [smem:[#allocation27_spill]] %s5954_s4 }
  0x43   :  { %s5969_s30 = sld [smem:[%s7270_s0 + %s5756_s22]]  }
  0x44   :  { %s5974_s4 = sld [smem:[%s7270_s0 + %s5757_s28]]  }
  0x45 LB: > { %s7365_s8 = sld [smem:[#allocation6_spill]]  ;;  %s7366_s6 = sld [smem:[#allocation8_spill]]  ;;  %s5719_s7 = sphi %s5976_s7, %s85_s7  }
  0x46   : > { %s7367_s3 = sld [smem:[#allocation5_spill]]  ;;  %s5112_s10 = sadd.s32 4294967295, %s5719_s7  }
  0x47   : > { %p5116_p0 = scmp.ge.s32.totalorder %s5719_s7, 1  ;;  %p1035_p1 = scmp.lt.s32.totalorder %s5719_s7, 3 }
  0x49   : > { %p1036_p2 = pnand %p5116_p0, %p1035_p1 }
  0x4b   : > { %1039 = sbr.rel (%p1036_p2) target bundleno = 7231 (0x1c3f), region = 168 }
  0x52   : > { %p1132_p3 = scmp.lt.s32.totalorder %s5112_s10, 1  ;;  %s7368_s5 = sld [smem:[#allocation2_spill]]  ;;  %vm1181_vm0 = vcmask 1040384   ;;  %vm1182_vm1 = vcmask 1041408   ;;  %v5758_v0 = vmov 65535   ;;  %v7296_v2 = vmov 0  }
  0x53   : > { %s7369_s9 = sld [smem:[#allocation3_spill]]  ;;  %v1183_v1 = vsel %vm1181_vm0, 4294967295, %v5758_v0  ;;  %1223 = vmatprep.mubr.bf16.mxu0 %v7296_v2  ;;  %5524 = vset.pattern.permute.xlu0 %v7296_v2  ;;  %v1242_v3 = vlaneseq  ;;  %vm1177_vm2 = vcmask 23552   ;;  %s7370_s13 = sld [smem:[#allocation4_spill]]  ;;  %v5760_v12 = vmov 0.0  }
  0x54   : > { %s7425_s10 = smov (!%p1132_p3, %s5112_s10), 1  ;;  %5525 = vset.pattern.permute.xlu1 %v7296_v2  ;;  %v1184_v4 = vsel %vm1182_vm1, %v1183_v1, 0  ;;  %s5761_s18 = smov 2   ;;  %vm1291_vm7 = vcmask 138240   ;;  %vm1310_vm8 = vcmask 15360   ;;  %vm1324_vm9 = vcmask 130048  }
  0x55   : > { %v5989_v5 = vand.u32 127, %v1242_v3  ;;  %s5250_s0 = sshll.u32 %s7425_s10, 2  ;;  %s5251_s11 = sshll.u32 %s7425_s10, 4  ;;  %vm1336_vm10 = vcmask 146432   ;;  %vm1348_vm11 = vcmask 261120   ;;  %vm1360_vm12 = vcmask 277504  }
  0x56   : > { %s7289_s22 = smov 16   ;;  %s5763_s23 = smov 18   ;;  %vm1376_vm13 = vcmask 1039360   ;;  %vm1390_vm14 = vcmask 1031168   ;;  %vm1404_vm15 = vcmask 916480   ;;  %vm1415_vm0 = vcmask 908288  }
  0x57   : > { %v1249_v6 = vand.u32 15, %v5989_v5  ;;  %s5764_s26 = smov 32   ;;  %s5765_s28 = smov 34   ;;  %v1244_v20 = vadd.s32 128, %v5989_v5  ;;  %vm1429_vm1 = vcmask 900096  }
  0x58   : > { %s1136_s15 = scalar_lea.vmem %s7368_s5, %s5250_s0  ;;  %s7299_s1 = smov 17  }
  0x59   : > { %s1141_s16 = scalar_lea.vmem %s7369_s9, %s5251_s11  ;;  %v5124_v7 = vld.sshfl [vmem:[%s1136_s15] sm:$0x33 pattern:$0x76325410]  ;;  %vm1269_vm3 = vcmp.ne.s32.totalorder %v1249_v6, 0  ;;  %vm1277_vm4 = vcmp.ne.s32.totalorder %v1249_v6, 15 }
  0x5a   : > { %v1151_v8 = vld [vmem:[%s1141_s16] sm:$0xff]  ;;  %v1176_v9 = vcombine.high %v5124_v7, %v5124_v7  ;;  %v1152_v10 = vld [vmem:[%s1141_s16 + $0x8] sm:$0xff]  ;;  %v1186_v11 = vand.u32 %v5124_v7, %v1184_v4  ;;  %v5128_v13 = vsel %vm1277_vm4, 1.0, %v5760_v12  ;;  %v5126_v16 = vsel %vm1269_vm3, 1.0, %v5760_v12  ;;  %s7315_s2 = smov 111   ;;  %s7324_s0 = smov 127  }
  0x5b   : > { %1155 = vperm.xlu0 %5524, %v1151_v8   ;;  %v5526_v15 = vld [vmem:[%s7370_s13] sm:$0xff]   ;;  %v1283_v17 = vpack.c.bf16 %v5128_v13, %v5128_v13  ;;  %v6000_v18 = vpack.c.bf16 %v5126_v16, %v5126_v16  ;;  %v1256_v23 = vand.u32 15, %v1244_v20  ;;  %s7317_s11 = smov 126   ;;  %s7322_s15 = smov 112   ;;  %vm1454_vm3 = vcmask 777216  }
  0x5c   : > { %v1189_v14 = vand.u32 %v1184_v4, %v1176_v9  ;;  %s7311_s16 = smov 110   ;;  %v5529_v6 = vld [vmem:[%s5804_s17 + $0x4] ss:$8 sps:$4 sm:$0xff]   ;;  %vm1468_vm4 = vcmask 769024   ;;  %s7395_s5 = smov 127  }
  0x5d   : > { %vm1278_vm5 = vcmp.ne.s32.totalorder %v1256_v23, 15  ;;  %vm1270_vm6 = vcmp.ne.s32.totalorder %v1256_v23, 0  ;;  %5132 = vmatprep.mubr.msk.bf16.mxu1 %vm1324_vm9, %v5529_v6  ;;  %s7404_s9 = smov 94   ;;  %s7409_s13 = sld [smem:[#allocation20_spill]] }
  0x5e   : > { %1191 = vmatprep.subr.bf16.mxu0 %v1189_v14  ;;  %v5129_v33 = vsel %vm1278_vm5, 1.0, %v5760_v12  ;;  %v5127_v35 = vsel %vm1270_vm6, 1.0, %v5760_v12  ;;  %v1473_v14 = vld [vmem:[%s5809_s21] sm:$0xff] }
  0x5f   : > { %1160 = vperm.xlu0 %5524, %v1152_v10   ;;  %1192 = vmatpush1.bf16.msra.mxu0 %v1186_v11  ;;  %v1284_v34 = vpack.c.bf16 %v5129_v33, %v5129_v33  ;;  %v6019_v36 = vpack.c.bf16 %v5127_v35, %v5127_v35 }
  0x62   : > { %5125 = vmatmul.mubr.msk.bf16.vlgmr.msra.gmra.mrb[0].mxu0 %vm1177_vm2, %v5526_v15  ;;  %v1474_v15 = vld [vmem:[%s5809_s21 + $0x8] sm:$0xff]  ;;  %vm1443_vm2 = vcmask 785408  }
  0x63   : > { %1306 = vrot.lane.b32.xlu0 %v1283_v17, %s5761_s18 }
  0x67   : > { %1320 = vrot.lane.b32.xlu0 %v6000_v18, %s7289_s22 }
  0x6b   : > { %1332 = vrot.lane.b32.xlu0 %v1283_v17, %s5763_s23 }
  0x6f   : > { %1344 = vrot.lane.b32.xlu0 %v6000_v18, %s5764_s26 }
  0x73   : > { %1356 = vrot.lane.b32.xlu0 %v1283_v17, %s5765_s28 }
  0xda   : > { %v1156_v19 = vpop.permute.xlu0 %1155 }
  0xde   : > { %v1161_v24 = vpop.permute.xlu0 %1160 }
  0xe2   : > { %v6034_v39 = vpop.permute.xlu0 %1306 }
  0xe6   : > { %v6052_v46 = vpop.permute.xlu0 %1320 }
  0xea   : > { %v6070_v51 = vpop.permute.xlu0 %1332 }
  0xee   : > { %v6091_v58 = vpop.permute.xlu0 %1344 }
  0xf2   : > { %v6124_v7 = vpop.permute.xlu0 %1356 }
 0x135   : > { %v1225_v21 = vpop.f32.mrb[0].mxu0 }
 0x136   : > { %v1227_v22 = vpop.f32.mrb[1].mxu0  ;;  %v1226_v26 = vadd.f32 %v1225_v21, %v1156_v19 }
 0x137   : > { %v1229_v25 = vpop.f32.mrb[2].mxu0  ;;  %v1228_v29 = vadd.f32 %v1227_v22, %v1156_v19 }
 0x138   : > { %v1230_v27 = vadd.f32 %v1229_v25, %v1161_v24  ;;  %v1231_v28 = vpop.f32.mrb[3].mxu0 }
 0x139   : > { %v1232_v30 = vadd.f32 %v1231_v28, %v1161_v24 }
 0x13a   : > { %v6009_v31 = vpack.c.bf16 %v1230_v27, %v1226_v26 }
 0x13b   : > { %v6011_v32 = vpack.c.bf16 %v1232_v30, %v1228_v29 }
 0x13c   : > { %1287 = vrot.lane.b32.xlu1 %v6009_v31, %s7299_s1 }
 0x140   : > { %1289 = vrot.lane.b32.xlu1 %v6011_v32, %s7299_s1 }
 0x144   : > { %1308 = vrot.lane.b32.xlu1 %v1284_v34, %s5761_s18 }
 0x148   : > { %1322 = vrot.lane.b32.xlu1 %v6019_v36, %s7289_s22  ;;  %s7290_s22 = smov 94  }
 0x14c   : > { %1334 = vrot.lane.b32.xlu1 %v1284_v34, %s5763_s23 }
 0x150   : > { %1346 = vrot.lane.b32.xlu1 %v6019_v36, %s5764_s26  ;;  %s7294_s26 = smov 96  }
 0x154   : > { %1358 = vrot.lane.b32.xlu1 %v1284_v34, %s5765_s28  ;;  %s7292_s28 = smov 95  }
 0x1ae   : > { %v1288_v37 = vpop.permute.xlu1 %1287 }
 0x1af   : > { %v6028_v38 = vsel %vm1291_vm7, 0, %v1288_v37 }
 0x1b0   : > { %1409 = vrot.lane.b32.xlu1 %v6028_v38, %s7315_s2  ;;  %1370 = vrot.lane.b32.xlu0 %v6028_v38, %s7324_s0  ;;  %v1302_v44 = vmul.bf16 %v6028_v38, %v6000_v18  ;;  %v1315_v47 = vmul.bf16 %v6034_v39, %v6028_v38  ;;  %v1329_v48 = vmul.bf16 %v6052_v46, %v6028_v38 }
 0x1b1   : > { %v1341_v52 = vmul.bf16 %v6070_v51, %v6028_v38  ;;  %v1353_v59 = vmul.bf16 %v6091_v58, %v6028_v38  ;;  %v1365_v13 = vmul.bf16 %v6124_v7, %v6028_v38 }
 0x1b2   : > { %v1290_v40 = vpop.permute.xlu1 %1289 }
 0x1b3   : > { %v6037_v41 = vsel %vm1291_vm7, %v1288_v37, %v1290_v40  ;;  %v6040_v42 = vsel %vm1291_vm7, %v1290_v40, 0 }
 0x1b4   : > { %1374 = vrot.lane.b32.xlu1 %v6040_v42, %s7324_s0  ;;  %1372 = vrot.lane.b32.xlu0 %v6037_v41, %s7324_s0  ;;  %v1303_v43 = vmul.bf16 %v6037_v41, %v6019_v36 }
 0x1b6   : > { %1498 = vmatprep.subr.bf16.mxu1 %v1303_v43  ;;  %v6050_v45 = vpop.permute.xlu1 %1308 }
 0x1b7   : > { %1499 = vmatpush1.bf16.msra.mxu1 %v1302_v44  ;;  %v6064_v49 = vsel %vm1310_vm8, %v6034_v39, %v6050_v45  ;;  %v1317_v55 = vmul.bf16 %v6050_v45, %v6040_v42  ;;  %vm2498_vm8 = vcmask 72704  }
 0x1b8   : > { %1411 = vrot.lane.b32.xlu1 %v6037_v41, %s7315_s2  ;;  %1413 = vrot.lane.b32.xlu0 %v6040_v42, %s7315_s2  ;;  %v1316_v53 = vmul.bf16 %v6064_v49, %v6037_v41 }
 0x1ba   : > { %v6066_v50 = vpop.permute.xlu1 %1322 }
 0x1bb   : > { %v1331_v56 = vmul.bf16 %v6066_v50, %v6040_v42  ;;  %v6087_v57 = vsel %vm1324_vm9, %v6052_v46, %v6066_v50 }
 0x1bc   : > { %1384 = vrot.lane.b32.xlu1 %v1315_v47, %s7317_s11  ;;  %1398 = vrot.lane.b32.xlu0 %v1329_v48, %s7322_s15  ;;  %v1330_v60 = vmul.bf16 %v6087_v57, %v6037_v41 }
 0x1be   : > { %v6078_v54 = vpop.permute.xlu1 %1334 }
 0x1bf   : > { %v1343_v62 = vmul.bf16 %v6078_v54, %v6040_v42  ;;  %v6105_v63 = vsel %vm1336_vm10, %v6070_v51, %v6078_v54  ;;  %vm2501_vm10 = vcmask 596992  }
 0x1c0   : > { %1423 = vrot.lane.b32.xlu0 %v1341_v52, %s7311_s16  ;;  %1386 = vrot.lane.b32.xlu1 %v1316_v53, %s7317_s11  ;;  %v1342_v1 = vmul.bf16 %v6105_v63, %v6037_v41 }
 0x1c2   : > { %v6097_v61 = vpop.permute.xlu1 %1346 }
 0x1c3   : > { %v6110_v0 = vsel %vm1348_vm11, %v6091_v58, %v6097_v61  ;;  %v1355_v8 = vmul.bf16 %v6097_v61, %v6040_v42 }
 0x1c4   : > { %1388 = vrot.lane.b32.xlu0 %v1317_v55, %s7317_s11  ;;  %1402 = vrot.lane.b32.xlu1 %v1331_v56, %s7322_s15  ;;  %v1354_v3 = vmul.bf16 %v6110_v0, %v6037_v41 }
 0x1c6   : > { %v6119_v4 = vpop.permute.xlu1 %1358 }
 0x1c7   : > { %v6130_v9 = vsel %vm1360_vm12, %v6124_v7, %v6119_v4  ;;  %v1367_v11 = vmul.bf16 %v6119_v4, %v6040_v42  ;;  %vm3535_vm12 = vcmask 523264  }
 0x1c8   : > { %1437 = vrot.lane.b32.xlu1 %v1353_v59, %s7294_s26  ;;  %1400 = vrot.lane.b32.xlu0 %v1330_v60, %s7322_s15  ;;  %v1366_v10 = vmul.bf16 %v6130_v9, %v6037_v41 }
 0x1cc   : > { %1450 = vrot.lane.b32.xlu0 %v6037_v41, %s7292_s28  ;;  %1427 = vrot.lane.b32.xlu1 %v1343_v62, %s7311_s16 }
 0x1d0   : > { %1425 = vrot.lane.b32.xlu0 %v1342_v1, %s7311_s16  ;;  %1439 = vrot.lane.b32.xlu1 %v1354_v3, %s7294_s26 }
 0x1d4   : > { %1441 = vrot.lane.b32.xlu0 %v1355_v8, %s7294_s26  ;;  %1452 = vrot.lane.b32.xlu1 %v6040_v42, %s7292_s28 }
 0x1d8   : > { %1448 = vrot.lane.b32.xlu0 %v6028_v38, %s7292_s28  ;;  %1464 = vrot.lane.b32.xlu1 %v1366_v10, %s7290_s22 }
 0x1dc   : > { %1466 = vrot.lane.b32.xlu0 %v1367_v11, %s7290_s22  ;;  %1462 = vrot.lane.b32.xlu1 %v1365_v13, %s7290_s22 }
 0x1e0   : > { %1477 = vperm.xlu0 %5524, %v1473_v14   ;;  %1482 = vperm.xlu1 %5525, %v1474_v15   ;;  %v5527_v14 = vld [vmem:[%s5804_s17] ss:$8 sps:$4 sm:$0xff]  }
 0x222   : > { %v1371_v16 = vpop.permute.xlu0 %1370  ;;  %v1410_v17 = vpop.permute.xlu1 %1409 }
 0x226   : > { %v1373_v19 = vpop.permute.xlu0 %1372  ;;  %v1375_v20 = vpop.permute.xlu1 %1374 }
 0x227   : > { %v1378_v21 = vsel %vm1376_vm13, %v1373_v19, %v1375_v20  ;;  %v1377_v22 = vsel %vm1376_vm13, %v1371_v16, %v1373_v19 }
 0x228   : > { %1500 = vmatprep.subr.bf16.mxu1 %v1378_v21 }
 0x229   : > { %1501 = vmatpush1.bf16.msra.mxu1 %v1377_v22 }
 0x22a   : > { %v1414_v23 = vpop.permute.xlu0 %1413  ;;  %v1412_v24 = vpop.permute.xlu1 %1411 }
 0x22b   : > { %v1417_v41 = vsel %vm1415_vm0, %v1412_v24, %v1414_v23  ;;  %v1416_v44 = vsel %vm1415_vm0, %v1410_v17, %v1412_v24 }
 0x22e   : > { %v1399_v25 = vpop.permute.xlu0 %1398  ;;  %v1385_v26 = vpop.permute.xlu1 %1384 }
 0x232   : > { %v1424_v27 = vpop.permute.xlu0 %1423  ;;  %v1387_v28 = vpop.permute.xlu1 %1386 }
 0x233   : > { %v1391_v34 = vsel %vm1390_vm14, %v1385_v26, %v1387_v28 }
 0x236   : > { %v1389_v29 = vpop.permute.xlu0 %1388  ;;  %v1403_v30 = vpop.permute.xlu1 %1402 }
 0x237   : > { %v1392_v33 = vsel %vm1390_vm14, %v1387_v28, %v1389_v29 }
 0x238   : > { %1502 = vmatprep.subr.bf16.mxu1 %v1392_v33 }
 0x239   : > { %1503 = vmatpush1.bf16.msra.mxu1 %v1391_v34 }
 0x23a   : > { %v1401_v35 = vpop.permute.xlu0 %1400  ;;  %v1438_v37 = vpop.permute.xlu1 %1437 }
 0x23b   : > { %v1406_v38 = vsel %vm1404_vm15, %v1401_v35, %v1403_v30  ;;  %v1405_v40 = vsel %vm1404_vm15, %v1399_v25, %v1401_v35 }
 0x23c   : > { %1504 = vmatprep.subr.bf16.mxu1 %v1406_v38 }
 0x23d   : > { %1505 = vmatpush1.bf16.msra.mxu1 %v1405_v40 }
 0x23e   : > { %v1451_v42 = vpop.permute.xlu0 %1450  ;;  %1506 = vmatprep.subr.bf16.mxu1 %v1417_v41  ;;  %v1428_v43 = vpop.permute.xlu1 %1427 }
 0x241   : > { %1507 = vmatpush1.bf16.msra.mxu1 %v1416_v44 }
 0x242   : > { %v1426_v47 = vpop.permute.xlu0 %1425  ;;  %v1440_v48 = vpop.permute.xlu1 %1439 }
 0x243   : > { %v1431_v52 = vsel %vm1429_vm1, %v1426_v47, %v1428_v43  ;;  %v1430_v53 = vsel %vm1429_vm1, %v1424_v27, %v1426_v47  ;;  %v1444_v60 = vsel %vm1443_vm2, %v1438_v37, %v1440_v48 }
 0x244   : > { %1508 = vmatprep.subr.bf16.mxu1 %v1431_v52 }
 0x245   : > { %1509 = vmatpush1.bf16.msra.mxu1 %v1430_v53 }
 0x246   : > { %v1442_v55 = vpop.permute.xlu0 %1441  ;;  %v1453_v56 = vpop.permute.xlu1 %1452 }
 0x247   : > { %v1445_v59 = vsel %vm1443_vm2, %v1440_v48, %v1442_v55  ;;  %v1456_v62 = vsel %vm1454_vm3, %v1451_v42, %v1453_v56 }
 0x248   : > { %1510 = vmatprep.subr.bf16.mxu1 %v1445_v59 }
 0x249   : > { %1511 = vmatpush1.bf16.msra.mxu1 %v1444_v60 }
 0x24a   : > { %v1449_v1 = vpop.permute.xlu0 %1448  ;;  %1512 = vmatprep.subr.bf16.mxu1 %v1456_v62  ;;  %v1465_v3 = vpop.permute.xlu1 %1464 }
 0x24b   : > { %v1455_v6 = vsel %vm1454_vm3, %v1449_v1, %v1451_v42 }
 0x24d   : > { %1513 = vmatpush1.bf16.msra.mxu1 %v1455_v6 }
 0x24e   : > { %v1467_v8 = vpop.permute.xlu0 %1466  ;;  %v1463_v10 = vpop.permute.xlu1 %1462 }
 0x24f   : > { %v1470_v11 = vsel %vm1468_vm4, %v1465_v3, %v1467_v8  ;;  %v1469_v13 = vsel %vm1468_vm4, %v1463_v10, %v1465_v3 }
 0x250   : > { %1514 = vmatprep.subr.bf16.mxu1 %v1470_v11 }
 0x251   : > { %1515 = vmatpush1.bf16.msra.mxu1 %v1469_v13 }
 0x254   : > { %1531 = vmatmul.mubr.bf16.vlgmr.msra.gmra.mrb[0].mxu1 %v5527_v14 }
 0x25f   : > { %v1478_v15 = vpop.permute.xlu0 %1477  ;;  %v1483_v17 = vpop.permute.xlu1 %1482 }
 0x327   : > { %v1532_v16 = vpop.f32.mrb[0].mxu1 }
 0x328   : > { %v1533_v19 = vadd.f32 %v1532_v16, %v1478_v15  ;;  %v1534_v20 = vpop.f32.mrb[1].mxu1 }
 0x329   : > { %v1535_v21 = vadd.f32 %v1534_v20, %v1478_v15  ;;  %v1536_v22 = vpop.f32.mrb[2].mxu1 }
 0x32a   : > { %v5133_v23 = vmul.f32 -1.442695, %v1533_v19  ;;  %v1537_v24 = vadd.f32 %v1536_v22, %v1483_v17  ;;  %v1538_v25 = vpop.f32.mrb[3].mxu1 }
 0x32b   : > { %v5134_v26 = vmul.f32 -1.442695, %v1535_v21  ;;  %v1539_v27 = vadd.f32 %v1538_v25, %v1483_v17 }
 0x32c   : > { %5617 = vpow2.f32 %v5133_v23  ;;  %v5135_v28 = vmul.f32 -1.442695, %v1537_v24 }
 0x32d   : > { %5619 = vpow2.f32 %v5134_v26  ;;  %v5136_v29 = vmul.f32 -1.442695, %v1539_v27 }
 0x32e   : > { %5621 = vpow2.f32 %v5135_v28 }
 0x32f   : > { %5623 = vpow2.f32 %v5136_v29  ;;  %v1701_v29 = vld [vmem:[%s5819_s29] sm:$0xff] }
 0x336   : > { %v5618_v30 = vpop.eup %5617 }
 0x337   : > { %v5620_v33 = vpop.eup %5619  ;;  %v1553_v34 = vadd.f32 1.0, %v5618_v30  ;;  %v1702_v30 = vld [vmem:[%s5819_s29 + $0x8] sm:$0xff] }
 0x338   : > { %v5622_v35 = vpop.eup %5621  ;;  %v1554_v37 = vadd.f32 1.0, %v5620_v33 }
 0x339   : > { %v5624_v38 = vpop.eup %5623  ;;  %5625 = vrcp.f32 %v1553_v34  ;;  %v1555_v40 = vadd.f32 1.0, %v5622_v35 }
 0x33a   : > { %5627 = vrcp.f32 %v1554_v37  ;;  %v1556_v41 = vadd.f32 1.0, %v5624_v38 }
 0x33b   : > { %5629 = vrcp.f32 %v1555_v40 }
 0x33c   : > { %5631 = vrcp.f32 %v1556_v41 }
 0x343   : > { %v5626_v42 = vpop.eup %5625 }
 0x344   : > { %v5628_v43 = vpop.eup %5627  ;;  %v1565_v48 = vmul.f32 %v5626_v42, %v1533_v19 }
 0x345   : > { %v5630_v44 = vpop.eup %5629  ;;  %v1566_v53 = vmul.f32 %v5628_v43, %v1535_v21 }
 0x346   : > { %v5632_v47 = vpop.eup %5631  ;;  %v1567_v52 = vmul.f32 %v5630_v44, %v1537_v24  ;;  %v5530_v24 = vld [vmem:[%s5814_s25 + $0x4] ss:$8 sps:$4 sm:$0xff]  }
 0x347   : > { %v1568_v55 = vmul.f32 %v5632_v47, %v1539_v27  ;;  %5139 = vmatprep.mubr.msk.bf16.mxu0 %vm1324_vm9, %v5530_v24 }
 0x348   : > { %v1569_v56 = vpack.c.bf16 %v1567_v52, %v1565_v48 }
 0x349   : > { %v1570_v59 = vpack.c.bf16 %v1568_v55, %v1566_v53 }
 0x34a   : > { %1575 = vrot.lane.b32.xlu0 %v1569_v56, %s7299_s1 }
 0x34b   : > { %1577 = vrot.lane.b32.xlu1 %v1570_v59, %s7299_s1 }
 0x3bc   : > { %v1576_v60 = vpop.permute.xlu0 %1575 }
 0x3bd   : > { %v1582_v62 = vsel %vm1291_vm7, 0, %v1576_v60  ;;  %v1578_v1 = vpop.permute.xlu1 %1577 }
 0x3be   : > { %v1579_v3 = vsel %vm1291_vm7, %v1576_v60, %v1578_v1  ;;  %1642 = vrot.lane.b32.xlu1 %v1582_v62, %s7315_s2  ;;  %1606 = vrot.lane.b32.xlu0 %v1582_v62, %s7324_s0  ;;  %v1585_v8 = vsel %vm1291_vm7, %v1578_v1, 0  ;;  %v1587_v10 = vmul.bf16 %v1582_v62, %v6000_v18  ;;  %v1589_v11 = vmul.bf16 %v1582_v62, %v6034_v39 }
 0x3bf   : > { %v1588_v6 = vmul.bf16 %v1579_v3, %v6019_v36  ;;  %v1592_v13 = vmul.bf16 %v1582_v62, %v6052_v46  ;;  %v1595_v14 = vmul.bf16 %v1582_v62, %v6070_v51  ;;  %v1590_v15 = vmul.bf16 %v1579_v3, %v6064_v49 }
 0x3c0   : > { %v1591_v16 = vmul.bf16 %v1585_v8, %v6050_v45  ;;  %v1594_v17 = vmul.bf16 %v1585_v8, %v6066_v50  ;;  %v1593_v19 = vmul.bf16 %v1579_v3, %v6087_v57  ;;  %v1598_v20 = vmul.bf16 %v1582_v62, %v6091_v58 }
 0x3c1   : > { %1725 = vmatprep.subr.bf16.mxu0 %v1588_v6  ;;  %v1597_v21 = vmul.bf16 %v1585_v8, %v6078_v54  ;;  %v1596_v22 = vmul.bf16 %v1579_v3, %v6105_v63  ;;  %v1599_v23 = vmul.bf16 %v1579_v3, %v6110_v0  ;;  %v1600_v25 = vmul.bf16 %v1585_v8, %v6097_v61 }
 0x3c2   : > { %1610 = vrot.lane.b32.xlu1 %v1585_v8, %s7324_s0  ;;  %1608 = vrot.lane.b32.xlu0 %v1579_v3, %s7324_s0  ;;  %v1602_v26 = vmul.bf16 %v1579_v3, %v6130_v9  ;;  %v1603_v27 = vmul.bf16 %v1585_v8, %v6119_v4  ;;  %v1601_v28 = vmul.bf16 %v1582_v62, %v6124_v7 }
 0x3c3   : > { %1726 = vmatpush1.bf16.msra.mxu0 %v1587_v10 }
 0x3c6   : > { %1644 = vrot.lane.b32.xlu1 %v1579_v3, %s7315_s2  ;;  %1646 = vrot.lane.b32.xlu0 %v1585_v8, %s7315_s2 }
 0x3ca   : > { %1619 = vrot.lane.b32.xlu1 %v1589_v11, %s7317_s11  ;;  %1632 = vrot.lane.b32.xlu0 %v1592_v13, %s7322_s15 }
 0x3ce   : > { %1655 = vrot.lane.b32.xlu0 %v1595_v14, %s7311_s16  ;;  %1621 = vrot.lane.b32.xlu1 %v1590_v15, %s7317_s11 }
 0x3d2   : > { %1623 = vrot.lane.b32.xlu0 %v1591_v16, %s7317_s11  ;;  %1636 = vrot.lane.b32.xlu1 %v1594_v17, %s7322_s15 }
 0x3d6   : > { %1634 = vrot.lane.b32.xlu0 %v1593_v19, %s7322_s15  ;;  %1668 = vrot.lane.b32.xlu1 %v1598_v20, %s7294_s26 }
 0x3da   : > { %1680 = vrot.lane.b32.xlu0 %v1579_v3, %s7292_s28  ;;  %1659 = vrot.lane.b32.xlu1 %v1597_v21, %s7311_s16 }
 0x3de   : > { %1657 = vrot.lane.b32.xlu0 %v1596_v22, %s7311_s16  ;;  %1670 = vrot.lane.b32.xlu1 %v1599_v23, %s7294_s26 }
 0x3e2   : > { %1672 = vrot.lane.b32.xlu0 %v1600_v25, %s7294_s26  ;;  %1682 = vrot.lane.b32.xlu1 %v1585_v8, %s7292_s28 }
 0x3e6   : > { %1678 = vrot.lane.b32.xlu0 %v1582_v62, %s7292_s28  ;;  %1693 = vrot.lane.b32.xlu1 %v1602_v26, %s7290_s22 }
 0x3ea   : > { %1695 = vrot.lane.b32.xlu0 %v1603_v27, %s7290_s22  ;;  %1691 = vrot.lane.b32.xlu1 %v1601_v28, %s7290_s22 }
 0x3ee   : > { %1705 = vperm.xlu0 %5524, %v1701_v29   ;;  %1710 = vperm.xlu1 %5525, %v1702_v30   ;;  %v5532_v29 = vld [vmem:[%s5814_s25] ss:$8 sps:$4 sm:$0xff]  }
 0x430   : > { %v1643_v33 = vpop.permute.xlu1 %1642  ;;  %v1607_v34 = vpop.permute.xlu0 %1606 }
 0x434   : > { %v1611_v35 = vpop.permute.xlu1 %1610  ;;  %v1609_v37 = vpop.permute.xlu0 %1608 }
 0x435   : > { %v1613_v38 = vsel %vm1376_vm13, %v1609_v37, %v1611_v35  ;;  %v1612_v40 = vsel %vm1376_vm13, %v1607_v34, %v1609_v37  ;;  %v1236_v34 = vunpack.c.l.bf16 %v6009_v31 }
 0x436   : > { %1727 = vmatprep.subr.bf16.mxu0 %v1613_v38 }
 0x437   : > { %1728 = vmatpush1.bf16.msra.mxu0 %v1612_v40  ;;  %v1237_v40 = vunpack.c.l.bf16 %v6011_v32 }
 0x438   : > { %v1645_v41 = vpop.permute.xlu1 %1644  ;;  %v1647_v42 = vpop.permute.xlu0 %1646 }
 0x439   : > { %v1649_v3 = vsel %vm1415_vm0, %v1645_v41, %v1647_v42  ;;  %v1648_v10 = vsel %vm1415_vm0, %v1643_v33, %v1645_v41 }
 0x43c   : > { %v1620_v43 = vpop.permute.xlu1 %1619  ;;  %v1633_v44 = vpop.permute.xlu0 %1632 }
 0x440   : > { %v1656_v47 = vpop.permute.xlu0 %1655  ;;  %v1622_v48 = vpop.permute.xlu1 %1621 }
 0x441   : > { %v1625_v56 = vsel %vm1390_vm14, %v1620_v43, %v1622_v48 }
 0x444   : > { %v1624_v52 = vpop.permute.xlu0 %1623  ;;  %v1637_v53 = vpop.permute.xlu1 %1636 }
 0x445   : > { %v1626_v55 = vsel %vm1390_vm14, %v1622_v48, %v1624_v52 }
 0x446   : > { %1729 = vmatprep.subr.bf16.mxu0 %v1626_v55 }
 0x447   : > { %1730 = vmatpush1.bf16.msra.mxu0 %v1625_v56 }
 0x448   : > { %v1635_v59 = vpop.permute.xlu0 %1634  ;;  %v1669_v60 = vpop.permute.xlu1 %1668 }
 0x449   : > { %v1639_v62 = vsel %vm1404_vm15, %v1635_v59, %v1637_v53  ;;  %v1638_v1 = vsel %vm1404_vm15, %v1633_v44, %v1635_v59  ;;  %v1238_v44 = vunpack.c.h.bf16 %v6009_v31  ;;  %v1239_v53 = vunpack.c.h.bf16 %v6011_v32 }
 0x44a   : > { %1731 = vmatprep.subr.bf16.mxu0 %v1639_v62 }
 0x44b   : > { %1732 = vmatpush1.bf16.msra.mxu0 %v1638_v1 }
 0x44c   : > { %v1681_v6 = vpop.permute.xlu0 %1680  ;;  %v1660_v8 = vpop.permute.xlu1 %1659  ;;  %1733 = vmatprep.subr.bf16.mxu0 %v1649_v3 }
 0x44f   : > { %1734 = vmatpush1.bf16.msra.mxu0 %v1648_v10 }
 0x450   : > { %v1658_v11 = vpop.permute.xlu0 %1657  ;;  %v1671_v13 = vpop.permute.xlu1 %1670 }
 0x451   : > { %v1662_v14 = vsel %vm1429_vm1, %v1658_v11, %v1660_v8  ;;  %v1661_v15 = vsel %vm1429_vm1, %v1656_v47, %v1658_v11  ;;  %v1674_v20 = vsel %vm1443_vm2, %v1669_v60, %v1671_v13 }
 0x452   : > { %1735 = vmatprep.subr.bf16.mxu0 %v1662_v14 }
 0x453   : > { %1736 = vmatpush1.bf16.msra.mxu0 %v1661_v15 }
 0x454   : > { %v1673_v16 = vpop.permute.xlu0 %1672  ;;  %v1683_v17 = vpop.permute.xlu1 %1682 }
 0x455   : > { %v1675_v19 = vsel %vm1443_vm2, %v1671_v13, %v1673_v16  ;;  %v1685_v21 = vsel %vm1454_vm3, %v1681_v6, %v1683_v17 }
 0x456   : > { %1737 = vmatprep.subr.bf16.mxu0 %v1675_v19 }
 0x457   : > { %1738 = vmatpush1.bf16.msra.mxu0 %v1674_v20 }
 0x458   : > { %v1679_v22 = vpop.permute.xlu0 %1678  ;;  %v1694_v23 = vpop.permute.xlu1 %1693  ;;  %1739 = vmatprep.subr.bf16.mxu0 %v1685_v21 }
 0x459   : > { %v1684_v24 = vsel %vm1454_vm3, %v1679_v22, %v1681_v6 }
 0x45b   : > { %1740 = vmatpush1.bf16.msra.mxu0 %v1684_v24  ;;  %v5533_v24 = vld [vmem:[%s7367_s3 + $0x4] ss:$8 sps:$4 sm:$0xff]  }
 0x45c   : > { %v1696_v25 = vpop.permute.xlu0 %1695  ;;  %v1692_v26 = vpop.permute.xlu1 %1691  ;;  %5142 = vmatprep.mubr.msk.bf16.mxu1 %vm1324_vm9, %v5533_v24 }
 0x45d   : > { %v1697_v27 = vsel %vm1468_vm4, %v1692_v26, %v1694_v23  ;;  %v1698_v28 = vsel %vm1468_vm4, %v1694_v23, %v1696_v25 }
 0x45e   : > { %1741 = vmatprep.subr.bf16.mxu0 %v1698_v28 }
 0x45f   : > { %1742 = vmatpush1.bf16.msra.mxu0 %v1697_v27 }
 0x462   : > { %1758 = vmatmul.mubr.bf16.vlgmr.msra.gmra.mrb[4].mxu0 %v5532_v29  ;;  %v1908_v29 = vld [vmem:[%s7365_s8] sm:$0xff] }
 0x46d   : > { %v1706_v30 = vpop.permute.xlu0 %1705  ;;  %v1711_v38 = vpop.permute.xlu1 %1710 }
 0x535   : > { %v1759_v33 = vpop.f32.mrb[4].mxu0 }
 0x536   : > { %v1760_v35 = vadd.f32 %v1759_v33, %v1706_v30  ;;  %v1761_v37 = vpop.f32.mrb[5].mxu0 }
 0x537   : > { %v1762_v41 = vadd.f32 %v1761_v37, %v1706_v30  ;;  %v1763_v42 = vpop.f32.mrb[6].mxu0  ;;  %v1909_v30 = vld [vmem:[%s7365_s8 + $0x8] sm:$0xff]  ;;  %s7403_s8 = smov 95  }
 0x538   : > { %v1768_v43 = vadd.f32 %v1760_v35, %v1236_v34  ;;  %v1764_v47 = vadd.f32 %v1763_v42, %v1711_v38  ;;  %v1765_v48 = vpop.f32.mrb[7].mxu0 }
 0x539   : > { %v1769_v52 = vadd.f32 %v1762_v41, %v1237_v40  ;;  %v1766_v55 = vadd.f32 %v1765_v48, %v1711_v38 }
 0x53a   : > { %v1770_v56 = vadd.f32 %v1764_v47, %v1238_v44 }
 0x53b   : > { %v1771_v59 = vadd.f32 %v1766_v55, %v1239_v53 }
 0x53c   : > { %v6237_v60 = vpack.c.bf16 %v1770_v56, %v1768_v43 }
 0x53d   : > { %v6239_v62 = vpack.c.bf16 %v1771_v59, %v1769_v52 }
 0x53e   : > { %1782 = vrot.lane.b32.xlu0 %v6237_v60, %s7299_s1 }
 0x53f   : > { %1784 = vrot.lane.b32.xlu1 %v6239_v62, %s7299_s1 }
 0x5b0   : > { %v1783_v1 = vpop.permute.xlu0 %1782 }
 0x5b1   : > { %v1789_v31 = vsel %vm1291_vm7, 0, %v1783_v1  ;;  %v1785_v3 = vpop.permute.xlu1 %1784 }
 0x5b2   : > { %v1786_v6 = vsel %vm1291_vm7, %v1783_v1, %v1785_v3  ;;  %1849 = vrot.lane.b32.xlu1 %v1789_v31, %s7315_s2  ;;  %1813 = vrot.lane.b32.xlu0 %v1789_v31, %s7324_s0  ;;  %v1792_v8 = vsel %vm1291_vm7, %v1785_v3, 0  ;;  %v6255_v10 = vmul.bf16 %v1789_v31, %v6000_v18  ;;  %v1796_v11 = vmul.bf16 %v1789_v31, %v6034_v39 }
 0x5b3   : > { %v6250_v32 = vmul.bf16 %v1786_v6, %v6019_v36  ;;  %v1799_v13 = vmul.bf16 %v1789_v31, %v6052_v46  ;;  %v1802_v14 = vmul.bf16 %v1789_v31, %v6070_v51  ;;  %v1797_v15 = vmul.bf16 %v1786_v6, %v6064_v49 }
 0x5b4   : > { %v1798_v16 = vmul.bf16 %v1792_v8, %v6050_v45  ;;  %v1801_v17 = vmul.bf16 %v1792_v8, %v6066_v50  ;;  %v1800_v19 = vmul.bf16 %v1786_v6, %v6087_v57  ;;  %v1805_v20 = vmul.bf16 %v1789_v31, %v6091_v58 }
 0x5b5   : > { %1932 = vmatprep.subr.bf16.mxu1 %v6250_v32  ;;  %v1804_v21 = vmul.bf16 %v1792_v8, %v6078_v54  ;;  %v1803_v22 = vmul.bf16 %v1786_v6, %v6105_v63  ;;  %v1806_v23 = vmul.bf16 %v1786_v6, %v6110_v0  ;;  %v1807_v25 = vmul.bf16 %v1792_v8, %v6097_v61 }
 0x5b6   : > { %1817 = vrot.lane.b32.xlu1 %v1792_v8, %s7324_s0  ;;  %1815 = vrot.lane.b32.xlu0 %v1786_v6, %s7324_s0  ;;  %v1809_v26 = vmul.bf16 %v1786_v6, %v6130_v9  ;;  %v1810_v27 = vmul.bf16 %v1792_v8, %v6119_v4  ;;  %v1808_v28 = vmul.bf16 %v1789_v31, %v6124_v7 }
 0x5b7   : > { %1933 = vmatpush1.bf16.msra.mxu1 %v6255_v10 }
 0x5ba   : > { %1851 = vrot.lane.b32.xlu1 %v1786_v6, %s7315_s2  ;;  %1853 = vrot.lane.b32.xlu0 %v1792_v8, %s7315_s2 }
 0x5be   : > { %1826 = vrot.lane.b32.xlu1 %v1796_v11, %s7317_s11  ;;  %1839 = vrot.lane.b32.xlu0 %v1799_v13, %s7322_s15 }
 0x5c2   : > { %1862 = vrot.lane.b32.xlu0 %v1802_v14, %s7311_s16  ;;  %1828 = vrot.lane.b32.xlu1 %v1797_v15, %s7317_s11 }
 0x5c6   : > { %1830 = vrot.lane.b32.xlu0 %v1798_v16, %s7317_s11  ;;  %1843 = vrot.lane.b32.xlu1 %v1801_v17, %s7322_s15 }
 0x5ca   : > { %1841 = vrot.lane.b32.xlu0 %v1800_v19, %s7322_s15  ;;  %1875 = vrot.lane.b32.xlu1 %v1805_v20, %s7294_s26 }
 0x5ce   : > { %1887 = vrot.lane.b32.xlu0 %v1786_v6, %s7292_s28  ;;  %1866 = vrot.lane.b32.xlu1 %v1804_v21, %s7311_s16 }
 0x5d2   : > { %1864 = vrot.lane.b32.xlu0 %v1803_v22, %s7311_s16  ;;  %1877 = vrot.lane.b32.xlu1 %v1806_v23, %s7294_s26 }
 0x5d6   : > { %1879 = vrot.lane.b32.xlu0 %v1807_v25, %s7294_s26  ;;  %1889 = vrot.lane.b32.xlu1 %v1792_v8, %s7292_s28 }
 0x5da   : > { %1885 = vrot.lane.b32.xlu0 %v1789_v31, %s7292_s28  ;;  %1900 = vrot.lane.b32.xlu1 %v1809_v26, %s7290_s22 }
 0x5de   : > { %1902 = vrot.lane.b32.xlu0 %v1810_v27, %s7290_s22  ;;  %1898 = vrot.lane.b32.xlu1 %v1808_v28, %s7290_s22 }
 0x5e2   : > { %1912 = vperm.xlu0 %5524, %v1908_v29   ;;  %1917 = vperm.xlu1 %5525, %v1909_v30  }
 0x624   : > { %v1850_v33 = vpop.permute.xlu1 %1849  ;;  %v1814_v34 = vpop.permute.xlu0 %1813 }
 0x628   : > { %v1818_v35 = vpop.permute.xlu1 %1817  ;;  %v1816_v37 = vpop.permute.xlu0 %1815 }
 0x629   : > { %v6300_v38 = vsel %vm1376_vm13, %v1816_v37, %v1818_v35  ;;  %v6303_v40 = vsel %vm1376_vm13, %v1814_v34, %v1816_v37 }
 0x62a   : > { %1934 = vmatprep.subr.bf16.mxu1 %v6300_v38 }
 0x62b   : > { %1935 = vmatpush1.bf16.msra.mxu1 %v6303_v40 }
 0x62c   : > { %v1852_v41 = vpop.permute.xlu1 %1851  ;;  %v1854_v42 = vpop.permute.xlu0 %1853 }
 0x62d   : > { %v6324_v6 = vsel %vm1415_vm0, %v1852_v41, %v1854_v42  ;;  %v6328_v13 = vsel %vm1415_vm0, %v1850_v33, %v1852_v41  ;;  %v5535_v33 = vld [vmem:[%s7367_s3] ss:$8 sps:$4 sm:$0xff]   ;;  %s7394_s3 = sld [smem:[#allocation14_spill]] }
 0x62e   : > { %7371 = vst [vmem:[#allocation28_spill] sm:$0xff] %v6328_v13 }
 0x630   : > { %v1827_v43 = vpop.permute.xlu1 %1826  ;;  %v1840_v44 = vpop.permute.xlu0 %1839 }
 0x634   : > { %v1863_v47 = vpop.permute.xlu0 %1862  ;;  %v1829_v48 = vpop.permute.xlu1 %1828 }
 0x635   : > { %v6312_v56 = vsel %vm1390_vm14, %v1827_v43, %v1829_v48 }
 0x638   : > { %v1831_v52 = vpop.permute.xlu0 %1830  ;;  %v1844_v53 = vpop.permute.xlu1 %1843 }
 0x639   : > { %v6308_v55 = vsel %vm1390_vm14, %v1829_v48, %v1831_v52 }
 0x63a   : > { %1936 = vmatprep.subr.bf16.mxu1 %v6308_v55 }
 0x63b   : > { %1937 = vmatpush1.bf16.msra.mxu1 %v6312_v56 }
 0x63c   : > { %v1842_v59 = vpop.permute.xlu0 %1841  ;;  %v1876_v1 = vpop.permute.xlu1 %1875 }
 0x63d   : > { %v6316_v31 = vsel %vm1404_vm15, %v1842_v59, %v1844_v53  ;;  %v6319_v3 = vsel %vm1404_vm15, %v1840_v44, %v1842_v59 }
 0x63e   : > { %1938 = vmatprep.subr.bf16.mxu1 %v6316_v31 }
 0x63f   : > { %1939 = vmatpush1.bf16.msra.mxu1 %v6319_v3 }
 0x640   : > { %v1888_v8 = vpop.permute.xlu0 %1887  ;;  %v1867_v11 = vpop.permute.xlu1 %1866  ;;  %1940 = vmatprep.subr.bf16.mxu1 %v6324_v6 }
 0x643   : > { %1941 = vmatpush1.bf16.msra.mxu1 %v6328_v13 }
 0x644   : > { %v1865_v14 = vpop.permute.xlu0 %1864  ;;  %v1878_v15 = vpop.permute.xlu1 %1877 }
 0x645   : > { %v6332_v16 = vsel %vm1429_vm1, %v1865_v14, %v1867_v11  ;;  %v6335_v17 = vsel %vm1429_vm1, %v1863_v47, %v1865_v14  ;;  %v6344_v22 = vsel %vm1443_vm2, %v1876_v1, %v1878_v15 }
 0x646   : > { %7372 = vst [vmem:[#allocation29_spill] sm:$0xff] %v6332_v16  ;;  %7373 = vst [vmem:[#allocation30_spill] sm:$0xff] %v6335_v17  ;;  %1942 = vmatprep.subr.bf16.mxu1 %v6332_v16 }
 0x647   : > { %1943 = vmatpush1.bf16.msra.mxu1 %v6335_v17  ;;  %7375 = vst [vmem:[#allocation32_spill] sm:$0xff] %v6344_v22 }
 0x648   : > { %v1880_v19 = vpop.permute.xlu0 %1879  ;;  %v1890_v20 = vpop.permute.xlu1 %1889 }
 0x649   : > { %v6340_v21 = vsel %vm1443_vm2, %v1878_v15, %v1880_v19  ;;  %v6348_v23 = vsel %vm1454_vm3, %v1888_v8, %v1890_v20 }
 0x64a   : > { %7374 = vst [vmem:[#allocation31_spill] sm:$0xff] %v6340_v21  ;;  %1944 = vmatprep.subr.bf16.mxu1 %v6340_v21  ;;  %7376 = vst [vmem:[#allocation33_spill] sm:$0xff] %v6348_v23 }
 0x64b   : > { %1945 = vmatpush1.bf16.msra.mxu1 %v6344_v22 }
 0x64c   : > { %v1886_v24 = vpop.permute.xlu0 %1885  ;;  %v1901_v25 = vpop.permute.xlu1 %1900  ;;  %1946 = vmatprep.subr.bf16.mxu1 %v6348_v23 }
 0x64d   : > { %v6352_v26 = vsel %vm1454_vm3, %v1886_v24, %v1888_v8 }
 0x64e   : > { %7377 = vst [vmem:[#allocation34_spill] sm:$0xff] %v6352_v26 }
 0x64f   : > { %1947 = vmatpush1.bf16.msra.mxu1 %v6352_v26 }
 0x650   : > { %v1903_v27 = vpop.permute.xlu0 %1902  ;;  %v1899_v28 = vpop.permute.xlu1 %1898 }
 0x651   : > { %v6356_v29 = vsel %vm1468_vm4, %v1899_v28, %v1901_v25  ;;  %v6359_v30 = vsel %vm1468_vm4, %v1901_v25, %v1903_v27 }
 0x652   : > { %7378 = vst [vmem:[#allocation35_spill] sm:$0xff] %v6356_v29  ;;  %7379 = vst [vmem:[#allocation36_spill] sm:$0xff] %v6359_v30  ;;  %1948 = vmatprep.subr.bf16.mxu1 %v6359_v30 }
 0x653   : > { %1949 = vmatpush1.bf16.msra.mxu1 %v6356_v29 }
 0x656   : > { %1965 = vmatmul.mubr.bf16.vlgmr.msra.gmra.mrb[4].mxu1 %v5535_v33 }
 0x661   : > { %v1913_v34 = vpop.permute.xlu0 %1912  ;;  %v1918_v42 = vpop.permute.xlu1 %1917 }
 0x729   : > { %v1966_v35 = vpop.f32.mrb[4].mxu1 }
 0x72a   : > { %v1967_v37 = vadd.f32 %v1966_v35, %v1913_v34  ;;  %v1968_v41 = vpop.f32.mrb[5].mxu1 }
 0x72b   : > { %v1969_v43 = vadd.f32 %v1968_v41, %v1913_v34  ;;  %v1970_v44 = vpop.f32.mrb[6].mxu1 }
 0x72c   : > { %v5143_v47 = vmul.f32 -1.442695, %v1967_v37  ;;  %v1971_v48 = vadd.f32 %v1970_v44, %v1918_v42  ;;  %v1972_v52 = vpop.f32.mrb[7].mxu1 }
 0x72d   : > { %v5144_v53 = vmul.f32 -1.442695, %v1969_v43  ;;  %v1973_v59 = vadd.f32 %v1972_v52, %v1918_v42 }
 0x72e   : > { %5633 = vpow2.f32 %v5143_v47  ;;  %v5145_v1 = vmul.f32 -1.442695, %v1971_v48 }
 0x72f   : > { %5635 = vpow2.f32 %v5144_v53  ;;  %v5146_v8 = vmul.f32 -1.442695, %v1973_v59 }
 0x730   : > { %5637 = vpow2.f32 %v5145_v1 }
 0x731   : > { %5639 = vpow2.f32 %v5146_v8 }
 0x738   : > { %v5634_v11 = vpop.eup %5633 }
 0x739   : > { %v5636_v14 = vpop.eup %5635  ;;  %v1987_v15 = vadd.f32 1.0, %v5634_v11 }
 0x73a   : > { %v5638_v19 = vpop.eup %5637  ;;  %v1988_v20 = vadd.f32 1.0, %v5636_v14 }
 0x73b   : > { %v5640_v24 = vpop.eup %5639  ;;  %5641 = vrcp.f32 %v1987_v15  ;;  %v1989_v25 = vadd.f32 1.0, %v5638_v19 }
 0x73c   : > { %5643 = vrcp.f32 %v1988_v20  ;;  %v1990_v27 = vadd.f32 1.0, %v5640_v24 }
 0x73d   : > { %5645 = vrcp.f32 %v1989_v25 }
 0x73e   : > { %5647 = vrcp.f32 %v1990_v27 }
 0x745   : > { %v5642_v28 = vpop.eup %5641 }
 0x746   : > { %v5644_v33 = vpop.eup %5643  ;;  %v1999_v41 = vmul.f32 %v5642_v28, %v1967_v37 }
 0x747   : > { %v5646_v34 = vpop.eup %5645  ;;  %v2000_v44 = vmul.f32 %v5644_v33, %v1969_v43 }
 0x748   : > { %v5648_v35 = vpop.eup %5647  ;;  %v2001_v42 = vmul.f32 %v5646_v34, %v1971_v48 }
 0x749   : > { %v2002_v47 = vmul.f32 %v5648_v35, %v1973_v59 }
 0x74a   : > { %v2003_v52 = vpack.c.bf16 %v2001_v42, %v1999_v41  ;;  %v5536_v41 = vld [vmem:[%s5834_s14 + $0x4] ss:$8 sps:$4 sm:$0xff]  }
 0x74b   : > { %v2004_v53 = vpack.c.bf16 %v2002_v47, %v2000_v44  ;;  %5149 = vmatprep.mubr.msk.bf16.mxu0 %vm1324_vm9, %v5536_v41 }
 0x74c   : > { %2009 = vrot.lane.b32.xlu0 %v2003_v52, %s7299_s1 }
 0x74d   : > { %2011 = vrot.lane.b32.xlu1 %v2004_v53, %s7299_s1  ;;  %v2135_v53 = vld [vmem:[%s5839_s19] sm:$0xff]  ;;  %s7382_s1 = sld [smem:[#allocation9_spill]] }
 0x7be   : > { %v2010_v1 = vpop.permute.xlu0 %2009 }
 0x7bf   : > { %v2016_v8 = vsel %vm1291_vm7, 0, %v2010_v1  ;;  %v2012_v11 = vpop.permute.xlu1 %2011 }
 0x7c0   : > { %v2013_v14 = vsel %vm1291_vm7, %v2010_v1, %v2012_v11  ;;  %2076 = vrot.lane.b32.xlu1 %v2016_v8, %s7315_s2  ;;  %2040 = vrot.lane.b32.xlu0 %v2016_v8, %s7324_s0  ;;  %v2019_v43 = vsel %vm1291_vm7, %v2012_v11, 0  ;;  %v2021_v48 = vmul.bf16 %v2016_v8, %v6000_v18  ;;  %v2023_v59 = vmul.bf16 %v2016_v8, %v6034_v39  ;;  %v2136_v1 = vld [vmem:[%s5839_s19 + $0x8] sm:$0xff]  ;;  %v5539_v11 = vld [vmem:[%s5844_s24 + $0x40] sm:$0xff]  }
 0x7c1   : > { %v2022_v37 = vmul.bf16 %v2013_v14, %v6019_v36  ;;  %v2026_v15 = vmul.bf16 %v2016_v8, %v6052_v46  ;;  %v2029_v19 = vmul.bf16 %v2016_v8, %v6070_v51  ;;  %v2024_v20 = vmul.bf16 %v2013_v14, %v6064_v49  ;;  %5253 = vmatprep.subr.bf16.mxu1 %v5539_v11 }
 0x7c2   : > { %v2025_v24 = vmul.bf16 %v2019_v43, %v6050_v45  ;;  %v2028_v25 = vmul.bf16 %v2019_v43, %v6066_v50  ;;  %v2027_v27 = vmul.bf16 %v2013_v14, %v6087_v57  ;;  %v2032_v28 = vmul.bf16 %v2016_v8, %v6091_v58 }
 0x7c3   : > { %2159 = vmatprep.subr.bf16.mxu0 %v2022_v37  ;;  %v2031_v33 = vmul.bf16 %v2019_v43, %v6078_v54  ;;  %v2030_v34 = vmul.bf16 %v2013_v14, %v6105_v63  ;;  %v2033_v35 = vmul.bf16 %v2013_v14, %v6110_v0  ;;  %v2034_v42 = vmul.bf16 %v2019_v43, %v6097_v61  ;;  %v5541_v37 = vld [vmem:[%s5844_s24 + $0x48] sm:$0xff]  }
 0x7c4   : > { %2044 = vrot.lane.b32.xlu1 %v2019_v43, %s7324_s0  ;;  %2042 = vrot.lane.b32.xlu0 %v2013_v14, %s7324_s0  ;;  %v2036_v44 = vmul.bf16 %v2013_v14, %v6130_v9  ;;  %v2037_v47 = vmul.bf16 %v2019_v43, %v6119_v4  ;;  %v2035_v52 = vmul.bf16 %v2016_v8, %v6124_v7 }
 0x7c5   : > { %2160 = vmatpush1.bf16.msra.mxu0 %v2021_v48  ;;  %v5544_v48 = vld [vmem:[%s5844_s24 + $0x10] sm:$0xff]  }
 0x7c8   : > { %2078 = vrot.lane.b32.xlu1 %v2013_v14, %s7315_s2  ;;  %2080 = vrot.lane.b32.xlu0 %v2019_v43, %s7315_s2 }
 0x7cc   : > { %2053 = vrot.lane.b32.xlu1 %v2023_v59, %s7317_s11  ;;  %2066 = vrot.lane.b32.xlu0 %v2026_v15, %s7322_s15  ;;  %v5545_v59 = vld [vmem:[%s5844_s24 + $0x58] sm:$0xff]  }
 0x7cd   : > { %v5546_v15 = vld [vmem:[%s5844_s24 + $0x18] sm:$0xff]  }
 0x7d0   : > { %2089 = vrot.lane.b32.xlu0 %v2029_v19, %s7311_s16  ;;  %2055 = vrot.lane.b32.xlu1 %v2024_v20, %s7317_s11  ;;  %v5547_v19 = vld [vmem:[%s5844_s24 + $0x60] sm:$0xff]  }
 0x7d1   : > { %v5548_v20 = vld [vmem:[%s5844_s24 + $0x20] sm:$0xff]  }
 0x7d4   : > { %2057 = vrot.lane.b32.xlu0 %v2025_v24, %s7317_s11  ;;  %2070 = vrot.lane.b32.xlu1 %v2028_v25, %s7322_s15  ;;  %v5549_v24 = vld [vmem:[%s5844_s24 + $0x68] sm:$0xff]  }
 0x7d8   : > { %2068 = vrot.lane.b32.xlu0 %v2027_v27, %s7322_s15  ;;  %2102 = vrot.lane.b32.xlu1 %v2032_v28, %s7294_s26 }
 0x7dc   : > { %2114 = vrot.lane.b32.xlu0 %v2013_v14, %s7292_s28  ;;  %2093 = vrot.lane.b32.xlu1 %v2031_v33, %s7311_s16  ;;  %v5540_v14 = vld [vmem:[%s5844_s24] sm:$0xff]  }
 0x7dd   : > { %5254 = vmatpush3.bf16.msra.mxu1 %v5540_v14 }
 0x7de   : > { %5255 = vmatprep.subr.bf16.mxu1 %v5541_v37 }
 0x7e0   : > { %2091 = vrot.lane.b32.xlu0 %v2030_v34, %s7311_s16  ;;  %2104 = vrot.lane.b32.xlu1 %v2033_v35, %s7294_s26 }
 0x7e4   : > { %2106 = vrot.lane.b32.xlu0 %v2034_v42, %s7294_s26  ;;  %2116 = vrot.lane.b32.xlu1 %v2019_v43, %s7292_s28  ;;  %v5543_v43 = vld [vmem:[%s5844_s24 + $0x50] sm:$0xff]   ;;  %s7303_s26 = smov 118  }
 0x7e8   : > { %2112 = vrot.lane.b32.xlu0 %v2016_v8, %s7292_s28  ;;  %2127 = vrot.lane.b32.xlu1 %v2036_v44, %s7290_s22  ;;  %v5542_v8 = vld [vmem:[%s5844_s24 + $0x8] sm:$0xff]   ;;  %s7319_s28 = smov 119  }
 0x7e9   : > { %5256 = vmatpush3.bf16.msra.mxu1 %v5542_v8 }
 0x7ea   : > { %5257 = vmatprep.subr.bf16.mxu1 %v5543_v43 }
 0x7ec   : > { %2129 = vrot.lane.b32.xlu0 %v2037_v47, %s7290_s22  ;;  %2125 = vrot.lane.b32.xlu1 %v2035_v52, %s7290_s22  ;;  %s5775_s22 = smov 10  }
 0x7ed   : > { %5258 = vmatpush3.bf16.msra.mxu1 %v5544_v48 }
 0x7ee   : > { %5259 = vmatprep.subr.bf16.mxu1 %v5545_v59 }
 0x7f0   : > { %2139 = vperm.xlu0 %5524, %v2135_v53   ;;  %2144 = vperm.xlu1 %5525, %v2136_v1  }
 0x7f1   : > { %5260 = vmatpush3.bf16.msra.mxu1 %v5546_v15 }
 0x7f2   : > { %5261 = vmatprep.subr.bf16.mxu1 %v5547_v19 }
 0x7f5   : > { %5262 = vmatpush3.bf16.msra.mxu1 %v5548_v20 }
 0x7f6   : > { %5263 = vmatprep.subr.bf16.mxu1 %v5549_v24 }
 0x832   : > { %v2077_v25 = vpop.permute.xlu1 %2076  ;;  %v2041_v27 = vpop.permute.xlu0 %2040 }
 0x836   : > { %v2045_v28 = vpop.permute.xlu1 %2044  ;;  %v2043_v33 = vpop.permute.xlu0 %2042 }
 0x837   : > { %v2047_v34 = vsel %vm1376_vm13, %v2043_v33, %v2045_v28  ;;  %v2046_v35 = vsel %vm1376_vm13, %v2041_v27, %v2043_v33 }
 0x838   : > { %2161 = vmatprep.subr.bf16.mxu0 %v2047_v34 }
 0x839   : > { %2162 = vmatpush1.bf16.msra.mxu0 %v2046_v35 }
 0x83a   : > { %v2079_v41 = vpop.permute.xlu1 %2078  ;;  %v2081_v42 = vpop.permute.xlu0 %2080 }
 0x83b   : > { %v2083_v15 = vsel %vm1415_vm0, %v2079_v41, %v2081_v42  ;;  %v2082_v24 = vsel %vm1415_vm0, %v2077_v25, %v2079_v41 }
 0x83e   : > { %v2054_v44 = vpop.permute.xlu1 %2053  ;;  %v2067_v47 = vpop.permute.xlu0 %2066 }
 0x842   : > { %v2090_v52 = vpop.permute.xlu0 %2089  ;;  %v2056_v53 = vpop.permute.xlu1 %2055 }
 0x843   : > { %v2059_v37 = vsel %vm1390_vm14, %v2054_v44, %v2056_v53 }
 0x846   : > { %v2058_v1 = vpop.permute.xlu0 %2057  ;;  %v2071_v11 = vpop.permute.xlu1 %2070 }
 0x847   : > { %v2060_v14 = vsel %vm1390_vm14, %v2056_v53, %v2058_v1 }
 0x848   : > { %2163 = vmatprep.subr.bf16.mxu0 %v2060_v14 }
 0x849   : > { %2164 = vmatpush1.bf16.msra.mxu0 %v2059_v37 }
 0x84a   : > { %v2069_v8 = vpop.permute.xlu0 %2068  ;;  %v2103_v43 = vpop.permute.xlu1 %2102 }
 0x84b   : > { %v2073_v48 = vsel %vm1404_vm15, %v2069_v8, %v2071_v11  ;;  %v2072_v59 = vsel %vm1404_vm15, %v2067_v47, %v2069_v8  ;;  %v5538_v8 = vld [vmem:[%s5834_s14] ss:$8 sps:$4 sm:$0xff]  }
 0x84c   : > { %2165 = vmatprep.subr.bf16.mxu0 %v2073_v48  ;;  %v5551_v48 = vld [vmem:[%s5844_s24 + $0x70] sm:$0xff]  }
 0x84d   : > { %2166 = vmatpush1.bf16.msra.mxu0 %v2072_v59  ;;  %v5552_v59 = vld [vmem:[%s5844_s24 + $0x30] sm:$0xff]  }
 0x84e   : > { %v2115_v19 = vpop.permute.xlu0 %2114  ;;  %v2094_v20 = vpop.permute.xlu1 %2093  ;;  %2167 = vmatprep.subr.bf16.mxu0 %v2083_v15  ;;  %v5553_v15 = vld [vmem:[%s5844_s24 + $0x78] sm:$0xff]  }
 0x851   : > { %2168 = vmatpush1.bf16.msra.mxu0 %v2082_v24 }
 0x852   : > { %v2092_v27 = vpop.permute.xlu0 %2091  ;;  %v2105_v28 = vpop.permute.xlu1 %2104 }
 0x853   : > { %v2096_v33 = vsel %vm1429_vm1, %v2092_v27, %v2094_v20  ;;  %v2095_v34 = vsel %vm1429_vm1, %v2090_v52, %v2092_v27  ;;  %v2108_v42 = vsel %vm1443_vm2, %v2103_v43, %v2105_v28  ;;  %v5550_v43 = vld [vmem:[%s5844_s24 + $0x28] sm:$0xff]  }
 0x854   : > { %2169 = vmatprep.subr.bf16.mxu0 %v2096_v33  ;;  %5264 = vmatpush3.bf16.msra.mxu1 %v5550_v43 }
 0x855   : > { %2170 = vmatpush1.bf16.msra.mxu0 %v2095_v34  ;;  %5265 = vmatprep.subr.bf16.mxu1 %v5551_v48  ;;  %v2479_v48 = vand.u32 7, %v5989_v5 }
 0x856   : > { %v2107_v35 = vpop.permute.xlu0 %2106  ;;  %v2117_v44 = vpop.permute.xlu1 %2116 }
 0x857   : > { %v2109_v47 = vsel %vm1443_vm2, %v2105_v28, %v2107_v35  ;;  %v2119_v25 = vsel %vm1454_vm3, %v2115_v19, %v2117_v44  ;;  %v1774_v44 = vunpack.c.l.bf16 %v6237_v60  ;;  %vm2491_vm5 = vcmp.ne.s32.totalorder %v2479_v48, 7 }
 0x858   : > { %2171 = vmatprep.subr.bf16.mxu0 %v2109_v47  ;;  %5266 = vmatpush3.bf16.msra.mxu1 %v5552_v59  ;;  %v1776_v47 = vunpack.c.h.bf16 %v6237_v60  ;;  %v5171_v59 = vsel %vm2491_vm5, 1.0, %v5760_v12  ;;  %vm2487_vm6 = vcmp.ne.s32.totalorder %v2479_v48, 0  ;;  %vm3618_vm5 = vcmask 392192  }
 0x859   : > { %2172 = vmatpush1.bf16.msra.mxu0 %v2108_v42  ;;  %5267 = vmatprep.subr.bf16.mxu1 %v5553_v15  ;;  %v2494_v15 = vpack.c.bf16 %v5171_v59, %v5171_v59 }
 0x85a   : > { %v2113_v41 = vpop.permute.xlu0 %2112  ;;  %v2128_v53 = vpop.permute.xlu1 %2127  ;;  %2173 = vmatprep.subr.bf16.mxu0 %v2119_v25 }
 0x85b   : > { %v2118_v52 = vsel %vm1454_vm3, %v2113_v41, %v2115_v19  ;;  %v5554_v19 = vld [vmem:[%s5844_s24 + $0x38] sm:$0xff]   ;;  %v1775_v41 = vunpack.c.l.bf16 %v6239_v62  ;;  %2506 = vrot.lane.b32.xlu1 %v2494_v15, %s5761_s18  ;;  %s7301_s18 = smov 9  }
 0x85c   : > { %5268 = vmatpush3.bf16.msra.mxu1 %v5554_v19  ;;  %v5555_v19 = vld [vmem:[%s5869_s27] sm:$0xff]  }
 0x85d   : > { %2174 = vmatpush1.bf16.msra.mxu0 %v2118_v52 }
 0x85e   : > { %v2130_v1 = vpop.permute.xlu0 %2129  ;;  %v2126_v11 = vpop.permute.xlu1 %2125 }
 0x85f   : > { %v2131_v14 = vsel %vm1468_vm4, %v2126_v11, %v2128_v53  ;;  %v2132_v37 = vsel %vm1468_vm4, %v2128_v53, %v2130_v1  ;;  %v1777_v53 = vunpack.c.h.bf16 %v6239_v62  ;;  %2515 = vrot.lane.b32.xlu1 %v2494_v15, %s5775_s22  ;;  %s5777_s22 = smov 8  }
 0x860   : > { %2175 = vmatprep.subr.bf16.mxu0 %v2132_v37 }
 0x861   : > { %2176 = vmatpush1.bf16.msra.mxu0 %v2131_v14 }
 0x863   : > { %2523 = vrot.lane.b32.xlu1 %v2494_v15, %s5763_s23  ;;  %s7380_s23 = smov 16  }
 0x864   : > { %2192 = vmatmul.mubr.bf16.vlgmr.msra.gmra.mrb[8].mxu0 %v5538_v8 }
 0x865   : > { %5376 = vmatprep.mubr.msk.bf16.mxu0 %vm1324_vm9, %v5555_v19 }
 0x86f   : > { %v2140_v20 = vpop.permute.xlu0 %2139  ;;  %v2145_v33 = vpop.permute.xlu1 %2144 }
 0x937   : > { %v2193_v24 = vpop.f32.mrb[8].mxu0 }
 0x938   : > { %v2194_v27 = vadd.f32 %v2193_v24, %v2140_v20  ;;  %v2195_v28 = vpop.f32.mrb[9].mxu0 }
 0x939   : > { %v2196_v34 = vadd.f32 %v2195_v28, %v2140_v20  ;;  %v2197_v35 = vpop.f32.mrb[10].mxu0 }
 0x93a   : > { %v2198_v42 = vadd.f32 %v2197_v35, %v2145_v33  ;;  %v2199_v25 = vpop.f32.mrb[11].mxu0  ;;  %v2202_v1 = vadd.f32 %v2194_v27, %v1774_v44 }
 0x93b   : > { %v2200_v52 = vadd.f32 %v2199_v25, %v2145_v33  ;;  %v2203_v14 = vadd.f32 %v2196_v34, %v1775_v41  ;;  %v5170_v34 = vsel %vm2487_vm6, 1.0, %v5760_v12  ;;  %v6473_v12 = vpop.permute.xlu1 %2506 }
 0x93c   : > { %v2204_v11 = vadd.f32 %v2198_v42, %v1776_v47  ;;  %v6464_v44 = vpack.c.bf16 %v5170_v34, %v5170_v34  ;;  %v5556_v47 = vld [vmem:[%s5869_s27 + $0x8] sm:$0xff]  }
 0x93d   : > { %v2205_v37 = vadd.f32 %v2200_v52, %v1777_v53 }
 0x93e   : > { %v6451_v8 = vpack.c.bf16 %v2204_v11, %v2202_v1 }
 0x93f   : > { %v6453_v43 = vpack.c.bf16 %v2205_v37, %v2203_v14  ;;  %v6484_v14 = vpop.permute.xlu1 %2515 }
 0x941   : > { %2368 = vmatprep.mubr.bf16.mxu1 %v6453_v43 }
 0x942   : > { %2369 = vmatmul.mubr.bf16.vlgmr.msra.gmra.mrb[8].mxu1 %v6451_v8 }
 0x943   : > { %v6494_v15 = vpop.permute.xlu1 %2523 }
 0xa15   : > { %v5269_v20 = vpop.f32.mrb[8].mxu1 }
 0xa16   : > { %v5270_v24 = vpop.f32.mrb[9].mxu1 }
 0xa17   : > { %v5271_v27 = vadd.f32 %v5270_v24, %v5269_v20  ;;  %v5272_v28 = vpop.f32.mrb[10].mxu1  ;;  %v2557_v20 = vld [vmem:[%s7366_s6] sm:$0xff]  ;;  %v2558_v24 = vld [vmem:[%s7366_s6 + $0x8] sm:$0xff] }
 0xa18   : > { %v5273_v5 = vpop.f32.mrb[11].mxu1 }
 0xa19   : > { %v5274_v33 = vadd.f32 %v5273_v5, %v5272_v28  ;;  %v2560_v5 = vld [vmem:[%s7366_s6 + $0x18] sm:$0xff] }
 0xa1b   : > { %v2377_v35 = vpack.c.bf16 %v5274_v33, %v5271_v27  ;;  %v2559_v27 = vld [vmem:[%s7366_s6 + $0x10] sm:$0xff]  ;;  %s7402_s6 = smov 96  }
 0xa1d   : > { %2496 = vrot.lane.b32.xlu0 %v2377_v35, %s7301_s18  ;;  %5374 = vmatprep.subr.bf16.mxu0 %v2377_v35 }
 0xa1e   : > { %5375 = vmatpush3.bf16.msra.mxu0 %v2377_v35 }
 0xa1f   : > { %2605 = vmatprep.subr.bf16.mxu0 %v7296_v2 }
 0xa21   : > { %2511 = vrot.lane.b32.xlu0 %v6464_v44, %s5777_s22  ;;  %5377 = vmatmul.mubr.msk.bf16.vlgmr.msra.gmra.mrb[12].mxu0 %vm1324_vm9, %v5556_v47  ;;  %s7313_s22 = smov 120  }
 0xa25   : > { %2519 = vrot.lane.b32.xlu0 %v6464_v44, %s7380_s23  ;;  %s7381_s23 = sld [smem:[#allocation7_spill]] }
 0xa2b   : > { %v5557_v28 = vld [vmem:[%s7381_s23 + $0x4] ss:$8 sps:$4 sm:$0xff]  }
 0xa2c   : > { %5176 = vmatprep.mubr.msk.bf16.mxu0 %vm1324_vm9, %v5557_v28 }
 0xa8f   : > { %v2497_v42 = vpop.permute.xlu0 %2496 }
 0xa90   : > { %v2500_v25 = vsel %vm2498_vm8, 0, %v2497_v42 }
 0xa91   : > { %v2502_v41 = vsel %vm2501_vm10, %v2500_v25, 0 }
 0xa92   : > { %2528 = vrot.lane.b32.xlu0 %v2502_v41, %s7324_s0  ;;  %v2509_v53 = vmul.bf16 %v6473_v12, %v2502_v41  ;;  %v2504_v52 = vmul.bf16 %v2502_v41, %v6464_v44  ;;  %v2518_v48 = vmul.bf16 %v6484_v14, %v2502_v41  ;;  %v2526_v19 = vmul.bf16 %v6494_v15, %v2502_v41 }
 0xa93   : > { %v6480_v1 = vpop.permute.xlu0 %2511 }
 0xa94   : > { %2532 = vrot.lane.b32.xlu1 %v2509_v53, %s7317_s11  ;;  %2606 = vmatpush1.bf16.msra.mxu0 %v2504_v52  ;;  %v2514_v11 = vmul.bf16 %v6480_v1, %v2502_v41  ;;  %v5559_v52 = vld [vmem:[%s7381_s23] ss:$8 sps:$4 sm:$0xff]  }
 0xa95   : > { %2607 = vmatprep.subr.bf16.mxu0 %v7296_v2 }
 0xa96   : > { %2536 = vrot.lane.b32.xlu0 %v2514_v11, %s7313_s22  ;;  %v5560_v11 = vld [vmem:[%s7381_s23 + $0x14] ss:$8 sps:$4 sm:$0xff]  }
 0xa97   : > { %v6488_v37 = vpop.permute.xlu0 %2519 }
 0xa98   : > { %2539 = vrot.lane.b32.xlu1 %v2502_v41, %s7319_s28  ;;  %v2522_v59 = vmul.bf16 %v6488_v37, %v2502_v41 }
 0xa9a   : > { %2543 = vrot.lane.b32.xlu0 %v2518_v48, %s7303_s26  ;;  %v5562_v48 = vld [vmem:[%s7381_s23 + $0x10] ss:$8 sps:$4 sm:$0xff]  }
 0xa9c   : > { %2547 = vrot.lane.b32.xlu1 %v2522_v59, %s7322_s15 }
 0xa9e   : > { %2550 = vrot.lane.b32.xlu0 %v2502_v41, %s7315_s2 }
 0xaa0   : > { %2554 = vrot.lane.b32.xlu1 %v2526_v19, %s7311_s16 }
 0xaa2   : > { %2563 = vperm.xlu0 %5524, %v2557_v20  }
 0xaa4   : > { %2568 = vperm.xlu1 %5525, %v2558_v24  }
 0xaa6   : > { %2573 = vperm.xlu0 %5524, %v2559_v27  }
 0xaa8   : > { %2578 = vperm.xlu1 %5525, %v2560_v5  }
 0xb04   : > { %v2529_v33 = vpop.permute.xlu0 %2528 }
 0xb05   : > { %2608 = vmatpush1.bf16.msra.mxu0 %v2529_v33 }
 0xb06   : > { %2609 = vmatprep.subr.bf16.mxu0 %v7296_v2  ;;  %v2533_v34 = vpop.permute.xlu1 %2532 }
 0xb08   : > { %v2537_v35 = vpop.permute.xlu0 %2536 }
 0xb09   : > { %2610 = vmatpush1.bf16.msra.mxu0 %v2533_v34 }
 0xb0a   : > { %2611 = vmatprep.subr.bf16.mxu0 %v7296_v2  ;;  %v2540_v47 = vpop.permute.xlu1 %2539 }
 0xb0c   : > { %v2544_v42 = vpop.permute.xlu0 %2543 }
 0xb0d   : > { %2612 = vmatpush1.bf16.msra.mxu0 %v2537_v35 }
 0xb0e   : > { %2613 = vmatprep.subr.bf16.mxu0 %v7296_v2  ;;  %v2548_v25 = vpop.permute.xlu1 %2547 }
 0xb10   : > { %v2551_v41 = vpop.permute.xlu0 %2550 }
 0xb11   : > { %2614 = vmatpush1.bf16.msra.mxu0 %v2540_v47 }
 0xb12   : > { %2615 = vmatprep.subr.bf16.mxu0 %v7296_v2  ;;  %v2555_v53 = vpop.permute.xlu1 %2554 }
 0xb15   : > { %2616 = vmatpush1.bf16.msra.mxu0 %v2544_v42 }
 0xb16   : > { %2617 = vmatprep.subr.bf16.mxu0 %v7296_v2 }
 0xb19   : > { %2618 = vmatpush1.bf16.msra.mxu0 %v2548_v25 }
 0xb1a   : > { %2619 = vmatprep.subr.bf16.mxu0 %v7296_v2 }
 0xb1d   : > { %2620 = vmatpush1.bf16.msra.mxu0 %v2551_v41 }
 0xb1e   : > { %2621 = vmatprep.subr.bf16.mxu0 %v7296_v2 }
 0xb21   : > { %2622 = vmatpush1.bf16.msra.mxu0 %v2555_v53  ;;  %v2564_v59 = vpop.permute.xlu0 %2563 }
 0xb23   : > { %v2569_v27 = vpop.permute.xlu1 %2568 }
 0xb24   : > { %2638 = vmatmul.mubr.bf16.vlgmr.msra.gmra.mrb[16].mxu0 %v5559_v52 }
 0xb25   : > { %5177 = vmatprep.mubr.msk.bf16.mxu0 %vm1324_vm9, %v5560_v11  ;;  %v2574_v47 = vpop.permute.xlu0 %2573 }
 0xb27   : > { %v2579_v53 = vpop.permute.xlu1 %2578 }
 0xb2c   : > { %2646 = vmatmul.mubr.bf16.gmra.mrb[20].mxu0 %v5562_v48 }
 0xbf7   : > { %v2639_v19 = vpop.f32.mrb[16].mxu0 }
 0xbf8   : > { %v2640_v20 = vadd.f32 %v2639_v19, %v2564_v59  ;;  %v2641_v24 = vpop.f32.mrb[17].mxu0 }
 0xbf9   : > { %v2642_v28 = vpop.f32.mrb[18].mxu0 }
 0xbfa   : > { %v5178_v5 = vmul.f32 -1.442695, %v2640_v20  ;;  %v2643_v33 = vadd.f32 %v2642_v28, %v2569_v27  ;;  %v2644_v34 = vpop.f32.mrb[19].mxu0 }
 0xbfc   : > { %5649 = vpow2.f32 %v5178_v5  ;;  %v5179_v35 = vmul.f32 -1.442695, %v2643_v33 }
 0xbfe   : > { %5651 = vpow2.f32 %v5179_v35 }
 0xbff   : > { %v2647_v42 = vpop.f32.mrb[20].mxu0 }
 0xc00   : > { %v2648_v25 = vadd.f32 %v2647_v42, %v2574_v47  ;;  %v2649_v41 = vpop.f32.mrb[21].mxu0 }
 0xc01   : > { %v2650_v52 = vpop.f32.mrb[22].mxu0 }
 0xc02   : > { %v5180_v11 = vmul.f32 -1.442695, %v2648_v25  ;;  %v2651_v48 = vadd.f32 %v2650_v52, %v2579_v53  ;;  %v2652_v2 = vpop.f32.mrb[23].mxu0 }
 0xc04   : > { %5653 = vpow2.f32 %v5180_v11  ;;  %v5181_v59 = vmul.f32 -1.442695, %v2651_v48 }
 0xc06   : > { %v5650_v19 = vpop.eup %5649  ;;  %5655 = vpow2.f32 %v5181_v59 }
 0xc07   : > { %v2666_v24 = vadd.f32 1.0, %v5650_v19 }
 0xc08   : > { %v5652_v29 = vpop.eup %5651 }
 0xc09   : > { %5657 = vrcp.f32 %v2666_v24  ;;  %v2667_v27 = vadd.f32 1.0, %v5652_v29 }
 0xc0b   : > { %5659 = vrcp.f32 %v2667_v27 }
 0xc0e   : > { %v5654_v28 = vpop.eup %5653 }
 0xc0f   : > { %v2668_v5 = vadd.f32 1.0, %v5654_v28 }
 0xc10   : > { %v5656_v34 = vpop.eup %5655 }
 0xc11   : > { %5661 = vrcp.f32 %v2668_v5  ;;  %v2669_v35 = vadd.f32 1.0, %v5656_v34 }
 0xc13   : > { %v5658_v47 = vpop.eup %5657  ;;  %5663 = vrcp.f32 %v2669_v35 }
 0xc14   : > { %v2678_v41 = vmul.f32 %v5658_v47, %v2640_v20 }
 0xc15   : > { %v5660_v42 = vpop.eup %5659 }
 0xc16   : > { %v2679_v53 = vmul.f32 %v5660_v42, %v2643_v33  ;;  %v5565_v42 = vld [vmem:[%s7382_s1 + $0x4] ss:$12 sps:$4 sm:$0xff]  }
 0xc17   : > { %2871 = vmatprep.mubr.bf16.mxu1 %v5565_v42 }
 0xc18   : > { %v2682_v2 = vpack.c.bf16 %v2679_v53, %v2678_v41  ;;  %v5566_v53 = vld [vmem:[%s7382_s1 + $0x8] ss:$12 sps:$4 sm:$0xff]  }
 0xc19   : > { %5384 = vmatprep.mubr.msk.bf16.mxu0 %vm1348_vm11, %v5566_v53 }
 0xc1a   : > { %2694 = vrot.lane.b32.xlu0 %v2682_v2, %s7301_s18 }
 0xc1b   : > { %v5662_v52 = vpop.eup %5661 }
 0xc1c   : > { %v2680_v59 = vmul.f32 %v5662_v52, %v2648_v25 }
 0xc1d   : > { %v5664_v11 = vpop.eup %5663 }
 0xc1e   : > { %v2681_v19 = vmul.f32 %v5664_v11, %v2651_v48 }
 0xc20   : > { %v2683_v24 = vpack.c.bf16 %v2681_v19, %v2680_v59 }
 0xc22   : > { %2696 = vrot.lane.b32.xlu1 %v2683_v24, %s7301_s18  ;;  %s7383_s18 = sld [smem:[#allocation10_spill]] }
 0xc28   : > { %v2778_v59 = vld [vmem:[%s7383_s18] sm:$0xff] }
 0xc8c   : > { %v2695_v29 = vpop.permute.xlu0 %2694 }
 0xc8d   : > { %v2699_v27 = vsel %vm2498_vm8, 0, %v2695_v29  ;;  %v2779_v29 = vld [vmem:[%s7383_s18 + $0x8] sm:$0xff] }
 0xc8e   : > { %v2702_v28 = vsel %vm2501_vm10, %v2699_v27, 0  ;;  %v2780_v27 = vld [vmem:[%s7383_s18 + $0x10] sm:$0xff] }
 0xc8f   : > { %2742 = vrot.lane.b32.xlu0 %v2702_v28, %s7319_s28  ;;  %v2712_v20 = vmul.bf16 %v2702_v28, %v6484_v14  ;;  %v2714_v34 = vmul.bf16 %v2702_v28, %v6488_v37  ;;  %v2708_v47 = vmul.bf16 %v2702_v28, %v6473_v12  ;;  %v2710_v2 = vmul.bf16 %v2702_v28, %v6480_v1 }
 0xc90   : > { %v2716_v52 = vmul.bf16 %v2702_v28, %v6494_v15 }
 0xc93   : > { %2750 = vrot.lane.b32.xlu0 %v2712_v20, %s7303_s26 }
 0xc94   : > { %v2697_v33 = vpop.permute.xlu1 %2696 }
 0xc95   : > { %v2701_v5 = vsel %vm2498_vm8, 0, %v2697_v33 }
 0xc96   : > { %v2704_v25 = vsel %vm2501_vm10, %v2701_v5, 0  ;;  %v2781_v5 = vld [vmem:[%s7383_s18 + $0x18] sm:$0xff] }
 0xc97   : > { %2744 = vrot.lane.b32.xlu1 %v2704_v25, %s7319_s28  ;;  %v2713_v48 = vmul.bf16 %v2704_v25, %v6484_v14  ;;  %v2715_v35 = vmul.bf16 %v2704_v25, %v6488_v37  ;;  %v2709_v41 = vmul.bf16 %v2704_v25, %v6473_v12  ;;  %v2711_v11 = vmul.bf16 %v2704_v25, %v6480_v1 }
 0xc98   : > { %v2717_v19 = vmul.bf16 %v2704_v25, %v6494_v15 }
 0xc99   : > { %2752 = vrot.lane.b32.xlu0 %v2713_v48, %s7303_s26  ;;  %s7384_s26 = sld [smem:[#allocation11_spill]] }
 0xc9b   : > { %2720 = vrot.lane.b32.xlu1 %v2702_v28, %s7324_s0 }
 0xc9d   : > { %2758 = vrot.lane.b32.xlu0 %v2714_v34, %s7322_s15 }
 0xc9f   : > { %2722 = vrot.lane.b32.xlu1 %v2704_v25, %s7324_s0  ;;  %v2382_v24 = vld [vmem:[%s7384_s26] sm:$0xff]  ;;  %v2383_v20 = vld [vmem:[%s7384_s26 + $0x8] sm:$0xff]  ;;  %v2384_v33 = vld [vmem:[%s7384_s26 + $0x10] sm:$0xff] }
 0xca0   : > { %v2385_v48 = vld [vmem:[%s7384_s26 + $0x18] sm:$0xff] }
 0xca1   : > { %2760 = vrot.lane.b32.xlu0 %v2715_v35, %s7322_s15  ;;  %v2706_v35 = vmul.bf16 %v2702_v28, %v6464_v44 }
 0xca3   : > { %2728 = vrot.lane.b32.xlu1 %v2708_v47, %s7317_s11 }
 0xca5   : > { %2764 = vrot.lane.b32.xlu0 %v2702_v28, %s7315_s2 }
 0xca7   : > { %2730 = vrot.lane.b32.xlu1 %v2709_v41, %s7317_s11  ;;  %v2707_v41 = vmul.bf16 %v2704_v25, %v6464_v44  ;;  %s7388_s11 = sld [smem:[#allocation13_spill]] }
 0xca9   : > { %2766 = vrot.lane.b32.xlu0 %v2704_v25, %s7315_s2  ;;  %s7387_s2 = sld [smem:[#allocation12_spill]] }
 0xcab   : > { %2736 = vrot.lane.b32.xlu1 %v2710_v2, %s7313_s22 }
 0xcad   : > { %2772 = vrot.lane.b32.xlu0 %v2716_v52, %s7311_s16 }
 0xcaf   : > { %2738 = vrot.lane.b32.xlu1 %v2711_v11, %s7313_s22  ;;  %s7386_s22 = smov 118  }
 0xcb1   : > { %2784 = vperm.xlu0 %5524, %v2778_v59  }
 0xcb3   : > { %2774 = vrot.lane.b32.xlu1 %v2717_v19, %s7311_s16  ;;  %s7385_s16 = smov 9  }
 0xcb5   : > { %2388 = vperm.xlu0 %5524, %v2382_v24  }
 0xcb7   : > { %2789 = vperm.xlu1 %5525, %v2779_v29  }
 0xcb9   : > { %2794 = vperm.xlu0 %5524, %v2780_v27  }
 0xcbb   : > { %2393 = vperm.xlu1 %5525, %v2383_v20  }
 0xcbd   : > { %2398 = vperm.xlu0 %5524, %v2384_v33   ;;  %v5563_v33 = vld [vmem:[%s7382_s1] ss:$12 sps:$4 sm:$0xff]  }
 0xcbf   : > { %2799 = vperm.xlu1 %5525, %v2781_v5   ;;  %v5568_v5 = vld [vmem:[%s7382_s1 + $0x1c] ss:$12 sps:$4 sm:$0xff]  }
 0xcc3   : > { %2403 = vperm.xlu1 %5525, %v2385_v48  }
 0xd01   : > { %v2743_v34 = vpop.permute.xlu0 %2742 }
 0xd02   : > { %5278 = vmatprep.subr.bf16.mxu1 %v2743_v34  ;;  %v5567_v34 = vld [vmem:[%s7382_s1 + $0x20] ss:$12 sps:$4 sm:$0xff]  }
 0xd03   : > { %5279 = vmatpush3.bf16.msra.mxu1 %v2706_v35  ;;  %v5570_v35 = vld [vmem:[%s7382_s1 + $0x18] ss:$12 sps:$4 sm:$0xff]   ;;  %s7390_s1 = smov 111  }
 0xd05   : > { %v2751_v47 = vpop.permute.xlu0 %2750 }
 0xd09   : > { %v2745_v42 = vpop.permute.xlu1 %2744 }
 0xd0a   : > { %5280 = vmatprep.subr.bf16.mxu1 %v2745_v42 }
 0xd0b   : > { %v2753_v53 = vpop.permute.xlu0 %2752  ;;  %5281 = vmatpush3.bf16.msra.mxu1 %v2707_v41 }
 0xd0c   : > { %5282 = vmatprep.subr.bf16.mxu1 %v2751_v47 }
 0xd0d   : > { %v2721_v2 = vpop.permute.xlu1 %2720 }
 0xd0f   : > { %v2759_v52 = vpop.permute.xlu0 %2758  ;;  %5283 = vmatpush3.bf16.msra.mxu1 %v2721_v2 }
 0xd10   : > { %5284 = vmatprep.subr.bf16.mxu1 %v2753_v53 }
 0xd11   : > { %v2723_v11 = vpop.permute.xlu1 %2722 }
 0xd13   : > { %v2761_v59 = vpop.permute.xlu0 %2760  ;;  %5285 = vmatpush3.bf16.msra.mxu1 %v2723_v11 }
 0xd14   : > { %5286 = vmatprep.subr.bf16.mxu1 %v2759_v52 }
 0xd15   : > { %v2729_v28 = vpop.permute.xlu1 %2728 }
 0xd17   : > { %v2765_v19 = vpop.permute.xlu0 %2764  ;;  %5287 = vmatpush3.bf16.msra.mxu1 %v2729_v28 }
 0xd18   : > { %5288 = vmatprep.subr.bf16.mxu1 %v2761_v59 }
 0xd19   : > { %v2731_v24 = vpop.permute.xlu1 %2730 }
 0xd1b   : > { %v2767_v25 = vpop.permute.xlu0 %2766  ;;  %5289 = vmatpush3.bf16.msra.mxu1 %v2731_v24 }
 0xd1c   : > { %5290 = vmatprep.subr.bf16.mxu1 %v2765_v19 }
 0xd1d   : > { %v2737_v29 = vpop.permute.xlu1 %2736 }
 0xd1f   : > { %v2773_v27 = vpop.permute.xlu0 %2772  ;;  %5291 = vmatpush3.bf16.msra.mxu1 %v2737_v29 }
 0xd20   : > { %5292 = vmatprep.subr.bf16.mxu1 %v2767_v25  ;;  %5380 = vmatprep.subr.bf16.mxu0 %v2773_v27 }
 0xd21   : > { %5381 = vmatpush3.bf16.msra.mxu0 %v2773_v27  ;;  %v2739_v20 = vpop.permute.xlu1 %2738 }
 0xd23   : > { %5293 = vmatpush3.bf16.msra.mxu1 %v2739_v20 }
 0xd25   : > { %v2775_v48 = vpop.permute.xlu1 %2774 }
 0xd26   : > { %2872 = vmatmul.mubr.bf16.vlgmr.msra.gmra.mrb[12].mxu1 %v5563_v33  ;;  %5382 = vmatprep.subr.bf16.mxu0 %v2775_v48 }
 0xd27   : > { %5383 = vmatpush3.bf16.msra.mxu0 %v2775_v48  ;;  %2879 = vmatprep.mubr.bf16.mxu1 %v5568_v5 }
 0xd2a   : > { %5385 = vmatmul.mubr.msk.bf16.vlgmr.msra.gmra.mrb[12].mxu0 %vm1348_vm11, %v5567_v34 }
 0xd2e   : > { %2880 = vmatmul.mubr.bf16.gmra.mrb[16].mxu1 %v5570_v35 }
 0xd30   : > { %v2785_v47 = vpop.permute.xlu0 %2784 }
 0xd34   : > { %v2389_v53 = vpop.permute.xlu0 %2388 }
 0xd36   : > { %v2790_v42 = vpop.permute.xlu1 %2789 }
 0xd38   : > { %v2795_v5 = vpop.permute.xlu0 %2794 }
 0xd3a   : > { %v2394_v59 = vpop.permute.xlu1 %2393 }
 0xd3e   : > { %v2800_v26 = vpop.permute.xlu1 %2799 }
 0xdf9   : > { %v5294_v41 = vpop.f32.mrb[12].mxu1 }
 0xdfa   : > { %v5295_v2 = vpop.f32.mrb[13].mxu1 }
 0xdfb   : > { %v5296_v52 = vadd.f32 %v5295_v2, %v5294_v41  ;;  %v5297_v11 = vpop.f32.mrb[14].mxu1 }
 0xdfc   : > { %v5298_v28 = vpop.f32.mrb[15].mxu1 }
 0xdfd   : > { %v2874_v19 = vadd.f32 %v5296_v52, %v2785_v47  ;;  %v5299_v24 = vadd.f32 %v5298_v28, %v5297_v11  ;;  %v5386_v25 = vpop.f32.mrb[12].mxu0  ;;  %v2399_v11 = vpop.permute.xlu0 %2398 }
 0xdfe   : > { %v2922_v29 = vpop.f32.mrb[13].mxu0 }
 0xdff   : > { %v2877_v27 = vadd.f32 %v5299_v24, %v2790_v42  ;;  %v5406_v20 = vadd.f32 %v2874_v19, %v2389_v53  ;;  %v5387_v33 = vpop.f32.mrb[14].mxu0  ;;  %v2404_v53 = vpop.permute.xlu1 %2403 }
 0xe00   : > { %v2925_v48 = vpop.f32.mrb[15].mxu0 }
 0xe01   : > { %v5407_v34 = vadd.f32 %v5406_v20, %v2922_v29  ;;  %v5410_v35 = vadd.f32 %v2877_v27, %v2394_v59  ;;  %v5300_v30 = vpop.f32.mrb[16].mxu1 }
 0xe02   : > { %v5301_v23 = vpop.f32.mrb[17].mxu1 }
 0xe03   : > { %v5411_v22 = vadd.f32 %v5410_v35, %v2925_v48  ;;  %v5302_v21 = vadd.f32 %v5301_v23, %v5300_v30  ;;  %v5303_v41 = vpop.f32.mrb[18].mxu1 }
 0xe04   : > { %v5304_v2 = vpop.f32.mrb[19].mxu1 }
 0xe05   : > { %v6567_v17 = vpack.c.bf16 %v5411_v22, %v5407_v34  ;;  %v2882_v47 = vadd.f32 %v5302_v21, %v2795_v5  ;;  %v5305_v52 = vadd.f32 %v5304_v2, %v5303_v41  ;;  %v5573_v34 = vld [vmem:[%s7387_s2 + $0x4] ss:$12 sps:$4 sm:$0xff]  }
 0xe06   : > { %3133 = vmatprep.mubr.bf16.mxu0 %v5573_v34 }
 0xe07   : > { %v5404_v28 = vadd.f32 %v2882_v47, %v2399_v11  ;;  %v2885_v42 = vadd.f32 %v5305_v52, %v2800_v26  ;;  %2957 = vrot.lane.b32.xlu0 %v6567_v17, %s7385_s16  ;;  %v3041_v52 = vld [vmem:[%s7388_s11] sm:$0xff] }
 0xe09   : > { %v5405_v19 = vadd.f32 %v5404_v28, %v5386_v25  ;;  %v5408_v59 = vadd.f32 %v2885_v42, %v2404_v53  ;;  %v3043_v28 = vld [vmem:[%s7388_s11 + $0x10] sm:$0xff]  ;;  %v3042_v42 = vld [vmem:[%s7388_s11 + $0x8] sm:$0xff]  ;;  %v3044_v53 = vld [vmem:[%s7388_s11 + $0x18] sm:$0xff]  ;;  %s7405_s11 = sld [smem:[#allocation18_spill]] }
 0xe0b   : > { %v5409_v24 = vadd.f32 %v5408_v59, %v5387_v33 }
 0xe0d   : > { %v6571_v29 = vpack.c.bf16 %v5409_v24, %v5405_v19 }
 0xe0f   : > { %2959 = vrot.lane.b32.xlu1 %v6571_v29, %s7385_s16 }
 0xe79   : > { %v2958_v23 = vpop.permute.xlu0 %2957 }
 0xe7a   : > { %v2962_v22 = vsel %vm2498_vm8, 0, %v2958_v23 }
 0xe7b   : > { %v2965_v21 = vsel %vm2501_vm10, %v2962_v22, 0 }
 0xe7c   : > { %3005 = vrot.lane.b32.xlu0 %v2965_v21, %s7319_s28  ;;  %v2975_v26 = vmul.bf16 %v2965_v21, %v6484_v14  ;;  %v2977_v33 = vmul.bf16 %v2965_v21, %v6488_v37  ;;  %v2971_v48 = vmul.bf16 %v2965_v21, %v6473_v12  ;;  %v2973_v41 = vmul.bf16 %v2965_v21, %v6480_v1 }
 0xe7d   : > { %v2979_v2 = vmul.bf16 %v2965_v21, %v6494_v15  ;;  %v2969_v59 = vmul.bf16 %v2965_v21, %v6464_v44 }
 0xe80   : > { %3013 = vrot.lane.b32.xlu0 %v2975_v26, %s7386_s22 }
 0xe81   : > { %v2960_v30 = vpop.permute.xlu1 %2959 }
 0xe82   : > { %v2964_v25 = vsel %vm2498_vm8, 0, %v2960_v30 }
 0xe83   : > { %v2967_v27 = vsel %vm2501_vm10, %v2964_v25, 0 }
 0xe84   : > { %3007 = vrot.lane.b32.xlu1 %v2967_v27, %s7319_s28  ;;  %v2976_v20 = vmul.bf16 %v2967_v27, %v6484_v14  ;;  %v2978_v5 = vmul.bf16 %v2967_v27, %v6488_v37  ;;  %s7389_s28 = smov 126   ;;  %v2972_v35 = vmul.bf16 %v2967_v27, %v6473_v12  ;;  %v2974_v47 = vmul.bf16 %v2967_v27, %v6480_v1 }
 0xe85   : > { %v2980_v11 = vmul.bf16 %v2967_v27, %v6494_v15  ;;  %v2970_v22 = vmul.bf16 %v2967_v27, %v6464_v44 }
 0xe86   : > { %3015 = vrot.lane.b32.xlu0 %v2976_v20, %s7386_s22 }
 0xe88   : > { %2983 = vrot.lane.b32.xlu1 %v2965_v21, %s7324_s0 }
 0xe8a   : > { %3021 = vrot.lane.b32.xlu0 %v2977_v33, %s7322_s15 }
 0xe8c   : > { %2985 = vrot.lane.b32.xlu1 %v2967_v27, %s7324_s0  ;;  %s7392_s0 = smov 110  }
 0xe8e   : > { %3023 = vrot.lane.b32.xlu0 %v2978_v5, %s7322_s15  ;;  %s7391_s15 = smov 120  }
 0xe90   : > { %2991 = vrot.lane.b32.xlu1 %v2971_v48, %s7389_s28 }
 0xe92   : > { %3027 = vrot.lane.b32.xlu0 %v2965_v21, %s7390_s1 }
 0xe94   : > { %2993 = vrot.lane.b32.xlu1 %v2972_v35, %s7389_s28 }
 0xe96   : > { %3029 = vrot.lane.b32.xlu0 %v2967_v27, %s7390_s1 }
 0xe98   : > { %2999 = vrot.lane.b32.xlu1 %v2973_v41, %s7391_s15  ;;  %v5571_v41 = vld [vmem:[%s7387_s2] ss:$12 sps:$4 sm:$0xff]  }
 0xe9a   : > { %3035 = vrot.lane.b32.xlu0 %v2979_v2, %s7392_s0 }
 0xe9c   : > { %3001 = vrot.lane.b32.xlu1 %v2974_v47, %s7391_s15  ;;  %v5574_v47 = vld [vmem:[%s7387_s2 + $0x1c] ss:$12 sps:$4 sm:$0xff]  }
 0xe9e   : > { %3047 = vperm.xlu0 %5524, %v3041_v52  }
 0xea0   : > { %3037 = vrot.lane.b32.xlu1 %v2980_v11, %s7392_s0  ;;  %v5576_v11 = vld [vmem:[%s7387_s2 + $0x18] ss:$12 sps:$4 sm:$0xff]  }
 0xea2   : > { %3057 = vperm.xlu0 %5524, %v3043_v28   ;;  %v5577_v28 = vld [vmem:[%s7387_s2 + $0x8] ss:$12 sps:$4 sm:$0xff]  }
 0xea4   : > { %3052 = vperm.xlu1 %5525, %v3042_v42   ;;  %v5578_v42 = vld [vmem:[%s7387_s2 + $0x20] ss:$12 sps:$4 sm:$0xff]   ;;  %s7393_s2 = smov 119  }
 0xea8   : > { %3062 = vperm.xlu1 %5525, %v3044_v53  }
 0xeee   : > { %v3006_v19 = vpop.permute.xlu0 %3005 }
 0xeef   : > { %5310 = vmatprep.subr.bf16.mxu0 %v3006_v19 }
 0xef0   : > { %5311 = vmatpush3.bf16.msra.mxu0 %v2969_v59 }
 0xef2   : > { %v3014_v24 = vpop.permute.xlu0 %3013 }
 0xef6   : > { %v3008_v23 = vpop.permute.xlu1 %3007 }
 0xef7   : > { %5312 = vmatprep.subr.bf16.mxu0 %v3008_v23 }
 0xef8   : > { %v3016_v26 = vpop.permute.xlu0 %3015  ;;  %5313 = vmatpush3.bf16.msra.mxu0 %v2970_v22 }
 0xef9   : > { %5314 = vmatprep.subr.bf16.mxu0 %v3014_v24 }
 0xefa   : > { %v2984_v30 = vpop.permute.xlu1 %2983 }
 0xefc   : > { %v3022_v25 = vpop.permute.xlu0 %3021  ;;  %5315 = vmatpush3.bf16.msra.mxu0 %v2984_v30 }
 0xefd   : > { %5316 = vmatprep.subr.bf16.mxu0 %v3016_v26 }
 0xefe   : > { %v2986_v20 = vpop.permute.xlu1 %2985 }
 0xf00   : > { %v3024_v33 = vpop.permute.xlu0 %3023  ;;  %5317 = vmatpush3.bf16.msra.mxu0 %v2986_v20 }
 0xf01   : > { %5318 = vmatprep.subr.bf16.mxu0 %v3022_v25 }
 0xf02   : > { %v2992_v21 = vpop.permute.xlu1 %2991 }
 0xf04   : > { %v3028_v5 = vpop.permute.xlu0 %3027  ;;  %5319 = vmatpush3.bf16.msra.mxu0 %v2992_v21 }
 0xf05   : > { %5320 = vmatprep.subr.bf16.mxu0 %v3024_v33 }
 0xf06   : > { %v2994_v48 = vpop.permute.xlu1 %2993 }
 0xf08   : > { %5321 = vmatpush3.bf16.msra.mxu0 %v2994_v48  ;;  %v3030_v27 = vpop.permute.xlu0 %3029 }
 0xf09   : > { %5322 = vmatprep.subr.bf16.mxu0 %v3028_v5 }
 0xf0a   : > { %v3000_v34 = vpop.permute.xlu1 %2999 }
 0xf0c   : > { %5323 = vmatpush3.bf16.msra.mxu0 %v3000_v34  ;;  %v3036_v2 = vpop.permute.xlu0 %3035 }
 0xf0d   : > { %5324 = vmatprep.subr.bf16.mxu0 %v3030_v27 }
 0xf0e   : > { %v3002_v35 = vpop.permute.xlu1 %3001 }
 0xf10   : > { %5325 = vmatpush3.bf16.msra.mxu0 %v3002_v35 }
 0xf11   : > { %5388 = vmatprep.subr.bf16.mxu0 %v3036_v2 }
 0xf12   : > { %v3038_v52 = vpop.permute.xlu1 %3037 }
 0xf13   : > { %3134 = vmatmul.mubr.bf16.vlgmr.msra.gmra.mrb[24].mxu0 %v5571_v41 }
 0xf14   : > { %5389 = vmatpush3.bf16.msra.mxu0 %v3036_v2  ;;  %3141 = vmatprep.mubr.bf16.mxu0 %v5574_v47 }
 0xf15   : > { %5390 = vmatprep.subr.bf16.mxu0 %v3038_v52 }
 0xf18   : > { %5391 = vmatpush3.bf16.msra.mxu0 %v3038_v52 }
 0xf1b   : > { %3142 = vmatmul.mubr.bf16.gmra.mrb[28].mxu0 %v5576_v11 }
 0xf1c   : > { %5392 = vmatprep.mubr.msk.bf16.mxu0 %vm1348_vm11, %v5577_v28 }
 0xf1d   : > { %v3048_v26 = vpop.permute.xlu0 %3047 }
 0xf21   : > { %v3058_v27 = vpop.permute.xlu0 %3057 }
 0xf23   : > { %5393 = vmatmul.mubr.msk.bf16.vlgmr.msra.gmra.mrb[32].mxu0 %vm1348_vm11, %v5578_v42  ;;  %v3053_v20 = vpop.permute.xlu1 %3052 }
 0xf27   : > { %v3063_v35 = vpop.permute.xlu1 %3062 }
 0xfe6   : > { %v5326_v53 = vpop.f32.mrb[24].mxu0 }
 0xfe7   : > { %v5327_v19 = vpop.f32.mrb[25].mxu0 }
 0xfe8   : > { %v5328_v59 = vadd.f32 %v5327_v19, %v5326_v53  ;;  %v5329_v24 = vpop.f32.mrb[26].mxu0 }
 0xfe9   : > { %v5330_v23 = vpop.f32.mrb[27].mxu0 }
 0xfea   : > { %v5331_v22 = vadd.f32 %v5330_v23, %v5329_v24  ;;  %v3136_v2 = vadd.f32 %v5328_v59, %v3048_v26 }
 0xfec   : > { %v3139_v53 = vadd.f32 %v5331_v22, %v3053_v20 }
 0xfee   : > { %v5332_v30 = vpop.f32.mrb[28].mxu0 }
 0xfef   : > { %v5333_v25 = vpop.f32.mrb[29].mxu0 }
 0xff0   : > { %v5334_v33 = vadd.f32 %v5333_v25, %v5332_v30  ;;  %v5335_v21 = vpop.f32.mrb[30].mxu0 }
 0xff1   : > { %v5336_v5 = vpop.f32.mrb[31].mxu0 }
 0xff2   : > { %v5337_v48 = vadd.f32 %v5336_v5, %v5335_v21  ;;  %v3144_v34 = vadd.f32 %v5334_v33, %v3058_v27 }
 0xff4   : > { %v3147_v11 = vadd.f32 %v5337_v48, %v3063_v35 }
 0xff6   : > { %v5394_v41 = vpop.f32.mrb[32].mxu0 }
 0xff7   : > { %v3193_v47 = vadd.f32 %v5394_v41, %v3144_v34  ;;  %v3184_v52 = vpop.f32.mrb[33].mxu0 }
 0xff8   : > { %v3185_v28 = vadd.f32 %v3184_v52, %v3136_v2  ;;  %v5395_v42 = vpop.f32.mrb[34].mxu0 }
 0xff9   : > { %v5200_v19 = vmul.f32 -1.442695, %v3193_v47  ;;  %v3196_v24 = vadd.f32 %v5395_v42, %v3147_v11  ;;  %v3187_v23 = vpop.f32.mrb[35].mxu0 }
 0xffa   : > { %v5198_v16 = vmul.f32 -1.442695, %v3185_v28  ;;  %v3188_v13 = vadd.f32 %v3187_v23, %v3139_v53 }
 0xffb   : > { %5665 = vpow2.f32 %v5200_v19  ;;  %v5201_v30 = vmul.f32 -1.442695, %v3196_v24 }
 0xffc   : > { %5667 = vpow2.f32 %v5198_v16  ;;  %v5199_v25 = vmul.f32 -1.442695, %v3188_v13 }
 0xffd   : > { %5669 = vpow2.f32 %v5201_v30 }
 0xffe   : > { %5671 = vpow2.f32 %v5199_v25 }
0x1005   : > { %v5666_v33 = vpop.eup %5665 }
0x1006   : > { %v5668_v21 = vpop.eup %5667  ;;  %v3213_v59 = vadd.f32 1.0, %v5666_v33 }
0x1007   : > { %v5670_v26 = vpop.eup %5669  ;;  %v3211_v5 = vadd.f32 1.0, %v5668_v21 }
0x1008   : > { %v5672_v48 = vpop.eup %5671  ;;  %5673 = vrcp.f32 %v3213_v59  ;;  %v3214_v27 = vadd.f32 1.0, %v5670_v26 }
0x1009   : > { %5675 = vrcp.f32 %v3211_v5  ;;  %v3212_v22 = vadd.f32 1.0, %v5672_v48  ;;  %v5582_v48 = vld [vmem:[%s7394_s3 + $0x8] ss:$12 sps:$4 sm:$0xff]  }
0x100a   : > { %5677 = vrcp.f32 %v3214_v27  ;;  %5400 = vmatprep.mubr.msk.bf16.mxu0 %vm1348_vm11, %v5582_v48  ;;  %v5586_v48 = vld [vmem:[%s7394_s3 + $0x18] ss:$12 sps:$4 sm:$0xff]  }
0x100b   : > { %5679 = vrcp.f32 %v3212_v22 }
0x1012   : > { %v5674_v20 = vpop.eup %5673 }
0x1013   : > { %v5676_v34 = vpop.eup %5675  ;;  %v3225_v16 = vmul.f32 %v5674_v20, %v3193_v47 }
0x1014   : > { %v5678_v35 = vpop.eup %5677  ;;  %v3223_v52 = vmul.f32 %v5676_v34, %v3185_v28 }
0x1015   : > { %v5680_v41 = vpop.eup %5679  ;;  %v3226_v2 = vmul.f32 %v5678_v35, %v3196_v24 }
0x1016   : > { %v3224_v11 = vmul.f32 %v5680_v41, %v3188_v13 }
0x1017   : > { %v3228_v42 = vpack.c.bf16 %v3226_v2, %v3225_v16 }
0x1018   : > { %v3227_v53 = vpack.c.bf16 %v3224_v11, %v3223_v52 }
0x1019   : > { %3241 = vrot.lane.b32.xlu1 %v3228_v42, %s7385_s16 }
0x101a   : > { %3239 = vrot.lane.b32.xlu0 %v3227_v53, %s7385_s16  ;;  %s7397_s16 = sld [smem:[#allocation15_spill]] }
0x1020   : > { %v3324_v22 = vld [vmem:[%s7397_s16 + $0x8] sm:$0xff]  ;;  %v3323_v20 = vld [vmem:[%s7397_s16] sm:$0xff]  ;;  %v3326_v34 = vld [vmem:[%s7397_s16 + $0x18] sm:$0xff] }
0x1021   : > { %v3325_v35 = vld [vmem:[%s7397_s16 + $0x10] sm:$0xff] }
0x108b   : > { %v3242_v19 = vpop.permute.xlu1 %3241 }
0x108c   : > { %v3246_v23 = vsel %vm2498_vm8, 0, %v3242_v19  ;;  %v3240_v30 = vpop.permute.xlu0 %3239 }
0x108d   : > { %v3249_v25 = vsel %vm2501_vm10, %v3246_v23, 0  ;;  %v3244_v33 = vsel %vm2498_vm8, 0, %v3240_v30 }
0x108e   : > { %v3247_v21 = vsel %vm2501_vm10, %v3244_v33, 0  ;;  %3289 = vrot.lane.b32.xlu1 %v3249_v25, %s7393_s2  ;;  %v3258_v47 = vmul.bf16 %v3249_v25, %v6484_v14  ;;  %v3254_v59 = vmul.bf16 %v3249_v25, %v6473_v12  ;;  %v3260_v26 = vmul.bf16 %v3249_v25, %v6488_v37 }
0x108f   : > { %3287 = vrot.lane.b32.xlu0 %v3247_v21, %s7393_s2  ;;  %v3257_v13 = vmul.bf16 %v3247_v21, %v6484_v14  ;;  %v3253_v28 = vmul.bf16 %v3247_v21, %v6473_v12  ;;  %v3259_v24 = vmul.bf16 %v3247_v21, %v6488_v37  ;;  %s7396_s2 = smov 112   ;;  %v5581_v14 = vld [vmem:[%s7394_s3 + $0x4] ss:$12 sps:$4 sm:$0xff]   ;;  %v3255_v5 = vmul.bf16 %v3247_v21, %v6480_v1 }
0x1090   : > { %3415 = vmatprep.mubr.bf16.mxu1 %v5581_v14  ;;  %v3261_v12 = vmul.bf16 %v3247_v21, %v6494_v15  ;;  %v3262_v37 = vmul.bf16 %v3249_v25, %v6494_v15  ;;  %v3256_v27 = vmul.bf16 %v3249_v25, %v6480_v1  ;;  %v3251_v2 = vmul.bf16 %v3247_v21, %v6464_v44  ;;  %v5584_v14 = vld [vmem:[%s7394_s3 + $0x1c] ss:$12 sps:$4 sm:$0xff]  }
0x1091   : > { %v3252_v52 = vmul.bf16 %v3249_v25, %v6464_v44 }
0x1092   : > { %3265 = vrot.lane.b32.xlu1 %v3247_v21, %s7395_s5 }
0x1093   : > { %3295 = vrot.lane.b32.xlu0 %v3257_v13, %s7386_s22 }
0x1096   : > { %3267 = vrot.lane.b32.xlu1 %v3249_v25, %s7395_s5 }
0x1097   : > { %3297 = vrot.lane.b32.xlu0 %v3258_v47, %s7386_s22  ;;  %s7400_s22 = smov 17  }
0x109a   : > { %3273 = vrot.lane.b32.xlu1 %v3253_v28, %s7389_s28 }
0x109b   : > { %3303 = vrot.lane.b32.xlu0 %v3259_v24, %s7396_s2  ;;  %v5583_v24 = vld [vmem:[%s7394_s3 + $0x20] ss:$12 sps:$4 sm:$0xff]  }
0x109e   : > { %3275 = vrot.lane.b32.xlu1 %v3254_v59, %s7389_s28  ;;  %v5579_v59 = vld [vmem:[%s7394_s3] ss:$12 sps:$4 sm:$0xff]   ;;  %s7401_s3 = sld [smem:[#allocation17_spill]] }
0x109f   : > { %3305 = vrot.lane.b32.xlu0 %v3260_v26, %s7396_s2 }
0x10a2   : > { %3281 = vrot.lane.b32.xlu1 %v3255_v5, %s7391_s15  ;;  %v7399_v5 = vmov 0  }
0x10a3   : > { %3309 = vrot.lane.b32.xlu0 %v3247_v21, %s7390_s1 }
0x10a6   : > { %3317 = vrot.lane.b32.xlu1 %v3261_v12, %s7392_s0 }
0x10a7   : > { %3311 = vrot.lane.b32.xlu0 %v3249_v25, %s7390_s1 }
0x10aa   : > { %3319 = vrot.lane.b32.xlu1 %v3262_v37, %s7392_s0 }
0x10ab   : > { %3283 = vrot.lane.b32.xlu0 %v3256_v27, %s7391_s15  ;;  %s7398_s15 = sld [smem:[#allocation16_spill]] }
0x10ae   : > { %3334 = vperm.xlu1 %5525, %v3324_v22  }
0x10af   : > { %3329 = vperm.xlu0 %5524, %v3323_v20  }
0x10b1   : > { %v5589_v13 = vld [vmem:[%s7398_s15 + $0x4] ss:$8 sps:$4 sm:$0xff]   ;;  %v5587_v26 = vld [vmem:[%s7398_s15] ss:$8 sps:$4 sm:$0xff]   ;;  %v5592_v12 = vld [vmem:[%s7398_s15 + $0x14] ss:$8 sps:$4 sm:$0xff]  }
0x10b2   : > { %3344 = vperm.xlu1 %5525, %v3326_v34   ;;  %v5590_v37 = vld [vmem:[%s7398_s15 + $0x10] ss:$8 sps:$4 sm:$0xff]   ;;  %v5595_v27 = vld [vmem:[%s7398_s15 + $0x24] ss:$8 sps:$4 sm:$0xff]   ;;  %v5593_v22 = vld [vmem:[%s7398_s15 + $0x20] ss:$8 sps:$4 sm:$0xff]  }
0x10b3   : > { %3339 = vperm.xlu0 %5524, %v3325_v35   ;;  %v5598_v20 = vld [vmem:[%s7398_s15 + $0x34] ss:$8 sps:$4 sm:$0xff]   ;;  %v5596_v34 = vld [vmem:[%s7398_s15 + $0x30] ss:$8 sps:$4 sm:$0xff]  }
0x1100   : > { %v3290_v41 = vpop.permute.xlu1 %3289 }
0x1101   : > { %v3288_v16 = vpop.permute.xlu0 %3287 }
0x1102   : > { %5342 = vmatprep.subr.bf16.mxu1 %v3288_v16 }
0x1103   : > { %5343 = vmatpush3.bf16.msra.mxu1 %v3251_v2 }
0x1104   : > { %v3266_v15 = vpop.permute.xlu1 %3265  ;;  %5344 = vmatprep.subr.bf16.mxu1 %v3290_v41 }
0x1105   : > { %v3296_v1 = vpop.permute.xlu0 %3295 }
0x1107   : > { %5345 = vmatpush3.bf16.msra.mxu1 %v3252_v52 }
0x1108   : > { %v3268_v11 = vpop.permute.xlu1 %3267  ;;  %5346 = vmatprep.subr.bf16.mxu1 %v3296_v1 }
0x1109   : > { %v3298_v42 = vpop.permute.xlu0 %3297 }
0x110b   : > { %5347 = vmatpush3.bf16.msra.mxu1 %v3266_v15 }
0x110c   : > { %v3274_v53 = vpop.permute.xlu1 %3273  ;;  %5348 = vmatprep.subr.bf16.mxu1 %v3298_v42 }
0x110d   : > { %v3304_v19 = vpop.permute.xlu0 %3303 }
0x110f   : > { %5349 = vmatpush3.bf16.msra.mxu1 %v3268_v11 }
0x1110   : > { %v3276_v23 = vpop.permute.xlu1 %3275  ;;  %5350 = vmatprep.subr.bf16.mxu1 %v3304_v19 }
0x1111   : > { %v3306_v30 = vpop.permute.xlu0 %3305 }
0x1113   : > { %5351 = vmatpush3.bf16.msra.mxu1 %v3274_v53 }
0x1114   : > { %v3282_v33 = vpop.permute.xlu1 %3281  ;;  %5352 = vmatprep.subr.bf16.mxu1 %v3306_v30 }
0x1115   : > { %v3310_v21 = vpop.permute.xlu0 %3309 }
0x1117   : > { %5353 = vmatpush3.bf16.msra.mxu1 %v3276_v23 }
0x1118   : > { %v3318_v44 = vpop.permute.xlu1 %3317  ;;  %5354 = vmatprep.subr.bf16.mxu1 %v3310_v21 }
0x1119   : > { %v3312_v25 = vpop.permute.xlu0 %3311  ;;  %5396 = vmatprep.subr.bf16.mxu0 %v3318_v44 }
0x111a   : > { %5397 = vmatpush3.bf16.msra.mxu0 %v3318_v44 }
0x111b   : > { %5355 = vmatpush3.bf16.msra.mxu1 %v3282_v33  ;;  %v2943_v33 = vunpack.c.l.bf16 %v6567_v17 }
0x111c   : > { %v3320_v47 = vpop.permute.xlu1 %3319  ;;  %5356 = vmatprep.subr.bf16.mxu1 %v3312_v25 }
0x111d   : > { %v3284_v28 = vpop.permute.xlu0 %3283  ;;  %5398 = vmatprep.subr.bf16.mxu0 %v3320_v47 }
0x111e   : > { %5399 = vmatpush3.bf16.msra.mxu0 %v3320_v47 }
0x111f   : > { %5357 = vmatpush3.bf16.msra.mxu1 %v3284_v28  ;;  %3542 = vmatprep.subr.bf16.mxu0 %v5589_v13  ;;  %v2944_v13 = vunpack.c.h.bf16 %v6567_v17 }
0x1121   : > { %5401 = vmatmul.mubr.msk.bf16.vlgmr.msra.gmra.mrb[36].mxu0 %vm1348_vm11, %v5583_v24 }
0x1122   : > { %3416 = vmatmul.mubr.bf16.vlgmr.msra.gmra.mrb[20].mxu1 %v5579_v59  ;;  %3543 = vmatpush1.bf16.msra.mxu0 %v5587_v26 }
0x1123   : > { %3423 = vmatprep.mubr.bf16.mxu1 %v5584_v14  ;;  %3574 = vmatprep.mubr.bf16.mxu0 %v7399_v5 }
0x1124   : > { %3544 = vmatprep.subr.bf16.mxu0 %v5592_v12 }
0x1126   : > { %3545 = vmatpush1.bf16.msra.mxu0 %v5590_v37 }
0x1127   : > { %3546 = vmatprep.subr.bf16.mxu0 %v5595_v27 }
0x112a   : > { %3424 = vmatmul.mubr.bf16.gmra.mrb[24].mxu1 %v5586_v48  ;;  %3547 = vmatpush1.bf16.msra.mxu0 %v5593_v22 }
0x112b   : > { %3654 = vmatprep.mubr.bf16.mxu1 %v7399_v5  ;;  %3548 = vmatprep.subr.bf16.mxu0 %v5598_v20 }
0x112d   : > { %v3335_v30 = vpop.permute.xlu1 %3334 }
0x112e   : > { %3549 = vmatpush1.bf16.msra.mxu0 %v5596_v34  ;;  %v3330_v42 = vpop.permute.xlu0 %3329  ;;  %v2945_v34 = vunpack.c.l.bf16 %v6571_v29 }
0x1131   : > { %v3345_v20 = vpop.permute.xlu1 %3344 }
0x1132   : > { %v3340_v48 = vpop.permute.xlu0 %3339 }
0x11f4   : > { %v5402_v35 = vpop.f32.mrb[36].mxu0 }
0x11f5   : > { %v5358_v41 = vpop.f32.mrb[20].mxu1  ;;  %v3466_v16 = vpop.f32.mrb[37].mxu0 }
0x11f6   : > { %v5359_v2 = vpop.f32.mrb[21].mxu1  ;;  %v5403_v15 = vpop.f32.mrb[38].mxu0 }
0x11f7   : > { %v5360_v1 = vadd.f32 %v5359_v2, %v5358_v41  ;;  %v5361_v52 = vpop.f32.mrb[22].mxu1  ;;  %v3469_v11 = vpop.f32.mrb[39].mxu0  ;;  %v2946_v2 = vunpack.c.h.bf16 %v6571_v29 }
0x11f8   : > { %v5362_v53 = vpop.f32.mrb[23].mxu1 }
0x11f9   : > { %v3418_v19 = vadd.f32 %v5360_v1, %v3330_v42  ;;  %v5363_v23 = vadd.f32 %v5362_v53, %v5361_v52 }
0x11fb   : > { %v3467_v21 = vadd.f32 %v3466_v16, %v3418_v19  ;;  %v3421_v44 = vadd.f32 %v5363_v23, %v3335_v30 }
0x11fd   : > { %v3481_v25 = vadd.f32 %v3467_v21, %v2943_v33  ;;  %v3470_v47 = vadd.f32 %v3469_v11, %v3421_v44  ;;  %v5364_v28 = vpop.f32.mrb[24].mxu1 }
0x11fe   : > { %v5365_v24 = vpop.f32.mrb[25].mxu1 }
0x11ff   : > { %v3482_v59 = vadd.f32 %v3470_v47, %v2944_v13  ;;  %v5366_v26 = vadd.f32 %v5365_v24, %v5364_v28  ;;  %v5367_v14 = vpop.f32.mrb[26].mxu1 }
0x1200   : > { %v5368_v12 = vpop.f32.mrb[27].mxu1 }
0x1201   : > { %v3485_v37 = vpack.c.bf16 %v3482_v59, %v3481_v25  ;;  %v3426_v27 = vadd.f32 %v5366_v26, %v3340_v48  ;;  %v5369_v22 = vadd.f32 %v5368_v12, %v5367_v14 }
0x1203   : > { %v3475_v41 = vadd.f32 %v5402_v35, %v3426_v27  ;;  %v3429_v16 = vadd.f32 %v5369_v22, %v3345_v20  ;;  %5218 = vmatmul.mubr.msk.bf16.vlgmr.msra.gmra.mrb[40].mxu0 %vm3535_vm12, %v3485_v37 }
0x1204   : > { %3584 = vmatprep.mubr.bf16.mxu0 %v7399_v5 }
0x1205   : > { %v3483_v17 = vadd.f32 %v3475_v41, %v2945_v34  ;;  %v3478_v1 = vadd.f32 %v5403_v15, %v3429_v16 }
0x1207   : > { %v3484_v52 = vadd.f32 %v3478_v1, %v2946_v2 }
0x1209   : > { %v3486_v11 = vpack.c.bf16 %v3484_v52, %v3483_v17 }
0x120b   : > { %5219 = vmatmul.mubr.msk.bf16.gmra.mrb[44].mxu0 %vm3535_vm12, %v3486_v11 }
0x12d6   : > { %v3576_v42 = vpop.f32.mrb[40].mxu0 }
0x12d7   : > { %v3578_v53 = vpop.f32.mrb[41].mxu0 }
0x12d8   : > { %v3580_v19 = vpop.f32.mrb[42].mxu0 }
0x12d9   : > { %v3595_v23 = vpack.c.bf16 %v3580_v19, %v3576_v42  ;;  %v3582_v30 = vpop.f32.mrb[43].mxu0 }
0x12da   : > { %v3596_v33 = vpack.c.bf16 %v3582_v30, %v3578_v53 }
0x12db   : > { %3675 = vrot.lane.b32.xlu0 %v3595_v23, %s7400_s22 }
0x12dc   : > { %3677 = vrot.lane.b32.xlu1 %v3596_v33, %s7400_s22  ;;  %3622 = vmatprep.subr.bf16.mxu1 %v3596_v33 }
0x12dd   : > { %3623 = vmatpush1.bf16.msra.mxu1 %v3595_v23 }
0x12de   : > { %v3586_v35 = vpop.f32.mrb[44].mxu0 }
0x12df   : > { %v3588_v21 = vpop.f32.mrb[45].mxu0 }
0x12e0   : > { %v3590_v44 = vpop.f32.mrb[46].mxu0 }
0x12e1   : > { %v3597_v29 = vpack.c.bf16 %v3590_v44, %v3586_v35  ;;  %v3592_v15 = vpop.f32.mrb[47].mxu0 }
0x12e2   : > { %v3598_v25 = vpack.c.bf16 %v3592_v15, %v3588_v21 }
0x12e3   : > { %3679 = vrot.lane.b32.xlu0 %v3597_v29, %s7400_s22 }
0x12e4   : > { %3681 = vrot.lane.b32.xlu1 %v3598_v25, %s7400_s22  ;;  %3624 = vmatprep.subr.bf16.mxu1 %v3598_v25 }
0x12e5   : > { %3625 = vmatpush1.bf16.msra.mxu1 %v3597_v29 }
0x12e6   : > { %3626 = vmatprep.subr.bf16.mxu1 %v6453_v43 }
0x12e7   : > { %3683 = vrot.lane.b32.xlu0 %v6451_v8, %s7400_s22 }
0x12e8   : > { %3685 = vrot.lane.b32.xlu1 %v6453_v43, %s7400_s22 }
0x12e9   : > { %3627 = vmatpush1.bf16.msra.mxu1 %v6451_v8 }
0x134d   : > { %v3676_v13 = vpop.permute.xlu0 %3675 }
0x134e   : > { %v6691_v47 = vsel %vm1291_vm7, 0, %v3676_v13  ;;  %v3678_v28 = vpop.permute.xlu1 %3677 }
0x134f   : > { %v6694_v24 = vsel %vm1291_vm7, %v3676_v13, %v3678_v28  ;;  %v3711_v26 = vmul.bf16 %v6691_v47, %v6000_v18  ;;  %v6754_v19 = vsel %vm1291_vm7, %v3678_v28, 0  ;;  %v3717_v23 = vmul.bf16 %v6691_v47, %v6034_v39 }
0x1350   : > { %v3712_v59 = vmul.bf16 %v6694_v24, %v6019_v36  ;;  %v3726_v30 = vmul.bf16 %v6691_v47, %v6052_v46  ;;  %v3718_v33 = vmul.bf16 %v6694_v24, %v6064_v49  ;;  %v3719_v35 = vmul.bf16 %v6754_v19, %v6050_v45 }
0x1351   : > { %v3728_v21 = vmul.bf16 %v6754_v19, %v6066_v50  ;;  %v3727_v44 = vmul.bf16 %v6694_v24, %v6087_v57 }
0x1352   : > { %4087 = vmatprep.subr.bf16.mxu0 %v3712_v59  ;;  %v3736_v59 = vmul.bf16 %v6694_v24, %v6105_v63 }
0x1353   : > { %4088 = vmatpush1.bf16.msra.mxu0 %v3711_v26  ;;  %v3737_v26 = vmul.bf16 %v6754_v19, %v6078_v54 }
0x1355   : > { %v3680_v14 = vpop.permute.xlu0 %3679 }
0x1356   : > { %v6701_v43 = vsel %vm1291_vm7, 0, %v3680_v14  ;;  %v3682_v8 = vpop.permute.xlu1 %3681 }
0x1357   : > { %v6704_v48 = vsel %vm1291_vm7, %v3680_v14, %v3682_v8  ;;  %v3713_v27 = vmul.bf16 %v6701_v43, %v6000_v18  ;;  %v6791_v29 = vsel %vm1291_vm7, %v3682_v8, 0  ;;  %v3729_v15 = vmul.bf16 %v6701_v43, %v6052_v46 }
0x1358   : > { %v3714_v12 = vmul.bf16 %v6704_v48, %v6019_v36  ;;  %v3720_v25 = vmul.bf16 %v6701_v43, %v6034_v39  ;;  %v3722_v13 = vmul.bf16 %v6791_v29, %v6050_v45  ;;  %v3721_v28 = vmul.bf16 %v6704_v48, %v6064_v49 }
0x1359   : > { %v3684_v37 = vpop.permute.xlu0 %3683  ;;  %v3735_v14 = vmul.bf16 %v6691_v47, %v6070_v51  ;;  %v3730_v8 = vmul.bf16 %v6704_v48, %v6087_v57 }
0x135a   : > { %v6711_v22 = vsel %vm1291_vm7, 0, %v3684_v37  ;;  %4089 = vmatprep.subr.bf16.mxu0 %v3714_v12  ;;  %v3686_v20 = vpop.permute.xlu1 %3685  ;;  %v3731_v12 = vmul.bf16 %v6791_v29, %v6066_v50 }
0x135b   : > { %v6714_v34 = vsel %vm1291_vm7, %v3684_v37, %v3686_v20  ;;  %v6717_v41 = vsel %vm1291_vm7, %v3686_v20, 0  ;;  %4090 = vmatpush1.bf16.msra.mxu0 %v3713_v27  ;;  %v3715_v17 = vmul.bf16 %v6711_v22, %v6000_v18  ;;  %v3723_v52 = vmul.bf16 %v6711_v22, %v6034_v39 }
0x135c   : > { %3784 = vrot.lane.b32.xlu1 %v6717_v41, %s7395_s5  ;;  %3782 = vrot.lane.b32.xlu0 %v6714_v34, %s7395_s5  ;;  %v3716_v16 = vmul.bf16 %v6714_v34, %v6019_v36  ;;  %v3724_v2 = vmul.bf16 %v6714_v34, %v6064_v49  ;;  %v3725_v1 = vmul.bf16 %v6717_v41, %v6050_v45 }
0x135d   : > { %v3733_v11 = vmul.bf16 %v6714_v34, %v6087_v57  ;;  %v3734_v42 = vmul.bf16 %v6717_v41, %v6066_v50  ;;  %v3732_v53 = vmul.bf16 %v6711_v22, %v6052_v46  ;;  %v3738_v37 = vmul.bf16 %v6701_v43, %v6070_v51 }
0x135e   : > { %4091 = vmatprep.subr.bf16.mxu0 %v3716_v16  ;;  %v3742_v27 = vmul.bf16 %v6714_v34, %v6105_v63  ;;  %v3743_v20 = vmul.bf16 %v6717_v41, %v6078_v54  ;;  %v3741_v16 = vmul.bf16 %v6711_v22, %v6070_v51 }
0x135f   : > { %4092 = vmatpush1.bf16.msra.mxu0 %v3715_v17  ;;  %v3745_v17 = vmul.bf16 %v6694_v24, %v6110_v0 }
0x1360   : > { %3780 = vrot.lane.b32.xlu0 %v6711_v22, %s7395_s5  ;;  %3821 = vrot.lane.b32.xlu1 %v3724_v2, %s7389_s28  ;;  %v3746_v2 = vmul.bf16 %v6754_v19, %v6097_v61 }
0x1364   : > { %3823 = vrot.lane.b32.xlu0 %v3725_v1, %s7389_s28  ;;  %3819 = vrot.lane.b32.xlu1 %v3723_v52, %s7389_s28  ;;  %v3744_v1 = vmul.bf16 %v6691_v47, %v6091_v58  ;;  %v5601_v52 = vld [vmem:[%s7401_s3 + $0x4] ss:$16 sps:$4 sm:$0xff]  }
0x1365   : > { %4119 = vmatprep.mubr.bf16.mxu0 %v5601_v52  ;;  %v3759_v52 = vmul.bf16 %v6711_v22, %v6124_v7 }
0x1368   : > { %3860 = vrot.lane.b32.xlu0 %v3733_v11, %s7396_s2  ;;  %3862 = vrot.lane.b32.xlu1 %v3734_v42, %s7396_s2  ;;  %v3747_v11 = vmul.bf16 %v6701_v43, %v6091_v58  ;;  %v3751_v42 = vmul.bf16 %v6714_v34, %v6110_v0 }
0x136c   : > { %3858 = vrot.lane.b32.xlu0 %v3732_v53, %s7396_s2  ;;  %3890 = vrot.lane.b32.xlu1 %v6714_v34, %s7390_s1  ;;  %v3752_v53 = vmul.bf16 %v6717_v41, %v6097_v61 }
0x1370   : > { %3892 = vrot.lane.b32.xlu0 %v6717_v41, %s7390_s1  ;;  %3876 = vrot.lane.b32.xlu1 %v6691_v47, %s7390_s1 }
0x1374   : > { %3768 = vrot.lane.b32.xlu0 %v6691_v47, %s7395_s5  ;;  %3772 = vrot.lane.b32.xlu1 %v6754_v19, %s7395_s5 }
0x1378   : > { %3770 = vrot.lane.b32.xlu0 %v6694_v24, %s7395_s5  ;;  %3878 = vrot.lane.b32.xlu1 %v6694_v24, %s7390_s1 }
0x137c   : > { %3880 = vrot.lane.b32.xlu0 %v6754_v19, %s7390_s1  ;;  %3807 = vrot.lane.b32.xlu1 %v3717_v23, %s7389_s28  ;;  %v3739_v23 = vmul.bf16 %v6704_v48, %v6105_v63 }
0x1380   : > { %3846 = vrot.lane.b32.xlu0 %v3726_v30, %s7396_s2  ;;  %3809 = vrot.lane.b32.xlu1 %v3718_v33, %s7389_s28  ;;  %v3740_v30 = vmul.bf16 %v6791_v29, %v6078_v54  ;;  %v3750_v33 = vmul.bf16 %v6711_v22, %v6091_v58 }
0x1384   : > { %3811 = vrot.lane.b32.xlu0 %v3719_v35, %s7389_s28  ;;  %3850 = vrot.lane.b32.xlu1 %v3728_v21, %s7396_s2  ;;  %v3749_v35 = vmul.bf16 %v6791_v29, %v6097_v61  ;;  %v3748_v21 = vmul.bf16 %v6704_v48, %v6110_v0 }
0x1388   : > { %3848 = vrot.lane.b32.xlu0 %v3727_v44, %s7396_s2  ;;  %3774 = vrot.lane.b32.xlu1 %v6701_v43, %s7395_s5 }
0x138c   : > { %3882 = vrot.lane.b32.xlu0 %v6701_v43, %s7390_s1  ;;  %3776 = vrot.lane.b32.xlu1 %v6704_v48, %s7395_s5 }
0x1390   : > { %3778 = vrot.lane.b32.xlu0 %v6791_v29, %s7395_s5  ;;  %3886 = vrot.lane.b32.xlu1 %v6791_v29, %s7390_s1 }
0x1394   : > { %3884 = vrot.lane.b32.xlu0 %v6704_v48, %s7390_s1  ;;  %3852 = vrot.lane.b32.xlu1 %v3729_v15, %s7396_s2 }
0x1398   : > { %3813 = vrot.lane.b32.xlu0 %v3720_v25, %s7389_s28  ;;  %3817 = vrot.lane.b32.xlu1 %v3722_v13, %s7389_s28 }
0x139c   : > { %3815 = vrot.lane.b32.xlu0 %v3721_v28, %s7389_s28  ;;  %3888 = vrot.lane.b32.xlu1 %v6711_v22, %s7390_s1 }
0x13a0   : > { %3917 = vrot.lane.b32.xlu0 %v3736_v59, %s7392_s0  ;;  %3919 = vrot.lane.b32.xlu1 %v3737_v26, %s7392_s0  ;;  %v3754_v26 = vmul.bf16 %v6694_v24, %v6130_v9 }
0x13a4   : > { %3915 = vrot.lane.b32.xlu0 %v3735_v14, %s7392_s0  ;;  %3854 = vrot.lane.b32.xlu1 %v3730_v8, %s7396_s2 }
0x13a8   : > { %3856 = vrot.lane.b32.xlu0 %v3731_v12, %s7396_s2  ;;  %3921 = vrot.lane.b32.xlu1 %v3738_v37, %s7392_s0  ;;  %v3755_v12 = vmul.bf16 %v6754_v19, %v6119_v4  ;;  %v3753_v37 = vmul.bf16 %v6691_v47, %v6124_v7 }
0x13ac   : > { %3929 = vrot.lane.b32.xlu0 %v3742_v27, %s7392_s0  ;;  %3931 = vrot.lane.b32.xlu1 %v3743_v20, %s7392_s0  ;;  %v3756_v20 = vmul.bf16 %v6701_v43, %v6124_v7 }
0x13b0   : > { %3927 = vrot.lane.b32.xlu0 %v3741_v16, %s7392_s0  ;;  %3956 = vrot.lane.b32.xlu1 %v3745_v17, %s7402_s6  ;;  %v3758_v16 = vmul.bf16 %v6791_v29, %v6119_v4  ;;  %v3757_v17 = vmul.bf16 %v6704_v48, %v6130_v9 }
0x13b4   : > { %3958 = vrot.lane.b32.xlu0 %v3746_v2, %s7402_s6  ;;  %3954 = vrot.lane.b32.xlu1 %v3744_v1, %s7402_s6  ;;  %v3760_v2 = vmul.bf16 %v6714_v34, %v6130_v9  ;;  %v3761_v1 = vmul.bf16 %v6717_v41, %v6119_v4 }
0x13b8   : > { %3960 = vrot.lane.b32.xlu0 %v3747_v11, %s7402_s6  ;;  %3968 = vrot.lane.b32.xlu1 %v3751_v42, %s7402_s6  ;;  %v4054_v11 = vld [vmem:[%s7405_s11 + $0x8] sm:$0xff] }
0x13bc   : > { %3970 = vrot.lane.b32.xlu0 %v3752_v53, %s7402_s6  ;;  %3923 = vrot.lane.b32.xlu1 %v3739_v23, %s7392_s0 }
0x13c0   : > { %3925 = vrot.lane.b32.xlu0 %v3740_v30, %s7392_s0  ;;  %3966 = vrot.lane.b32.xlu1 %v3750_v33, %s7402_s6 }
0x13c4   : > { %3986 = vrot.lane.b32.xlu0 %v6694_v24, %s7403_s8  ;;  %3988 = vrot.lane.b32.xlu1 %v6754_v19, %s7403_s8 }
0x13c8   : > { %3984 = vrot.lane.b32.xlu0 %v6691_v47, %s7403_s8  ;;  %3964 = vrot.lane.b32.xlu1 %v3749_v35, %s7402_s6 }
0x13cc   : > { %3962 = vrot.lane.b32.xlu0 %v3748_v21, %s7402_s6  ;;  %3992 = vrot.lane.b32.xlu1 %v6704_v48, %s7403_s8  ;;  %v4053_v48 = vld [vmem:[%s7405_s11] sm:$0xff]  ;;  %s7408_s11 = sld [smem:[#allocation22_spill]] }
0x13ce   : > { %v6882_v44 = vpop.permute.xlu1 %3784  ;;  %v6884_v15 = vpop.permute.xlu0 %3782 }
0x13d0   : > { %3994 = vrot.lane.b32.xlu0 %v6791_v29, %s7403_s8  ;;  %3990 = vrot.lane.b32.xlu1 %v6701_v43, %s7403_s8 }
0x13d2   : > { %v6890_v25 = vpop.permute.xlu0 %3780  ;;  %v6892_v13 = vpop.permute.xlu1 %3821 }
0x13d4   : > { %3998 = vrot.lane.b32.xlu0 %v6714_v34, %s7403_s8  ;;  %4000 = vrot.lane.b32.xlu1 %v6717_v41, %s7403_s8 }
0x13d6   : > { %v6898_v28 = vpop.permute.xlu0 %3823  ;;  %v6900_v59 = vpop.permute.xlu1 %3819 }
0x13d8   : > { %3996 = vrot.lane.b32.xlu0 %v6711_v22, %s7403_s8  ;;  %4025 = vrot.lane.b32.xlu1 %v3754_v26, %s7404_s9 }
0x13da   : > { %v6907_v14 = vpop.permute.xlu0 %3860  ;;  %v6909_v8 = vpop.permute.xlu1 %3862 }
0x13dc   : > { %4027 = vrot.lane.b32.xlu0 %v3755_v12, %s7404_s9  ;;  %4023 = vrot.lane.b32.xlu1 %v3753_v37, %s7404_s9 }
0x13de   : > { %v6917_v24 = vpop.permute.xlu0 %3858  ;;  %v6919_v27 = vpop.permute.xlu1 %3890 }
0x13e0   : > { %4029 = vrot.lane.b32.xlu0 %v3756_v20, %s7404_s9  ;;  %4033 = vrot.lane.b32.xlu1 %v3758_v16, %s7404_s9 }
0x13e2   : > { %v6927_v47 = vpop.permute.xlu0 %3892  ;;  %v6929_v19 = vpop.permute.xlu1 %3876 }
0x13e4   : > { %4031 = vrot.lane.b32.xlu0 %v3757_v17, %s7404_s9  ;;  %4037 = vrot.lane.b32.xlu1 %v3760_v2, %s7404_s9 }
0x13e6   : > { %v3769_v43 = vpop.permute.xlu0 %3768  ;;  %v3773_v29 = vpop.permute.xlu1 %3772 }
0x13e8   : > { %4039 = vrot.lane.b32.xlu0 %v3761_v1, %s7404_s9  ;;  %4035 = vrot.lane.b32.xlu1 %v3759_v52, %s7404_s9 }
0x13ea   : > { %v3771_v42 = vpop.permute.xlu0 %3770  ;;  %v6945_v34 = vpop.permute.xlu1 %3878 }
0x13eb   : > { %v3787_v53 = vsel %vm1376_vm13, %v3771_v42, %v3773_v29  ;;  %v3786_v23 = vsel %vm1376_vm13, %v3769_v43, %v3771_v42  ;;  %v3791_v29 = vsel %vm1376_vm13, %v6884_v15, %v6882_v44 }
0x13ec   : > { %4057 = vperm.xlu0 %5524, %v4053_v48   ;;  %4062 = vperm.xlu1 %5525, %v4054_v11   ;;  %v3790_v48 = vsel %vm1376_vm13, %v6890_v25, %v6884_v15  ;;  %v3830_v15 = vsel %vm1390_vm14, %v6892_v13, %v6898_v28 }
0x13ed   : > { %4093 = vmatprep.subr.bf16.mxu0 %v3787_v53 }
0x13ee   : > { %4094 = vmatpush1.bf16.msra.mxu0 %v3786_v23  ;;  %v3881_v41 = vpop.permute.xlu0 %3880  ;;  %v3808_v30 = vpop.permute.xlu1 %3807 }
0x13f2   : > { %v3847_v22 = vpop.permute.xlu0 %3846  ;;  %v3810_v33 = vpop.permute.xlu1 %3809 }
0x13f3   : > { %v3825_v23 = vsel %vm1390_vm14, %v3808_v30, %v3810_v33  ;;  %v3829_v30 = vsel %vm1390_vm14, %v6900_v59, %v6892_v13  ;;  %v3869_v13 = vsel %vm1404_vm15, %v6907_v14, %v6909_v8 }
0x13f6   : > { %v3812_v35 = vpop.permute.xlu0 %3811  ;;  %v3851_v21 = vpop.permute.xlu1 %3850 }
0x13f7   : > { %v3826_v11 = vsel %vm1390_vm14, %v3810_v33, %v3812_v35 }
0x13fa   : > { %v3849_v26 = vpop.permute.xlu0 %3848  ;;  %v3775_v12 = vpop.permute.xlu1 %3774 }
0x13fb   : > { %v3865_v33 = vsel %vm1404_vm15, %v3849_v26, %v3851_v21 }
0x13fe   : > { %v3883_v37 = vpop.permute.xlu0 %3882  ;;  %v3777_v20 = vpop.permute.xlu1 %3776 }
0x13ff   : > { %v3788_v43 = vsel %vm1376_vm13, %v3775_v12, %v3777_v20 }
0x1402   : > { %v3779_v16 = vpop.permute.xlu0 %3778  ;;  %v3887_v17 = vpop.permute.xlu1 %3886 }
0x1403   : > { %v3789_v2 = vsel %vm1376_vm13, %v3777_v20, %v3779_v16 }
0x1404   : > { %4095 = vmatprep.subr.bf16.mxu0 %v3789_v2 }
0x1405   : > { %4096 = vmatpush1.bf16.msra.mxu0 %v3788_v43 }
0x1406   : > { %v3885_v1 = vpop.permute.xlu0 %3884  ;;  %v3853_v52 = vpop.permute.xlu1 %3852  ;;  %4097 = vmatprep.subr.bf16.mxu0 %v3791_v29  ;;  %v3864_v29 = vsel %vm1404_vm15, %v3847_v22, %v3849_v26  ;;  %v3868_v22 = vsel %vm1404_vm15, %v6917_v24, %v6907_v14  ;;  %v3895_v26 = vsel %vm1415_vm0, %v6945_v34, %v3881_v41  ;;  %v3899_v24 = vsel %vm1415_vm0, %v6919_v27, %v6927_v47 }
0x1407   : > { %v3897_v8 = vsel %vm1415_vm0, %v3885_v1, %v3887_v17  ;;  %v3896_v14 = vsel %vm1415_vm0, %v3883_v37, %v3885_v1  ;;  %v5599_v37 = vld [vmem:[%s7401_s3] ss:$16 sps:$4 sm:$0xff]   ;;  %v5602_v1 = vld [vmem:[%s7401_s3 + $0xc] ss:$16 sps:$4 sm:$0xff]  }
0x1409   : > { %4098 = vmatpush1.bf16.msra.mxu0 %v3790_v48 }
0x140a   : > { %v3814_v42 = vpop.permute.xlu0 %3813  ;;  %v3818_v53 = vpop.permute.xlu1 %3817  ;;  %4099 = vmatprep.subr.bf16.mxu0 %v3826_v11 }
0x140d   : > { %4100 = vmatpush1.bf16.msra.mxu0 %v3825_v23 }
0x140e   : > { %v3816_v12 = vpop.permute.xlu0 %3815  ;;  %v3889_v20 = vpop.permute.xlu1 %3888 }
0x140f   : > { %v3828_v44 = vsel %vm1390_vm14, %v3816_v12, %v3818_v53  ;;  %v3827_v16 = vsel %vm1390_vm14, %v3814_v42, %v3816_v12 }
0x1410   : > { %4101 = vmatprep.subr.bf16.mxu0 %v3828_v44 }
0x1411   : > { %4102 = vmatpush1.bf16.msra.mxu0 %v3827_v16 }
0x1412   : > { %v3918_v25 = vpop.permute.xlu0 %3917  ;;  %v3920_v35 = vpop.permute.xlu1 %3919  ;;  %4103 = vmatprep.subr.bf16.mxu0 %v3830_v15 }
0x1415   : > { %4104 = vmatpush1.bf16.msra.mxu0 %v3829_v30 }
0x1416   : > { %v3916_v2 = vpop.permute.xlu0 %3915  ;;  %v3855_v43 = vpop.permute.xlu1 %3854  ;;  %4105 = vmatprep.subr.bf16.mxu0 %v3865_v33 }
0x1417   : > { %v3866_v42 = vsel %vm1404_vm15, %v3853_v52, %v3855_v43  ;;  %v3894_v52 = vsel %vm1415_vm0, %v6929_v19, %v6945_v34  ;;  %v3898_v19 = vsel %vm1415_vm0, %v3889_v20, %v6919_v27  ;;  %v3934_v34 = vsel %vm1429_vm1, %v3918_v25, %v3920_v35 }
0x1418   : > { %v3933_v30 = vsel %vm1429_vm1, %v3916_v2, %v3918_v25 }
0x1419   : > { %4106 = vmatpush1.bf16.msra.mxu0 %v3864_v29 }
0x141a   : > { %v3857_v48 = vpop.permute.xlu0 %3856  ;;  %v3922_v11 = vpop.permute.xlu1 %3921 }
0x141b   : > { %v3867_v28 = vsel %vm1404_vm15, %v3855_v43, %v3857_v48 }
0x141c   : > { %4107 = vmatprep.subr.bf16.mxu0 %v3867_v28 }
0x141d   : > { %4108 = vmatpush1.bf16.msra.mxu0 %v3866_v42 }
0x141e   : > { %v3930_v59 = vpop.permute.xlu0 %3929  ;;  %v3932_v21 = vpop.permute.xlu1 %3931  ;;  %4109 = vmatprep.subr.bf16.mxu0 %v3869_v13 }
0x141f   : > { %v3938_v20 = vsel %vm1429_vm1, %v3930_v59, %v3932_v21 }
0x1421   : > { %4110 = vmatpush1.bf16.msra.mxu0 %v3868_v22 }
0x1422   : > { %v3928_v53 = vpop.permute.xlu0 %3927  ;;  %v3957_v23 = vpop.permute.xlu1 %3956  ;;  %4111 = vmatprep.subr.bf16.mxu0 %v3895_v26 }
0x1423   : > { %v3937_v25 = vsel %vm1429_vm1, %v3928_v53, %v3930_v59 }
0x1425   : > { %4112 = vmatpush1.bf16.msra.mxu0 %v3894_v52 }
0x1426   : > { %v3959_v12 = vpop.permute.xlu0 %3958  ;;  %v3955_v44 = vpop.permute.xlu1 %3954  ;;  %4113 = vmatprep.subr.bf16.mxu0 %v3897_v8 }
0x1427   : > { %v3973_v2 = vsel %vm1443_vm2, %v3957_v23, %v3959_v12  ;;  %v3972_v42 = vsel %vm1443_vm2, %v3955_v44, %v3957_v23 }
0x1429   : > { %4114 = vmatpush1.bf16.msra.mxu0 %v3896_v14 }
0x142a   : > { %v3961_v41 = vpop.permute.xlu0 %3960  ;;  %v3969_v16 = vpop.permute.xlu1 %3968  ;;  %4115 = vmatprep.subr.bf16.mxu0 %v3899_v24 }
0x142d   : > { %4116 = vmatpush1.bf16.msra.mxu0 %v3898_v19 }
0x142e   : > { %v3971_v17 = vpop.permute.xlu0 %3970  ;;  %v3924_v15 = vpop.permute.xlu1 %3923  ;;  %4117 = vmatprep.subr.bf16.mxu0 %v3934_v34 }
0x142f   : > { %v3935_v27 = vsel %vm1429_vm1, %v3922_v11, %v3924_v15  ;;  %v3977_v26 = vsel %vm1443_vm2, %v3969_v16, %v3971_v17 }
0x1431   : > { %4118 = vmatpush1.bf16.msra.mxu0 %v3933_v30 }
0x1432   : > { %v3926_v33 = vpop.permute.xlu0 %3925  ;;  %v3967_v43 = vpop.permute.xlu1 %3966 }
0x1433   : > { %v3936_v47 = vsel %vm1429_vm1, %v3924_v15, %v3926_v33  ;;  %v3976_v52 = vsel %vm1443_vm2, %v3967_v43, %v3969_v16 }
0x1434   : > { %4130 = vmatprep.subr.bf16.mxu0 %v3936_v47  ;;  %4120 = vmatmul.mubr.bf16.vlgmr.msra.gmra.mrb[48].mxu0 %v5599_v37 }
0x1435   : > { %4131 = vmatpush1.bf16.msra.mxu0 %v3935_v27  ;;  %5226 = vmatprep.mubr.msk.bf16.mxu0 %vm3618_vm5, %v5602_v1 }
0x1436   : > { %v3987_v35 = vpop.permute.xlu0 %3986  ;;  %v3989_v29 = vpop.permute.xlu1 %3988  ;;  %4132 = vmatprep.subr.bf16.mxu0 %v3938_v20 }
0x1437   : > { %v4003_v8 = vsel %vm1454_vm3, %v3987_v35, %v3989_v29 }
0x1439   : > { %4133 = vmatpush1.bf16.msra.mxu0 %v3937_v25 }
0x143a   : > { %v3985_v48 = vpop.permute.xlu0 %3984  ;;  %v3965_v28 = vpop.permute.xlu1 %3964  ;;  %4134 = vmatprep.subr.bf16.mxu0 %v3973_v2 }
0x143b   : > { %v4002_v44 = vsel %vm1454_vm3, %v3985_v48, %v3987_v35  ;;  %v5604_v48 = vld [vmem:[%s7401_s3 + $0x8] ss:$16 sps:$4 sm:$0xff]   ;;  %s7406_s3 = sld [smem:[#allocation21_spill]] }
0x143d   : > { %4135 = vmatpush1.bf16.msra.mxu0 %v3972_v42 }
0x143e   : > { %v3963_v11 = vpop.permute.xlu0 %3962  ;;  %v3993_v13 = vpop.permute.xlu1 %3992 }
0x143f   : > { %v3975_v21 = vsel %vm1443_vm2, %v3963_v11, %v3965_v28  ;;  %v3974_v22 = vsel %vm1443_vm2, %v3961_v41, %v3963_v11 }
0x1440   : > { %4136 = vmatprep.subr.bf16.mxu0 %v3975_v21 }
0x1441   : > { %4137 = vmatpush1.bf16.msra.mxu0 %v3974_v22 }
0x1442   : > { %v3995_v59 = vpop.permute.xlu0 %3994  ;;  %v3991_v53 = vpop.permute.xlu1 %3990  ;;  %4138 = vmatprep.subr.bf16.mxu0 %v3977_v26 }
0x1443   : > { %v4005_v14 = vsel %vm1454_vm3, %v3993_v13, %v3995_v59  ;;  %v4004_v19 = vsel %vm1454_vm3, %v3991_v53, %v3993_v13 }
0x1445   : > { %4139 = vmatpush1.bf16.msra.mxu0 %v3976_v52 }
0x1446   : > { %v3999_v23 = vpop.permute.xlu0 %3998  ;;  %v4001_v12 = vpop.permute.xlu1 %4000  ;;  %4140 = vmatprep.subr.bf16.mxu0 %v4003_v8 }
0x1447   : > { %v4007_v34 = vsel %vm1454_vm3, %v3999_v23, %v4001_v12 }
0x1449   : > { %4141 = vmatpush1.bf16.msra.mxu0 %v4002_v44 }
0x144a   : > { %v3997_v24 = vpop.permute.xlu0 %3996  ;;  %v4026_v41 = vpop.permute.xlu1 %4025  ;;  %4142 = vmatprep.subr.bf16.mxu0 %v4005_v14 }
0x144b   : > { %v4006_v15 = vsel %vm1454_vm3, %v3997_v24, %v3999_v23 }
0x144d   : > { %4143 = vmatpush1.bf16.msra.mxu0 %v4004_v19 }
0x144e   : > { %v4028_v16 = vpop.permute.xlu0 %4027  ;;  %v4024_v17 = vpop.permute.xlu1 %4023  ;;  %4144 = vmatprep.subr.bf16.mxu0 %v4007_v34 }
0x144f   : > { %v4042_v30 = vsel %vm1468_vm4, %v4026_v41, %v4028_v16  ;;  %v4041_v33 = vsel %vm1468_vm4, %v4024_v17, %v4026_v41 }
0x1451   : > { %4145 = vmatpush1.bf16.msra.mxu0 %v4006_v15 }
0x1452   : > { %v4030_v37 = vpop.permute.xlu0 %4029  ;;  %v4034_v1 = vpop.permute.xlu1 %4033  ;;  %4146 = vmatprep.subr.bf16.mxu0 %v4042_v30  ;;  %v5605_v30 = vld [vmem:[%s7406_s3] sm:$0xff]   ;;  %s7407_s3 = sld [smem:[#allocation19_spill]] }
0x1453   : > { %5221 = vmatmul.mubr.msk.bf16.vlgmr.msra.gmra.mrb[28].mxu1 %vm3618_vm5, %v5605_v30  ;;  %v3602_v30 = vld [vmem:[%s7408_s11 + $0x8] sm:$0xff] }
0x1455   : > { %4147 = vmatpush1.bf16.msra.mxu0 %v4041_v33 }
0x1456   : > { %v4032_v43 = vpop.permute.xlu0 %4031  ;;  %v4038_v47 = vpop.permute.xlu1 %4037 }
0x1457   : > { %v4043_v27 = vsel %vm1468_vm4, %v4030_v37, %v4032_v43  ;;  %v4044_v20 = vsel %vm1468_vm4, %v4032_v43, %v4034_v1 }
0x1458   : > { %4148 = vmatprep.subr.bf16.mxu0 %v4044_v20 }
0x1459   : > { %4149 = vmatpush1.bf16.msra.mxu0 %v4043_v27 }
0x145a   : > { %v4040_v35 = vpop.permute.xlu0 %4039  ;;  %v4036_v29 = vpop.permute.xlu1 %4035 }
0x145b   : > { %v4045_v25 = vsel %vm1468_vm4, %v4036_v29, %v4038_v47  ;;  %v4046_v2 = vsel %vm1468_vm4, %v4038_v47, %v4040_v35 }
0x145c   : > { %4150 = vmatprep.subr.bf16.mxu0 %v4046_v2 }
0x145d   : > { %4151 = vmatpush1.bf16.msra.mxu0 %v4045_v25 }
0x1460   : > { %4163 = vmatmul.mubr.bf16.vlgmr.msra.gmra.mrb[48].mxu0 %v5604_v48 }
0x1461   : > { %4460 = vmatprep.mubr.bf16.mxu0 %v7399_v5 }
0x146b   : > { %v4058_v28 = vpop.permute.xlu0 %4057  ;;  %v4063_v21 = vpop.permute.xlu1 %4062 }
0x1533   : > { %v4164_v42 = vpop.f32.mrb[48].mxu0 }
0x1534   : > { %v5420_v11 = vadd.f32 %v4164_v42, %v4058_v28  ;;  %v4166_v13 = vpop.f32.mrb[49].mxu0 }
0x1535   : > { %v5421_v22 = vadd.f32 %v4166_v13, %v4058_v28  ;;  %v4168_v26 = vpop.f32.mrb[50].mxu0 }
0x1536   : > { %v5227_v59 = vmul.f32 -1.442695, %v5420_v11  ;;  %v5422_v53 = vadd.f32 %v4168_v26, %v4063_v21  ;;  %v4170_v52 = vpop.f32.mrb[51].mxu0 }
0x1537   : > { %v5228_v8 = vmul.f32 -1.442695, %v5421_v22  ;;  %v5423_v23 = vadd.f32 %v4170_v52, %v4063_v21 }
0x1538   : > { %5681 = vpow2.f32 %v5227_v59  ;;  %v5229_v12 = vmul.f32 -1.442695, %v5422_v53 }
0x1539   : > { %5683 = vpow2.f32 %v5228_v8  ;;  %v5230_v44 = vmul.f32 -1.442695, %v5423_v23 }
0x153a   : > { %5685 = vpow2.f32 %v5229_v12 }
0x153b   : > { %5687 = vpow2.f32 %v5230_v44 }
0x1542   : > { %v5682_v14 = vpop.eup %5681 }
0x1543   : > { %v5684_v24 = vpop.eup %5683  ;;  %v4185_v41 = vadd.f32 1.0, %v5682_v14 }
0x1544   : > { %v5686_v19 = vpop.eup %5685  ;;  %v4186_v34 = vadd.f32 1.0, %v5684_v24 }
0x1545   : > { %v5688_v16 = vpop.eup %5687  ;;  %5689 = vrcp.f32 %v4185_v41  ;;  %v4187_v17 = vadd.f32 1.0, %v5686_v19  ;;  %v5606_v41 = vld [vmem:[%s7407_s3 + $0x4] ss:$8 sps:$4 sm:$0xff]  }
0x1546   : > { %5691 = vrcp.f32 %v4186_v34  ;;  %v4188_v15 = vadd.f32 1.0, %v5688_v16  ;;  %5233 = vmatprep.mubr.msk.bf16.mxu1 %vm1324_vm9, %v5606_v41 }
0x1547   : > { %5693 = vrcp.f32 %v4187_v17 }
0x1548   : > { %5695 = vrcp.f32 %v4188_v15  ;;  %v3601_v15 = vld [vmem:[%s7408_s11] sm:$0xff]  ;;  %s7411_s11 = sld [smem:[#allocation23_spill]] }
0x154f   : > { %v5690_v37 = vpop.eup %5689 }
0x1550   : > { %v5692_v1 = vpop.eup %5691  ;;  %v4197_v47 = vmul.f32 %v5690_v37, %v5420_v11  ;;  %v4333_v37 = vld [vmem:[%s7409_s13] sm:$0xff] }
0x1551   : > { %v5694_v33 = vpop.eup %5693  ;;  %v4198_v20 = vmul.f32 %v5692_v1, %v5421_v22  ;;  %v4334_v1 = vld [vmem:[%s7409_s13 + $0x8] sm:$0xff] }
0x1552   : > { %v5696_v43 = vpop.eup %5695  ;;  %v4199_v27 = vmul.f32 %v5694_v33, %v5422_v53 }
0x1553   : > { %v4200_v35 = vmul.f32 %v5696_v43, %v5423_v23 }
0x1554   : > { %v4201_v29 = vpack.c.bf16 %v4199_v27, %v4197_v47 }
0x1555   : > { %v4202_v25 = vpack.c.bf16 %v4200_v35, %v4198_v20 }
0x1556   : > { %4207 = vrot.lane.b32.xlu0 %v4201_v29, %s7400_s22 }
0x1557   : > { %4209 = vrot.lane.b32.xlu1 %v4202_v25, %s7400_s22 }
0x15c8   : > { %v4208_v2 = vpop.permute.xlu0 %4207 }
0x15c9   : > { %v4214_v48 = vsel %vm1291_vm7, 0, %v4208_v2  ;;  %v4210_v28 = vpop.permute.xlu1 %4209 }
0x15ca   : > { %v4211_v42 = vsel %vm1291_vm7, %v4208_v2, %v4210_v28  ;;  %4274 = vrot.lane.b32.xlu1 %v4214_v48, %s7390_s1  ;;  %4238 = vrot.lane.b32.xlu0 %v4214_v48, %s7395_s5  ;;  %v4217_v13 = vsel %vm1291_vm7, %v4210_v28, 0  ;;  %v4219_v21 = vmul.bf16 %v4214_v48, %v6000_v18  ;;  %v4221_v22 = vmul.bf16 %v4214_v48, %v6034_v39 }
0x15cb   : > { %v4220_v11 = vmul.bf16 %v4211_v42, %v6019_v36  ;;  %v4224_v26 = vmul.bf16 %v4214_v48, %v6052_v46  ;;  %v4227_v59 = vmul.bf16 %v4214_v48, %v6070_v51  ;;  %v4222_v53 = vmul.bf16 %v4211_v42, %v6064_v49 }
0x15cc   : > { %v4223_v52 = vmul.bf16 %v4217_v13, %v6050_v45  ;;  %v4226_v8 = vmul.bf16 %v4217_v13, %v6066_v50  ;;  %v4225_v23 = vmul.bf16 %v4211_v42, %v6087_v57  ;;  %v4230_v12 = vmul.bf16 %v4214_v48, %v6091_v58 }
0x15cd   : > { %4357 = vmatprep.subr.bf16.mxu1 %v4220_v11  ;;  %v4229_v44 = vmul.bf16 %v4217_v13, %v6078_v54  ;;  %v4228_v14 = vmul.bf16 %v4211_v42, %v6105_v63  ;;  %v4231_v24 = vmul.bf16 %v4211_v42, %v6110_v0  ;;  %v4232_v19 = vmul.bf16 %v4217_v13, %v6097_v61 }
0x15ce   : > { %4242 = vrot.lane.b32.xlu1 %v4217_v13, %s7395_s5  ;;  %4240 = vrot.lane.b32.xlu0 %v4211_v42, %s7395_s5  ;;  %v4234_v34 = vmul.bf16 %v4211_v42, %v6130_v9  ;;  %v4235_v16 = vmul.bf16 %v4217_v13, %v6119_v4  ;;  %v4233_v17 = vmul.bf16 %v4214_v48, %v6124_v7 }
0x15cf   : > { %4358 = vmatpush1.bf16.msra.mxu1 %v4219_v21 }
0x15d2   : > { %4276 = vrot.lane.b32.xlu1 %v4211_v42, %s7390_s1  ;;  %4278 = vrot.lane.b32.xlu0 %v4217_v13, %s7390_s1 }
0x15d6   : > { %4251 = vrot.lane.b32.xlu1 %v4221_v22, %s7389_s28  ;;  %4264 = vrot.lane.b32.xlu0 %v4224_v26, %s7396_s2 }
0x15da   : > { %4287 = vrot.lane.b32.xlu0 %v4227_v59, %s7392_s0  ;;  %4253 = vrot.lane.b32.xlu1 %v4222_v53, %s7389_s28 }
0x15de   : > { %4255 = vrot.lane.b32.xlu0 %v4223_v52, %s7389_s28  ;;  %4268 = vrot.lane.b32.xlu1 %v4226_v8, %s7396_s2 }
0x15e2   : > { %4266 = vrot.lane.b32.xlu0 %v4225_v23, %s7396_s2  ;;  %4300 = vrot.lane.b32.xlu1 %v4230_v12, %s7402_s6 }
0x15e6   : > { %4312 = vrot.lane.b32.xlu0 %v4211_v42, %s7403_s8  ;;  %4291 = vrot.lane.b32.xlu1 %v4229_v44, %s7392_s0 }
0x15ea   : > { %4289 = vrot.lane.b32.xlu0 %v4228_v14, %s7392_s0  ;;  %4302 = vrot.lane.b32.xlu1 %v4231_v24, %s7402_s6 }
0x15ee   : > { %4304 = vrot.lane.b32.xlu0 %v4232_v19, %s7402_s6  ;;  %4314 = vrot.lane.b32.xlu1 %v4217_v13, %s7403_s8 }
0x15f2   : > { %4310 = vrot.lane.b32.xlu0 %v4214_v48, %s7403_s8  ;;  %4325 = vrot.lane.b32.xlu1 %v4234_v34, %s7404_s9 }
0x15f6   : > { %4327 = vrot.lane.b32.xlu0 %v4235_v16, %s7404_s9  ;;  %4323 = vrot.lane.b32.xlu1 %v4233_v17, %s7404_s9 }
0x15fa   : > { %3605 = vperm.xlu0 %5524, %v3601_v15   ;;  %3610 = vperm.xlu1 %5525, %v3602_v30  }
0x15fe   : > { %4337 = vperm.xlu0 %5524, %v4333_v37   ;;  %4342 = vperm.xlu1 %5525, %v4334_v1  }
0x163c   : > { %v4275_v33 = vpop.permute.xlu1 %4274  ;;  %v4239_v43 = vpop.permute.xlu0 %4238 }
0x1640   : > { %v4243_v47 = vpop.permute.xlu1 %4242  ;;  %v4241_v27 = vpop.permute.xlu0 %4240 }
0x1641   : > { %v4244_v20 = vsel %vm1376_vm13, %v4239_v43, %v4241_v27  ;;  %v4245_v35 = vsel %vm1376_vm13, %v4241_v27, %v4243_v47 }
0x1642   : > { %4359 = vmatprep.subr.bf16.mxu1 %v4245_v35  ;;  %v5608_v35 = vld [vmem:[%s7407_s3] ss:$8 sps:$4 sm:$0xff]   ;;  %s7410_s3 = sld [smem:[#allocation24_spill]] }
0x1643   : > { %4360 = vmatpush1.bf16.msra.mxu1 %v4244_v20 }
0x1644   : > { %v4277_v29 = vpop.permute.xlu1 %4276  ;;  %v4279_v25 = vpop.permute.xlu0 %4278 }
0x1645   : > { %v4281_v8 = vsel %vm1415_vm0, %v4277_v29, %v4279_v25  ;;  %v4280_v44 = vsel %vm1415_vm0, %v4275_v33, %v4277_v29 }
0x1648   : > { %v4252_v2 = vpop.permute.xlu1 %4251  ;;  %v4265_v48 = vpop.permute.xlu0 %4264 }
0x164c   : > { %v4288_v28 = vpop.permute.xlu0 %4287  ;;  %v4254_v42 = vpop.permute.xlu1 %4253 }
0x164d   : > { %v4257_v22 = vsel %vm1390_vm14, %v4252_v2, %v4254_v42 }
0x1650   : > { %v4256_v11 = vpop.permute.xlu0 %4255  ;;  %v4269_v13 = vpop.permute.xlu1 %4268 }
0x1651   : > { %v4258_v21 = vsel %vm1390_vm14, %v4254_v42, %v4256_v11 }
0x1652   : > { %4361 = vmatprep.subr.bf16.mxu1 %v4258_v21 }
0x1653   : > { %4362 = vmatpush1.bf16.msra.mxu1 %v4257_v22 }
0x1654   : > { %v4267_v26 = vpop.permute.xlu0 %4266  ;;  %v4301_v59 = vpop.permute.xlu1 %4300 }
0x1655   : > { %v4270_v53 = vsel %vm1404_vm15, %v4265_v48, %v4267_v26  ;;  %v4271_v52 = vsel %vm1404_vm15, %v4267_v26, %v4269_v13 }
0x1656   : > { %4363 = vmatprep.subr.bf16.mxu1 %v4271_v52 }
0x1657   : > { %4364 = vmatpush1.bf16.msra.mxu1 %v4270_v53 }
0x1658   : > { %v4313_v23 = vpop.permute.xlu0 %4312  ;;  %v4292_v12 = vpop.permute.xlu1 %4291  ;;  %4365 = vmatprep.subr.bf16.mxu1 %v4281_v8 }
0x165b   : > { %4366 = vmatpush1.bf16.msra.mxu1 %v4280_v44 }
0x165c   : > { %v4290_v14 = vpop.permute.xlu0 %4289  ;;  %v4303_v24 = vpop.permute.xlu1 %4302 }
0x165d   : > { %v4293_v41 = vsel %vm1429_vm1, %v4288_v28, %v4290_v14  ;;  %v4294_v19 = vsel %vm1429_vm1, %v4290_v14, %v4292_v12  ;;  %v4306_v15 = vsel %vm1443_vm2, %v4301_v59, %v4303_v24 }
0x165e   : > { %4367 = vmatprep.subr.bf16.mxu1 %v4294_v19 }
0x165f   : > { %4368 = vmatpush1.bf16.msra.mxu1 %v4293_v41 }
0x1660   : > { %v4305_v34 = vpop.permute.xlu0 %4304  ;;  %v4315_v16 = vpop.permute.xlu1 %4314 }
0x1661   : > { %v4307_v17 = vsel %vm1443_vm2, %v4303_v24, %v4305_v34  ;;  %v4317_v30 = vsel %vm1454_vm3, %v4313_v23, %v4315_v16 }
0x1662   : > { %4369 = vmatprep.subr.bf16.mxu1 %v4307_v17 }
0x1663   : > { %4370 = vmatpush1.bf16.msra.mxu1 %v4306_v15 }
0x1664   : > { %v4311_v37 = vpop.permute.xlu0 %4310  ;;  %v4326_v1 = vpop.permute.xlu1 %4325  ;;  %4371 = vmatprep.subr.bf16.mxu1 %v4317_v30 }
0x1665   : > { %v4316_v33 = vsel %vm1454_vm3, %v4311_v37, %v4313_v23 }
0x1667   : > { %4372 = vmatpush1.bf16.msra.mxu1 %v4316_v33 }
0x1668   : > { %v4328_v43 = vpop.permute.xlu0 %4327  ;;  %v4324_v47 = vpop.permute.xlu1 %4323 }
0x1669   : > { %v4329_v27 = vsel %vm1468_vm4, %v4324_v47, %v4326_v1  ;;  %v4330_v20 = vsel %vm1468_vm4, %v4326_v1, %v4328_v43 }
0x166a   : > { %4373 = vmatprep.subr.bf16.mxu1 %v4330_v20 }
0x166b   : > { %4374 = vmatpush1.bf16.msra.mxu1 %v4329_v27 }
0x166e   : > { %4390 = vmatmul.mubr.bf16.vlgmr.msra.gmra.mrb[28].mxu1 %v5608_v35  ;;  %v4603_v35 = vld [vmem:[%s7410_s3] sm:$0xff] }
0x1679   : > { %v3606_v29 = vpop.permute.xlu0 %3605  ;;  %v3611_v25 = vpop.permute.xlu1 %3610 }
0x167d   : > { %v4338_v2 = vpop.permute.xlu0 %4337  ;;  %v4343_v48 = vpop.permute.xlu1 %4342 }
0x167e   : > { %v5412_v42 = vadd.f32 %v4338_v2, %v3606_v29  ;;  %v5416_v11 = vadd.f32 %v4343_v48, %v3611_v25  ;;  %v4604_v29 = vld [vmem:[%s7410_s3 + $0x8] sm:$0xff]  ;;  %v5611_v25 = vld [vmem:[%s7411_s11 + $0x4] ss:$12 sps:$4 sm:$0xff]   ;;  %s7417_s3 = sld [smem:[#allocation27_spill]] }
0x167f   : > { %4665 = vmatprep.mubr.bf16.mxu1 %v5611_v25  ;;  %v7419_v25 = vld [vmem:[#allocation34_spill] sm:$0xff] }
0x1741   : > { %v4391_v28 = vpop.f32.mrb[28].mxu1 }
0x1742   : > { %v4393_v13 = vpop.f32.mrb[29].mxu1  ;;  %v5413_v22 = vadd.f32 %v5412_v42, %v4391_v28 }
0x1743   : > { %v4395_v21 = vpop.f32.mrb[30].mxu1  ;;  %v5415_v53 = vadd.f32 %v5412_v42, %v4393_v13 }
0x1744   : > { %v5417_v26 = vadd.f32 %v5416_v11, %v4395_v21  ;;  %v4397_v59 = vpop.f32.mrb[31].mxu1 }
0x1745   : > { %v5419_v52 = vadd.f32 %v5416_v11, %v4397_v59 }
0x1746   : > { %v4404_v8 = vpack.c.bf16 %v5417_v26, %v5413_v22 }
0x1747   : > { %v4405_v23 = vpack.c.bf16 %v5419_v52, %v5415_v53 }
0x1748   : > { %4477 = vrot.lane.b32.xlu0 %v4404_v8, %s7400_s22 }
0x1749   : > { %4479 = vrot.lane.b32.xlu1 %v4405_v23, %s7400_s22  ;;  %4428 = vmatprep.subr.bf16.mxu0 %v4405_v23 }
0x174a   : > { %4429 = vmatpush1.bf16.msra.mxu0 %v4404_v8 }
0x174b   : > { %4430 = vmatprep.subr.bf16.mxu0 %v6239_v62 }
0x174e   : > { %4431 = vmatpush1.bf16.msra.mxu0 %v6237_v60 }
0x17ba   : > { %v4478_v12 = vpop.permute.xlu0 %4477 }
0x17bb   : > { %v4484_v44 = vsel %vm1291_vm7, 0, %v4478_v12  ;;  %v4480_v14 = vpop.permute.xlu1 %4479 }
0x17bc   : > { %v4481_v24 = vsel %vm1291_vm7, %v4478_v12, %v4480_v14  ;;  %v4487_v41 = vsel %vm1291_vm7, %v4480_v14, 0  ;;  %v4489_v34 = vmul.bf16 %v4484_v44, %v6000_v18  ;;  %v4491_v16 = vmul.bf16 %v4484_v44, %v6034_v39 }
0x17bd   : > { %4512 = vrot.lane.b32.xlu1 %v4487_v41, %s7395_s5  ;;  %4510 = vrot.lane.b32.xlu0 %v4481_v24, %s7395_s5  ;;  %v4490_v19 = vmul.bf16 %v4481_v24, %v6019_v36  ;;  %v4492_v62 = vmul.bf16 %v4481_v24, %v6064_v49  ;;  %v4493_v60 = vmul.bf16 %v4487_v41, %v6050_v45 }
0x17be   : > { %v4495_v17 = vmul.bf16 %v4481_v24, %v6087_v57  ;;  %v4496_v15 = vmul.bf16 %v4487_v41, %v6066_v50  ;;  %v4499_v30 = vmul.bf16 %v4487_v41, %v6078_v54  ;;  %v4497_v37 = vmul.bf16 %v4484_v44, %v6070_v51 }
0x17bf   : > { %4633 = vmatprep.subr.bf16.mxu1 %v4490_v19  ;;  %v4501_v1 = vmul.bf16 %v4481_v24, %v6110_v0  ;;  %v4502_v33 = vmul.bf16 %v4487_v41, %v6097_v61  ;;  %v4500_v43 = vmul.bf16 %v4484_v44, %v6091_v58  ;;  %v4504_v47 = vmul.bf16 %v4481_v24, %v6130_v9 }
0x17c0   : > { %4634 = vmatpush1.bf16.msra.mxu1 %v4489_v34  ;;  %v4505_v27 = vmul.bf16 %v4487_v41, %v6119_v4  ;;  %v4503_v20 = vmul.bf16 %v4484_v44, %v6124_v7  ;;  %v7412_v34 = vld [vmem:[#allocation28_spill] sm:$0xff] }
0x17c1   : > { %4508 = vrot.lane.b32.xlu0 %v4484_v44, %s7395_s5  ;;  %4523 = vrot.lane.b32.xlu1 %v4492_v62, %s7389_s28 }
0x17c2   : > { %4635 = vmatprep.subr.bf16.mxu1 %v6250_v32  ;;  %v4494_v32 = vmul.bf16 %v4484_v44, %v6052_v46 }
0x17c4   : > { %4636 = vmatpush1.bf16.msra.mxu1 %v6255_v10  ;;  %v4498_v10 = vmul.bf16 %v4481_v24, %v6105_v63 }
0x17c5   : > { %4525 = vrot.lane.b32.xlu0 %v4493_v60, %s7389_s28  ;;  %4521 = vrot.lane.b32.xlu1 %v4491_v16, %s7389_s28 }
0x17c9   : > { %4536 = vrot.lane.b32.xlu0 %v4495_v17, %s7396_s2  ;;  %4538 = vrot.lane.b32.xlu1 %v4496_v15, %s7396_s2  ;;  %v7414_v17 = vld [vmem:[#allocation30_spill] sm:$0xff] }
0x17cd   : > { %4534 = vrot.lane.b32.xlu0 %v4494_v32, %s7396_s2  ;;  %4546 = vrot.lane.b32.xlu1 %v4481_v24, %s7390_s1 }
0x17d1   : > { %4548 = vrot.lane.b32.xlu0 %v4487_v41, %s7390_s1  ;;  %4544 = vrot.lane.b32.xlu1 %v4484_v44, %s7390_s1 }
0x17d5   : > { %4559 = vrot.lane.b32.xlu0 %v4498_v10, %s7392_s0  ;;  %4561 = vrot.lane.b32.xlu1 %v4499_v30, %s7392_s0  ;;  %v7415_v30 = vld [vmem:[#allocation31_spill] sm:$0xff] }
0x17d9   : > { %4557 = vrot.lane.b32.xlu0 %v4497_v37, %s7392_s0  ;;  %4572 = vrot.lane.b32.xlu1 %v4501_v1, %s7402_s6  ;;  %v7416_v1 = vld [vmem:[#allocation32_spill] sm:$0xff] }
0x17dd   : > { %4574 = vrot.lane.b32.xlu0 %v4502_v33, %s7402_s6  ;;  %4570 = vrot.lane.b32.xlu1 %v4500_v43, %s7402_s6 }
0x17e1   : > { %4582 = vrot.lane.b32.xlu0 %v4481_v24, %s7403_s8  ;;  %4584 = vrot.lane.b32.xlu1 %v4487_v41, %s7403_s8 }
0x17e5   : > { %4580 = vrot.lane.b32.xlu0 %v4484_v44, %s7403_s8  ;;  %4595 = vrot.lane.b32.xlu1 %v4504_v47, %s7404_s9 }
0x17e9   : > { %4597 = vrot.lane.b32.xlu0 %v4505_v27, %s7404_s9  ;;  %4593 = vrot.lane.b32.xlu1 %v4503_v20, %s7404_s9  ;;  %v7418_v20 = vld [vmem:[#allocation33_spill] sm:$0xff] }
0x17ed   : > { %4607 = vperm.xlu0 %5524, %v4603_v35   ;;  %4612 = vperm.xlu1 %5525, %v4604_v29   ;;  %v5609_v35 = vld [vmem:[%s7411_s11] ss:$12 sps:$4 sm:$0xff]  }
0x182f   : > { %v4513_v2 = vpop.permute.xlu1 %4512  ;;  %v4511_v48 = vpop.permute.xlu0 %4510 }
0x1830   : > { %v4515_v28 = vsel %vm1376_vm13, %v4511_v48, %v4513_v2 }
0x1831   : > { %4637 = vmatprep.subr.bf16.mxu1 %v4515_v28  ;;  %v7420_v28 = vld [vmem:[#allocation36_spill] sm:$0xff] }
0x1833   : > { %v4509_v42 = vpop.permute.xlu0 %4508  ;;  %v4524_v11 = vpop.permute.xlu1 %4523 }
0x1834   : > { %v4514_v13 = vsel %vm1376_vm13, %v4509_v42, %v4511_v48  ;;  %v7421_v42 = vld [vmem:[#allocation35_spill] sm:$0xff] }
0x1835   : > { %4638 = vmatpush1.bf16.msra.mxu1 %v4514_v13  ;;  %v5613_v13 = vld [vmem:[%s7417_s3] sm:$0xff]  }
0x1836   : > { %4639 = vmatprep.subr.bf16.mxu1 %v6300_v38  ;;  %5235 = vmatmul.mubr.msk.bf16.vlgmr.msra.gmra.mrb[52].mxu0 %vm1348_vm11, %v5613_v13 }
0x1837   : > { %v4526_v21 = vpop.permute.xlu0 %4525  ;;  %v4522_v22 = vpop.permute.xlu1 %4521  ;;  %4994 = vmatprep.mubr.bf16.mxu0 %v7399_v5 }
0x1838   : > { %v4528_v26 = vsel %vm1390_vm14, %v4524_v11, %v4526_v21  ;;  %v4527_v52 = vsel %vm1390_vm14, %v4522_v22, %v4524_v11  ;;  %v5612_v11 = vld [vmem:[%s7411_s11 + $0x8] ss:$12 sps:$4 sm:$0xff]  }
0x1839   : > { %4640 = vmatpush1.bf16.msra.mxu1 %v6303_v40 }
0x183a   : > { %4641 = vmatprep.subr.bf16.mxu1 %v4528_v26 }
0x183b   : > { %v4537_v59 = vpop.permute.xlu0 %4536  ;;  %v4539_v53 = vpop.permute.xlu1 %4538 }
0x183c   : > { %v4541_v38 = vsel %vm1404_vm15, %v4537_v59, %v4539_v53 }
0x183d   : > { %4642 = vmatpush1.bf16.msra.mxu1 %v4527_v52 }
0x183e   : > { %4643 = vmatprep.subr.bf16.mxu1 %v6308_v55 }
0x183f   : > { %v4535_v8 = vpop.permute.xlu0 %4534  ;;  %v4547_v23 = vpop.permute.xlu1 %4546 }
0x1840   : > { %v4540_v44 = vsel %vm1404_vm15, %v4535_v8, %v4537_v59 }
0x1841   : > { %4644 = vmatpush1.bf16.msra.mxu1 %v6312_v56 }
0x1842   : > { %4645 = vmatprep.subr.bf16.mxu1 %v4541_v38 }
0x1843   : > { %v4549_v12 = vpop.permute.xlu0 %4548  ;;  %v4545_v14 = vpop.permute.xlu1 %4544 }
0x1844   : > { %v4551_v24 = vsel %vm1415_vm0, %v4547_v23, %v4549_v12  ;;  %v4550_v41 = vsel %vm1415_vm0, %v4545_v14, %v4547_v23 }
0x1845   : > { %4646 = vmatpush1.bf16.msra.mxu1 %v4540_v44 }
0x1846   : > { %4647 = vmatprep.subr.bf16.mxu1 %v6316_v31 }
0x1847   : > { %v4560_v40 = vpop.permute.xlu0 %4559  ;;  %v4562_v55 = vpop.permute.xlu1 %4561 }
0x1848   : > { %v4564_v62 = vsel %vm1429_vm1, %v4560_v40, %v4562_v55 }
0x1849   : > { %4648 = vmatpush1.bf16.msra.mxu1 %v6319_v3  ;;  %v7413_v3 = vld [vmem:[#allocation29_spill] sm:$0xff] }
0x184a   : > { %4649 = vmatprep.subr.bf16.mxu1 %v4551_v24 }
0x184b   : > { %v4558_v56 = vpop.permute.xlu0 %4557  ;;  %v4573_v19 = vpop.permute.xlu1 %4572 }
0x184c   : > { %v4563_v31 = vsel %vm1429_vm1, %v4558_v56, %v4560_v40 }
0x184d   : > { %4650 = vmatpush1.bf16.msra.mxu1 %v4550_v41 }
0x184e   : > { %4651 = vmatprep.subr.bf16.mxu1 %v6324_v6 }
0x184f   : > { %v4575_v60 = vpop.permute.xlu0 %4574  ;;  %v4571_v16 = vpop.permute.xlu1 %4570 }
0x1850   : > { %v4577_v15 = vsel %vm1443_vm2, %v4573_v19, %v4575_v60  ;;  %v4576_v6 = vsel %vm1443_vm2, %v4571_v16, %v4573_v19 }
0x1851   : > { %4652 = vmatpush1.bf16.msra.mxu1 %v7412_v34 }
0x1852   : > { %4653 = vmatprep.subr.bf16.mxu1 %v4564_v62 }
0x1853   : > { %v4583_v32 = vpop.permute.xlu0 %4582  ;;  %v4585_v10 = vpop.permute.xlu1 %4584 }
0x1854   : > { %v4587_v33 = vsel %vm1454_vm3, %v4583_v32, %v4585_v10 }
0x1855   : > { %4654 = vmatpush1.bf16.msra.mxu1 %v4563_v31 }
0x1856   : > { %4655 = vmatprep.subr.bf16.mxu1 %v7413_v3 }
0x1857   : > { %v4581_v37 = vpop.permute.xlu0 %4580  ;;  %v4596_v43 = vpop.permute.xlu1 %4595 }
0x1858   : > { %v4586_v47 = vsel %vm1454_vm3, %v4581_v37, %v4583_v32 }
0x1859   : > { %4656 = vmatpush1.bf16.msra.mxu1 %v7414_v17 }
0x185a   : > { %4657 = vmatprep.subr.bf16.mxu1 %v4577_v15 }
0x185b   : > { %v4598_v27 = vpop.permute.xlu0 %4597  ;;  %v4594_v29 = vpop.permute.xlu1 %4593 }
0x185c   : > { %v4600_v2 = vsel %vm1468_vm4, %v4596_v43, %v4598_v27  ;;  %v4599_v48 = vsel %vm1468_vm4, %v4594_v29, %v4596_v43 }
0x185d   : > { %4658 = vmatpush1.bf16.msra.mxu1 %v4576_v6 }
0x185e   : > { %4659 = vmatprep.subr.bf16.mxu1 %v7415_v30 }
0x1861   : > { %4660 = vmatpush1.bf16.msra.mxu1 %v7416_v1 }
0x1862   : > { %4661 = vmatprep.subr.bf16.mxu1 %v4587_v33 }
0x1865   : > { %4662 = vmatpush1.bf16.msra.mxu1 %v4586_v47 }
0x1866   : > { %4663 = vmatprep.subr.bf16.mxu1 %v7418_v20 }
0x1869   : > { %4664 = vmatpush1.bf16.msra.mxu1 %v7419_v25 }
0x186a   : > { %4676 = vmatprep.subr.bf16.mxu1 %v4600_v2 }
0x186c   : > { %4666 = vmatmul.mubr.bf16.vlgmr.msra.gmra.mrb[32].mxu1 %v5609_v35  ;;  %v4608_v21 = vpop.permute.xlu0 %4607  ;;  %v4613_v53 = vpop.permute.xlu1 %4612 }
0x186d   : > { %4677 = vmatpush1.bf16.msra.mxu1 %v4599_v48  ;;  %4708 = vmatprep.mubr.bf16.mxu1 %v7399_v5 }
0x186e   : > { %4678 = vmatprep.subr.bf16.mxu1 %v7420_v28 }
0x1871   : > { %4679 = vmatpush1.bf16.msra.mxu1 %v7421_v42  ;;  %v4408_v42 = vld [vmem:[%s5959_s12] sm:$0xff] }
0x1878   : > { %5239 = vmatmul.mubr.msk.bf16.vlgmr.msra.gmra.mrb[32].mxu1 %vm1348_vm11, %v5612_v11  ;;  %v4409_v11 = vld [vmem:[%s5959_s12 + $0x8] sm:$0xff] }
0x194b   : > { %v4710_v22 = vpop.f32.mrb[32].mxu1 }
0x194c   : > { %v5436_v26 = vadd.f32 %v4710_v22, %v4608_v21  ;;  %v4712_v59 = vpop.f32.mrb[33].mxu1  ;;  %v4953_v22 = vld [vmem:[%s5969_s30] sm:$0x7] }
0x194d   : > { %v5437_v52 = vadd.f32 %v4712_v59, %v4608_v21  ;;  %v4714_v8 = vpop.f32.mrb[34].mxu1 }
0x194e   : > { %v5240_v23 = vmul.f32 -1.442695, %v5436_v26  ;;  %v5438_v38 = vadd.f32 %v4714_v8, %v4613_v53  ;;  %v4716_v12 = vpop.f32.mrb[35].mxu1 }
0x194f   : > { %v5241_v44 = vmul.f32 -1.442695, %v5437_v52  ;;  %v5439_v14 = vadd.f32 %v4716_v12, %v4613_v53 }
0x1950   : > { %5697 = vpow2.f32 %v5240_v23  ;;  %v5242_v40 = vmul.f32 -1.442695, %v5438_v38 }
0x1951   : > { %5699 = vpow2.f32 %v5241_v44  ;;  %v5243_v24 = vmul.f32 -1.442695, %v5439_v14 }
0x1952   : > { %5701 = vpow2.f32 %v5242_v40 }
0x1953   : > { %5703 = vpow2.f32 %v5243_v24 }
0x195a   : > { %v5698_v55 = vpop.eup %5697 }
0x195b   : > { %v5700_v5 = vpop.eup %5699  ;;  %v4731_v41 = vadd.f32 1.0, %v5698_v55 }
0x195c   : > { %v5702_v56 = vpop.eup %5701  ;;  %v4732_v19 = vadd.f32 1.0, %v5700_v5 }
0x195d   : > { %v5704_v34 = vpop.eup %5703  ;;  %5705 = vrcp.f32 %v4731_v41  ;;  %v4733_v62 = vadd.f32 1.0, %v5702_v56 }
0x195e   : > { %5707 = vrcp.f32 %v4732_v19  ;;  %v4734_v31 = vadd.f32 1.0, %v5704_v34 }
0x195f   : > { %5709 = vrcp.f32 %v4733_v62 }
0x1960   : > { %5711 = vrcp.f32 %v4734_v31 }
0x1967   : > { %v5706_v60 = vpop.eup %5705 }
0x1968   : > { %v5708_v3 = vpop.eup %5707  ;;  %v4743_v15 = vmul.f32 %v5706_v60, %v5436_v26 }
0x1969   : > { %v5710_v16 = vpop.eup %5709  ;;  %v4744_v6 = vmul.f32 %v5708_v3, %v5437_v52 }
0x196a   : > { %v5712_v17 = vpop.eup %5711  ;;  %v4745_v32 = vmul.f32 %v5710_v16, %v5438_v38 }
0x196b   : > { %v4746_v10 = vmul.f32 %v5712_v17, %v5439_v14 }
0x196c   : > { %v4747_v30 = vpack.c.bf16 %v4745_v32, %v4743_v15 }
0x196d   : > { %v4748_v37 = vpack.c.bf16 %v4746_v10, %v4744_v6 }
0x196e   : > { %4753 = vrot.lane.b32.xlu0 %v4747_v30, %s7400_s22 }
0x196f   : > { %4755 = vrot.lane.b32.xlu1 %v4748_v37, %s7400_s22 }
0x19e0   : > { %v4754_v1 = vpop.permute.xlu0 %4753 }
0x19e1   : > { %v4760_v33 = vsel %vm1291_vm7, 0, %v4754_v1  ;;  %v4756_v43 = vpop.permute.xlu1 %4755 }
0x19e2   : > { %v4757_v47 = vsel %vm1291_vm7, %v4754_v1, %v4756_v43  ;;  %4820 = vrot.lane.b32.xlu1 %v4760_v33, %s7390_s1  ;;  %4784 = vrot.lane.b32.xlu0 %v4760_v33, %s7395_s5  ;;  %v4763_v20 = vsel %vm1291_vm7, %v4756_v43, 0  ;;  %v4765_v35 = vmul.bf16 %v4760_v33, %v6000_v18  ;;  %v4767_v29 = vmul.bf16 %v4760_v33, %v6034_v39 }
0x19e3   : > { %v4766_v27 = vmul.bf16 %v4757_v47, %v6019_v36  ;;  %v4770_v25 = vmul.bf16 %v4760_v33, %v6052_v46  ;;  %v4773_v36 = vmul.bf16 %v4760_v33, %v6070_v51  ;;  %v4768_v18 = vmul.bf16 %v4757_v47, %v6064_v49 }
0x19e4   : > { %v4769_v2 = vmul.bf16 %v4763_v20, %v6050_v45  ;;  %v4772_v48 = vmul.bf16 %v4763_v20, %v6066_v50  ;;  %v4771_v39 = vmul.bf16 %v4757_v47, %v6087_v57  ;;  %v4776_v46 = vmul.bf16 %v4760_v33, %v6091_v58 }
0x19e5   : > { %4903 = vmatprep.subr.bf16.mxu1 %v4766_v27  ;;  %v4775_v49 = vmul.bf16 %v4763_v20, %v6078_v54  ;;  %v4774_v45 = vmul.bf16 %v4757_v47, %v6105_v63  ;;  %v4777_v50 = vmul.bf16 %v4757_v47, %v6110_v0  ;;  %v4778_v57 = vmul.bf16 %v4763_v20, %v6097_v61  ;;  %v7222_v54 = vpop.f32.mrb[52].mxu0 }
0x19e6   : > { %4788 = vrot.lane.b32.xlu1 %v4763_v20, %s7395_s5  ;;  %4786 = vrot.lane.b32.xlu0 %v4757_v47, %s7395_s5  ;;  %s7422_s5 = sld [smem:[#allocation25_spill]]  ;;  %v7224_v58 = vpop.f32.mrb[53].mxu0  ;;  %v4780_v63 = vmul.bf16 %v4757_v47, %v6130_v9  ;;  %v4781_v61 = vmul.bf16 %v4763_v20, %v6119_v4  ;;  %v4779_v28 = vmul.bf16 %v4760_v33, %v6124_v7 }
0x19e7   : > { %4904 = vmatpush1.bf16.msra.mxu1 %v4765_v35  ;;  %v7227_v0 = vpop.f32.mrb[54].mxu0 }
0x19e8   : > { %v7237_v9 = vpop.f32.mrb[55].mxu0 }
0x19ea   : > { %4822 = vrot.lane.b32.xlu1 %v4757_v47, %s7390_s1  ;;  %4824 = vrot.lane.b32.xlu0 %v4763_v20, %s7390_s1  ;;  %s7423_s1 = sld [smem:[#allocation26_spill]] }
0x19ec   : > { %v5614_v51 = vld [vmem:[%s7422_s5 + $0x4] ss:$8 sps:$4 sm:$0xff]  }
0x19ed   : > { %5246 = vmatprep.mubr.msk.bf16.mxu1 %vm1324_vm9, %v5614_v51 }
0x19ee   : > { %4797 = vrot.lane.b32.xlu1 %v4767_v29, %s7389_s28  ;;  %4810 = vrot.lane.b32.xlu0 %v4770_v25, %s7396_s2  ;;  %v5616_v25 = vld [vmem:[%s7422_s5] ss:$8 sps:$4 sm:$0xff]  }
0x19f0   : > { %v4879_v13 = vld [vmem:[%s7423_s1] sm:$0xff]  ;;  %v4880_v21 = vld [vmem:[%s7423_s1 + $0x8] sm:$0xff] }
0x19f2   : > { %4833 = vrot.lane.b32.xlu0 %v4773_v36, %s7392_s0  ;;  %4799 = vrot.lane.b32.xlu1 %v4768_v18, %s7389_s28 }
0x19f6   : > { %4801 = vrot.lane.b32.xlu0 %v4769_v2, %s7389_s28  ;;  %4814 = vrot.lane.b32.xlu1 %v4772_v48, %s7396_s2 }
0x19fa   : > { %4812 = vrot.lane.b32.xlu0 %v4771_v39, %s7396_s2  ;;  %4846 = vrot.lane.b32.xlu1 %v4776_v46, %s7402_s6 }
0x19fe   : > { %4858 = vrot.lane.b32.xlu0 %v4757_v47, %s7403_s8  ;;  %4837 = vrot.lane.b32.xlu1 %v4775_v49, %s7392_s0 }
0x1a02   : > { %4835 = vrot.lane.b32.xlu0 %v4774_v45, %s7392_s0  ;;  %4848 = vrot.lane.b32.xlu1 %v4777_v50, %s7402_s6 }
0x1a06   : > { %4850 = vrot.lane.b32.xlu0 %v4778_v57, %s7402_s6  ;;  %4860 = vrot.lane.b32.xlu1 %v4763_v20, %s7403_s8 }
0x1a0a   : > { %4856 = vrot.lane.b32.xlu0 %v4760_v33, %s7403_s8  ;;  %4871 = vrot.lane.b32.xlu1 %v4780_v63, %s7404_s9 }
0x1a0e   : > { %4873 = vrot.lane.b32.xlu0 %v4781_v61, %s7404_s9  ;;  %4869 = vrot.lane.b32.xlu1 %v4779_v28, %s7404_s9  ;;  %s5252_s9 = sshll.u32 %s7425_s10, 3 }
0x1a0f   : > { %s1146_s8 = scalar_lea.vmem %s5974_s4, %s5252_s9 }
0x1a12   : > { %4412 = vperm.xlu0 %5524, %v4408_v42   ;;  %4417 = vperm.xlu1 %5525, %v4409_v11  }
0x1a16   : > { %4883 = vperm.xlu0 %5524, %v4879_v13   ;;  %4888 = vperm.xlu1 %5525, %v4880_v21  }
0x1a1a   : > { %4956 = vperm.xlu0 %5524, %v4953_v22  }
0x1a54   : > { %v4821_v26 = vpop.permute.xlu1 %4820  ;;  %v4785_v4 = vpop.permute.xlu0 %4784 }
0x1a58   : > { %v4789_v59 = vpop.permute.xlu1 %4788  ;;  %v4787_v7 = vpop.permute.xlu0 %4786 }
0x1a59   : > { %v4790_v53 = vsel %vm1376_vm13, %v4785_v4, %v4787_v7  ;;  %v4791_v52 = vsel %vm1376_vm13, %v4787_v7, %v4789_v59 }
0x1a5a   : > { %4905 = vmatprep.subr.bf16.mxu1 %v4791_v52 }
0x1a5b   : > { %4906 = vmatpush1.bf16.msra.mxu1 %v4790_v53 }
0x1a5c   : > { %v4823_v8 = vpop.permute.xlu1 %4822  ;;  %v4825_v23 = vpop.permute.xlu0 %4824 }
0x1a5d   : > { %v4827_v62 = vsel %vm1415_vm0, %v4823_v8, %v4825_v23  ;;  %v4826_v3 = vsel %vm1415_vm0, %v4821_v26, %v4823_v8 }
0x1a60   : > { %v4798_v38 = vpop.permute.xlu1 %4797  ;;  %v4811_v12 = vpop.permute.xlu0 %4810 }
0x1a64   : > { %v4834_v44 = vpop.permute.xlu0 %4833  ;;  %v4800_v14 = vpop.permute.xlu1 %4799 }
0x1a65   : > { %v4803_v5 = vsel %vm1390_vm14, %v4798_v38, %v4800_v14 }
0x1a68   : > { %v4802_v40 = vpop.permute.xlu0 %4801  ;;  %v4815_v24 = vpop.permute.xlu1 %4814 }
0x1a69   : > { %v4804_v55 = vsel %vm1390_vm14, %v4800_v14, %v4802_v40 }
0x1a6a   : > { %4907 = vmatprep.subr.bf16.mxu1 %v4804_v55 }
0x1a6b   : > { %4908 = vmatpush1.bf16.msra.mxu1 %v4803_v5 }
0x1a6c   : > { %v4813_v41 = vpop.permute.xlu0 %4812  ;;  %v4847_v56 = vpop.permute.xlu1 %4846 }
0x1a6d   : > { %v4816_v19 = vsel %vm1404_vm15, %v4811_v12, %v4813_v41  ;;  %v4817_v34 = vsel %vm1404_vm15, %v4813_v41, %v4815_v24 }
0x1a6e   : > { %4909 = vmatprep.subr.bf16.mxu1 %v4817_v34 }
0x1a6f   : > { %4910 = vmatpush1.bf16.msra.mxu1 %v4816_v19 }
0x1a70   : > { %v4859_v31 = vpop.permute.xlu0 %4858  ;;  %v4838_v60 = vpop.permute.xlu1 %4837  ;;  %4911 = vmatprep.subr.bf16.mxu1 %v4827_v62 }
0x1a73   : > { %4912 = vmatpush1.bf16.msra.mxu1 %v4826_v3 }
0x1a74   : > { %v4836_v16 = vpop.permute.xlu0 %4835  ;;  %v4849_v17 = vpop.permute.xlu1 %4848 }
0x1a75   : > { %v4839_v15 = vsel %vm1429_vm1, %v4834_v44, %v4836_v16  ;;  %v4840_v32 = vsel %vm1429_vm1, %v4836_v16, %v4838_v60  ;;  %v4852_v37 = vsel %vm1443_vm2, %v4847_v56, %v4849_v17 }
0x1a76   : > { %4913 = vmatprep.subr.bf16.mxu1 %v4840_v32 }
0x1a77   : > { %4914 = vmatpush1.bf16.msra.mxu1 %v4839_v15 }
0x1a78   : > { %v4851_v6 = vpop.permute.xlu0 %4850  ;;  %v4861_v10 = vpop.permute.xlu1 %4860 }
0x1a79   : > { %v4853_v30 = vsel %vm1443_vm2, %v4849_v17, %v4851_v6  ;;  %v4863_v1 = vsel %vm1454_vm3, %v4859_v31, %v4861_v10 }
0x1a7a   : > { %4915 = vmatprep.subr.bf16.mxu1 %v4853_v30 }
0x1a7b   : > { %4916 = vmatpush1.bf16.msra.mxu1 %v4852_v37 }
0x1a7c   : > { %v4857_v33 = vpop.permute.xlu0 %4856  ;;  %v4872_v43 = vpop.permute.xlu1 %4871  ;;  %4917 = vmatprep.subr.bf16.mxu1 %v4863_v1 }
0x1a7d   : > { %v4862_v47 = vsel %vm1454_vm3, %v4857_v33, %v4859_v31 }
0x1a7f   : > { %4918 = vmatpush1.bf16.msra.mxu1 %v4862_v47 }
0x1a80   : > { %v4874_v27 = vpop.permute.xlu0 %4873  ;;  %v4870_v20 = vpop.permute.xlu1 %4869 }
0x1a81   : > { %v4875_v35 = vsel %vm1468_vm4, %v4870_v20, %v4872_v43  ;;  %v4876_v29 = vsel %vm1468_vm4, %v4872_v43, %v4874_v27 }
0x1a82   : > { %4919 = vmatprep.subr.bf16.mxu1 %v4876_v29 }
0x1a83   : > { %4920 = vmatpush1.bf16.msra.mxu1 %v4875_v35 }
0x1a86   : > { %4936 = vmatmul.mubr.bf16.vlgmr.msra.gmra.mrb[36].mxu1 %v5616_v25 }
0x1a91   : > { %v4413_v36 = vpop.permute.xlu0 %4412  ;;  %v4418_v18 = vpop.permute.xlu1 %4417 }
0x1a92   : > { %v4463_v48 = vadd.f32 %v7222_v54, %v4413_v36  ;;  %v4465_v39 = vadd.f32 %v7224_v58, %v4413_v36  ;;  %v4467_v49 = vadd.f32 %v7227_v0, %v4418_v18  ;;  %v4469_v50 = vadd.f32 %v7237_v9, %v4418_v18  ;;  %v4952_v0 = vld [vmem:[%s5964_s20] sm:$0x3] }
0x1a95   : > { %v4884_v2 = vpop.permute.xlu0 %4883  ;;  %v4889_v46 = vpop.permute.xlu1 %4888 }
0x1a96   : > { %v5425_v45 = vadd.f32 %v4884_v2, %v4463_v48  ;;  %v5428_v51 = vadd.f32 %v4884_v2, %v4465_v39  ;;  %v5431_v63 = vadd.f32 %v4889_v46, %v4467_v49  ;;  %v5434_v42 = vadd.f32 %v4889_v46, %v4469_v50 }
0x1a99   : > { %v4957_v9 = vpop.permute.xlu0 %4956 }
0x1b59   : > { %v4937_v57 = vpop.f32.mrb[36].mxu1 }
0x1b5a   : > { %v5426_v61 = vadd.f32 %v5425_v45, %v4937_v57  ;;  %v4939_v28 = vpop.f32.mrb[37].mxu1 }
0x1b5b   : > { %v5429_v11 = vadd.f32 %v5428_v51, %v4939_v28  ;;  %v4941_v13 = vpop.f32.mrb[38].mxu1 }
0x1b5c   : > { %v5432_v21 = vadd.f32 %v5431_v63, %v4941_v13  ;;  %v4943_v54 = vpop.f32.mrb[39].mxu1 }
0x1b5d   : > { %v5435_v58 = vadd.f32 %v5434_v42, %v4943_v54 }
0x1b5e   : > { %v4950_v22 = vpack.c.bf16 %v5432_v21, %v5426_v61 }
0x1b5f   : > { %v4951_v26 = vpack.c.bf16 %v5435_v58, %v5429_v11 }
0x1b61   : > { %4962 = vmatprep.subr.bf16.mxu0 %v4951_v26 }
0x1b62   : > { %4963 = vmatpush1.bf16.msra.mxu0 %v4950_v22 }
0x1b65   : > { %5247 = vmatmul.mubr.msk.bf16.vlgmr.msra.gmra.mrb[56].mxu0 %vm1324_vm9, %v4952_v0 }
0x1c38   : > { %v4996_v4 = vpop.f32.mrb[56].mxu0 }
0x1c39   : > { %v4997_v59 = vadd.f32 %v4996_v4, %v4957_v9  ;;  %v4998_v7 = vpop.f32.mrb[57].mxu0 }
0x1c3a   : > { %v4999_v53 = vadd.f32 %v4998_v7, %v4957_v9  ;;  %v5000_v52 = vpop.f32.mrb[58].mxu0 }
0x1c3b   : > { %v5001_v8 = vpop.f32.mrb[59].mxu0 }
0x1c3c   : > { %v5005_v23 = vcombine.low %v4997_v59, %v4999_v53 }
0x1c3e   : > { %5007 = vst [vmem:[%s1146_s8] sm:$0x77] %v5005_v23 }
0x1c3f PF: > { %s85_s7 = sadd.s32 1, %s5719_s7  }
0x1c40   : > { %p82_p4 = scmp.ge.s32.totalorder %s85_s7, 4  }
0x1c42   :  { %84 = sbr.rel (!%p82_p4) target bundleno = 69 (0x45), region = 238 }

</bundles_post_ra>
